<compile_context>
chip_gen: v7x
topology: tpu7x:2x2x1
jax: 0.10.0
libtpu: 0.0.40
codegen_flags: <defaults>
</compile_context>

<pallas_src>
import functools
import numpy as np
import jax
import jax.numpy as jnp
from jax import lax
from jax.experimental import pallas as pl
from jax.experimental.pallas import tpu as pltpu


def _round_up(x, m):
    return (x + m - 1) // m * m


# ----------------------------- Pallas kernel -------------------------------
def _decoder_kernel(x_ref, w_ih_ref, w_hh_ref, b_ref, w_lin_ref, b_lin_ref,
                    out_ref, xbuf, gbuf, *, num_layers):
    """Multi-layer LSTM over the full (padded) sequence + output projection.

    x_ref    : (S, Bp, Hp)        time-major embedded inputs (zero padded)
    w_ih_ref : (L, Hp, 4Hp)       pre-transposed, per-gate lane-padded weights
    w_hh_ref : (L, Hp, 4Hp)
    b_ref    : (L, 1, 4Hp)        b_ih + b_hh (lane padded with zeros)
    w_lin_ref: (Hp, Vp)
    b_lin_ref: (1, Vp)
    out_ref  : (S*Bp, Vp)         lane-dense logits slab
    xbuf     : (S, Bp, Hp)  VMEM  current layer's sequence (overwritten per layer)
    gbuf     : (S, Bp, 4Hp) VMEM  precomputed input->gate contributions
    """
    S, Bp, Hp = x_ref.shape

    # layer-0 input = embedded sequence
    xbuf[...] = x_ref[...]

    for l in range(num_layers):                     # static unroll over layers
        w_hh_l = w_hh_ref[l]                        # (Hp, 4Hp)

        # Whole-sequence input->gates (+ bias) as ONE big MXU pass, off the
        # serial recurrence critical path.
        x2d = xbuf[...].reshape(S * Bp, Hp)
        gx = (jnp.dot(x2d, w_ih_ref[l], preferred_element_type=jnp.float32)
              + b_ref[l])                           # (S*Bp, 4Hp)
        gbuf[...] = gx.reshape(S, Bp, 4 * Hp)

        def step(t, carry, w_hh_l=w_hh_l):
            h, c = carry
            gates = gbuf[t] + jnp.dot(h, w_hh_l,
                                      preferred_element_type=jnp.float32)
            # each gate slice is a full aligned 128-lane group (Hp % 128 == 0)
            i = jax.nn.sigmoid(gates[:, 0 * Hp:1 * Hp])
            f = jax.nn.sigmoid(gates[:, 1 * Hp:2 * Hp])
            g = jnp.tanh(gates[:, 2 * Hp:3 * Hp])
            o = jax.nn.sigmoid(gates[:, 3 * Hp:4 * Hp])
            c = f * c + i * g
            h = o * jnp.tanh(c)
            xbuf[t] = h                             # layer output overwrites input
            return (h, c)

        h0 = jnp.zeros((Bp, Hp), jnp.float32)
        c0 = jnp.zeros((Bp, Hp), jnp.float32)
        # zero initial state (as in self.lstm(packed)); short static trip count
        lax.fori_loop(0, S, step, (h0, c0), unroll=True)

    # final linear as one lane-dense 2D matmul: (S*Bp, Hp) @ (Hp, Vp) + (1, Vp)
    x2d = xbuf[...].reshape(S * Bp, Hp)
    out_ref[...] = (jnp.dot(x2d, w_lin_ref[...],
                            preferred_element_type=jnp.float32)
                    + b_lin_ref[...]).astype(out_ref.dtype)


# ------------------------------- wrapper ------------------------------------
def _packed_indices(lengths, batch_size):
    """pack_padded_sequence (batch_first, lengths sorted descending) order."""
    lengths = np.asarray(lengths)
    b_idx, t_idx = [], []
    for t in range(int(lengths.max())):
        for b in range(batch_size):
            if lengths[b] > t:
                b_idx.append(b)
                t_idx.append(t)
    return np.array(b_idx, np.int32), np.array(t_idx, np.int32)


def _pad_params(params, H, Hp, Vp, num_layers):
    """Zero-pad weights so each LSTM gate occupies its own full 128-lane slab.

    Padded gate columns get zero weight + zero bias -> gates==0 -> c stays 0,
    h stays 0 in padded lanes, so padding never perturbs the real lanes.
    """
    E = params["w_ih_t"].shape[1]
    assert E == H, "stacked layer-input weights require embed_size == hidden_size"
    L = num_layers
    w_ih_p = jnp.zeros((L, Hp, 4 * Hp), jnp.float32)
    w_hh_p = jnp.zeros((L, Hp, 4 * Hp), jnp.float32)
    b_p = jnp.zeros((L, 1, 4 * Hp), jnp.float32)
    for k in range(4):                                   # gate order i, f, g, o
        w_ih_p = w_ih_p.at[:, :E, k * Hp:k * Hp + H].set(
            params["w_ih_t"][:, :, k * H:(k + 1) * H])
        w_hh_p = w_hh_p.at[:, :H, k * Hp:k * Hp + H].set(
            params["w_hh_t"][:, :, k * H:(k + 1) * H])
        b_p = b_p.at[:, :, k * Hp:k * Hp + H].set(
            params["b"][:, :, k * H:(k + 1) * H])
    V = params["w_lin_t"].shape[1]
    w_lin_p = jnp.zeros((Hp, Vp), jnp.float32).at[:H, :V].set(params["w_lin_t"])
    b_lin_p = jnp.zeros((1, Vp), jnp.float32).at[:, :V].set(params["b_lin"])
    return w_ih_p, w_hh_p, b_p, w_lin_p, b_lin_p


def decoder_forward(features, captions, lengths, params, *, num_layers, hidden_size):
    """Mirrors DecoderRNN.forward: returns (sum(lengths), vocab_size) logits."""
    H = hidden_size
    V = params["w_lin_t"].shape[1]

    # glue: embedding lookup + prepend image features as timestep 0
    emb = params["embed"][captions]                            # (B, T, E)
    x = jnp.concatenate([features[:, None, :], emb], axis=1)   # (B, S, E)
    B, S, E = x.shape

    # hardware-tile padding: batch -> sublane(8); hidden/embed, vocab -> lane(128)
    Bp = _round_up(B, 8)
    Hp = _round_up(max(H, E), 128)
    Vp = _round_up(V, 128)

    x_tm = jnp.transpose(x, (1, 0, 2))                         # (S, B, E) time-major
    x_pad = jnp.zeros((S, Bp, Hp), jnp.float32).at[:, :B, :E].set(x_tm)

    w_ih_p, w_hh_p, b_p, w_lin_p, b_lin_p = _pad_params(params, H, Hp, Vp, num_layers)

    kernel = functools.partial(_decoder_kernel, num_layers=num_layers)

    out2d = pl.pallas_call(
        kernel,
        out_shape=jax.ShapeDtypeStruct((S * Bp, Vp), jnp.float32),
        grid=(1,),
        in_specs=[
            pl.BlockSpec((S, Bp, Hp), lambda i: (0, 0, 0)),
            pl.BlockSpec((num_layers, Hp, 4 * Hp), lambda i: (0, 0, 0)),
            pl.BlockSpec((num_layers, Hp, 4 * Hp), lambda i: (0, 0, 0)),
            pl.BlockSpec((num_layers, 1, 4 * Hp), lambda i: (0, 0, 0)),
            pl.BlockSpec((Hp, Vp), lambda i: (0, 0)),
            pl.BlockSpec((1, Vp), lambda i: (0, 0)),
        ],
        out_specs=pl.BlockSpec((S * Bp, Vp), lambda i: (0, 0)),
        scratch_shapes=[pltpu.VMEM((S, Bp, Hp), jnp.float32),
                        pltpu.VMEM((S, Bp, 4 * Hp), jnp.float32)],
        compiler_params=pltpu.CompilerParams(
            dimension_semantics=("arbitrary",)),
    )(x_pad, w_ih_p, w_hh_p, b_p, w_lin_p, b_lin_p)

    # un-pad and back to batch-first
    out_bsv = jnp.transpose(out2d.reshape(S, Bp, Vp), (1, 0, 2))[:B, :, :V]

    # TODO(synk): pack_padded_sequence index bookkeeping stays in host glue
    b_idx, t_idx = _packed_indices(lengths, B)
    return out_bsv[jnp.asarray(b_idx), jnp.asarray(t_idx)]     # (sum(lengths), V)


# ----------------------- pure-JAX reference (for check) ---------------------
def reference_forward(features, captions, lengths, params, *, num_layers, hidden_size):
    H = hidden_size
    emb = params["embed"][captions]
    x = jnp.concatenate([features[:, None, :], emb], axis=1)   # (B, S, E)
    B, S, _ = x.shape
    layer_in = x
    for l in range(num_layers):
        w_ih = params["w_ih_t"][l]
        w_hh = params["w_hh_t"][l]
        b = params["b"][l]
        h = jnp.zeros((B, H), jnp.float32)
        c = jnp.zeros((B, H), jnp.float32)
        outs = []
        for t in range(S):
            gates = layer_in[:, t, :] @ w_ih + h @ w_hh + b
            i = jax.nn.sigmoid(gates[:, :H])
            f = jax.nn.sigmoid(gates[:, H:2 * H])
            g = jnp.tanh(gates[:, 2 * H:3 * H])
            o = jax.nn.sigmoid(gates[:, 3 * H:])
            c = f * c + i * g
            h = o * jnp.tanh(c)
            outs.append(h)
        layer_in = jnp.stack(outs, axis=1)
    logits = layer_in @ params["w_lin_t"] + params["b_lin"]    # (B, S, V)
    b_idx, t_idx = _packed_indices(lengths, B)
    return logits[jnp.asarray(b_idx), jnp.asarray(t_idx)]


# --------------------------------- main --------------------------------------
if __name__ == "__main__":
    # module hyperparams (embed_size == hidden_size so layer weights stack)
    EMBED, HIDDEN, VOCAB, NUM_LAYERS = 32, 32, 40, 2
    B, T_CAP = 2, 8
    S = 1 + T_CAP                                  # features prepended as t=0

    key = jax.random.PRNGKey(0)
    ks = jax.random.split(key, 8)

    params = {
        "embed":   0.1 * jax.random.normal(ks[0], (VOCAB, EMBED), jnp.float32),
        # stacked + pre-transposed LSTM weights (PyTorch gate order i,f,g,o)
        "w_ih_t":  0.1 * jax.random.normal(ks[1], (NUM_LAYERS, EMBED, 4 * HIDDEN), jnp.float32),
        "w_hh_t":  0.1 * jax.random.normal(ks[2], (NUM_LAYERS, HIDDEN, 4 * HIDDEN), jnp.float32),
        "b":       0.1 * jax.random.normal(ks[3], (NUM_LAYERS, 1, 4 * HIDDEN), jnp.float32),
        "w_lin_t": 0.1 * jax.random.normal(ks[4], (HIDDEN, VOCAB), jnp.float32),
        "b_lin":   0.1 * jax.random.normal(ks[5], (1, VOCAB), jnp.float32),
    }

    features = jax.random.normal(ks[6], (B, EMBED), jnp.float32)
    captions = jax.random.randint(ks[7], (B, T_CAP), 0, VOCAB, jnp.int32)
    lengths = [9, 7]                               # sorted descending, <= S

    out = decoder_forward(features, captions, lengths, params,
                          num_layers=NUM_LAYERS, hidden_size=HIDDEN)
    out = jax.block_until_ready(out)

    ref = jax.block_until_ready(
        reference_forward(features, captions, lengths, params,
                          num_layers=NUM_LAYERS, hidden_size=HIDDEN))

    assert out.shape == (sum(lengths), VOCAB), out.shape
    np.testing.assert_allclose(np.asarray(out), np.asarray(ref), rtol=2e-3, atol=2e-3)
    print("KERNEL_OK")
</pallas_src>

<mosaic_0001>
module attributes {stable_mosaic.version = 11 : i64} {
  func.func @_decoder_kernel(%arg0: i32, %arg1: memref<9x8x128xf32, #tpu.memory_space<vmem>>, %arg2: memref<2x128x512xf32, #tpu.memory_space<vmem>>, %arg3: memref<2x128x512xf32, #tpu.memory_space<vmem>>, %arg4: memref<2x1x512xf32, #tpu.memory_space<vmem>>, %arg5: memref<128x128xf32, #tpu.memory_space<vmem>>, %arg6: memref<1x128xf32, #tpu.memory_space<vmem>>, %arg7: memref<72x128xf32, #tpu.memory_space<vmem>>, %arg8: memref<9x8x128xf32, #tpu.memory_space<vmem>>, %arg9: memref<9x8x512xf32, #tpu.memory_space<vmem>>) attributes {dimension_semantics = [#tpu.dimension_semantics<arbitrary>], iteration_bounds = array<i64: 1>, scalar_prefetch = 0 : i64, scratch_operands = 2 : i64, tpu.core_type = #tpu.core_type<tc>, window_params = [{pipeline_mode = #tpu.pipeline_mode<synchronous>, transform_indices = @transform_0, window_bounds = array<i64: 9, 8, 128>}, {pipeline_mode = #tpu.pipeline_mode<synchronous>, transform_indices = @transform_1, window_bounds = array<i64: 2, 128, 512>}, {pipeline_mode = #tpu.pipeline_mode<synchronous>, transform_indices = @transform_2, window_bounds = array<i64: 2, 128, 512>}, {pipeline_mode = #tpu.pipeline_mode<synchronous>, transform_indices = @transform_3, window_bounds = array<i64: 2, 1, 512>}, {pipeline_mode = #tpu.pipeline_mode<synchronous>, transform_indices = @transform_4, window_bounds = array<i64: 128, 128>}, {pipeline_mode = #tpu.pipeline_mode<synchronous>, transform_indices = @transform_5, window_bounds = array<i64: 1, 128>}, {pipeline_mode = #tpu.pipeline_mode<synchronous>, transform_indices = @transform_6, window_bounds = array<i64: 72, 128>}]} {
    %c0 = arith.constant 0 : index
    %c0_0 = arith.constant 0 : index
    %c0_1 = arith.constant 0 : index
    %0 = vector.load %arg1[%c0, %c0_0, %c0_1] : memref<9x8x128xf32, #tpu.memory_space<vmem>>, vector<9x8x128xf32>
    %c0_2 = arith.constant 0 : index
    %c0_3 = arith.constant 0 : index
    %c0_4 = arith.constant 0 : index
    %1 = vector.load %arg8[%c0_2, %c0_3, %c0_4] : memref<9x8x128xf32, #tpu.memory_space<vmem>>, vector<9x8x128xf32>
    tpu.vector_store %arg8[%c0_2, %c0_3, %c0_4], %0 {strides = array<i32>} : memref<9x8x128xf32, #tpu.memory_space<vmem>>, vector<9x8x128xf32>,
    %c0_5 = arith.constant 0 : index
    %c0_6 = arith.constant 0 : index
    %c0_7 = arith.constant 0 : index
    %2 = vector.load %arg3[%c0_5, %c0_6, %c0_7] : memref<2x128x512xf32, #tpu.memory_space<vmem>>, vector<1x128x512xf32>
    %3 = vector.shape_cast %2 : vector<1x128x512xf32> to vector<128x512xf32>
    %c0_8 = arith.constant 0 : index
    %c0_9 = arith.constant 0 : index
    %c0_10 = arith.constant 0 : index
    %4 = vector.load %arg8[%c0_8, %c0_9, %c0_10] : memref<9x8x128xf32, #tpu.memory_space<vmem>>, vector<9x8x128xf32>
    %5 = vector.shape_cast %4 : vector<9x8x128xf32> to vector<72x128xf32>
    %c0_11 = arith.constant 0 : index
    %c0_12 = arith.constant 0 : index
    %c0_13 = arith.constant 0 : index
    %6 = vector.load %arg2[%c0_11, %c0_12, %c0_13] : memref<2x128x512xf32, #tpu.memory_space<vmem>>, vector<1x128x512xf32>
    %7 = vector.shape_cast %6 : vector<1x128x512xf32> to vector<128x512xf32>
    %cst = arith.constant dense<0.000000e+00> : vector<72x512xf32>
    %8 = tpu.matmul %5, %7, %cst {dimension_numbers = #tpu.dot_dimension_numbers<[1], [0], [0], [1], [0, 0, 1, 1], [], []>} : vector<72x128xf32>, vector<128x512xf32>, vector<72x512xf32> -> vector<72x512xf32>
    %c0_14 = arith.constant 0 : index
    %c0_15 = arith.constant 0 : index
    %c0_16 = arith.constant 0 : index
    %9 = vector.load %arg4[%c0_14, %c0_15, %c0_16] : memref<2x1x512xf32, #tpu.memory_space<vmem>>, vector<1x1x512xf32>
    %10 = vector.shape_cast %9 : vector<1x1x512xf32> to vector<1x512xf32>
    %11 = vector.broadcast %10 : vector<1x512xf32> to vector<72x512xf32>
    %12 = arith.addf %8, %11 : vector<72x512xf32>
    %13 = vector.shape_cast %12 : vector<72x512xf32> to vector<9x8x512xf32>
    %c0_17 = arith.constant 0 : index
    %c0_18 = arith.constant 0 : index
    %c0_19 = arith.constant 0 : index
    %14 = vector.load %arg9[%c0_17, %c0_18, %c0_19] : memref<9x8x512xf32, #tpu.memory_space<vmem>>, vector<9x8x512xf32>
    tpu.vector_store %arg9[%c0_17, %c0_18, %c0_19], %13 {strides = array<i32>} : memref<9x8x512xf32, #tpu.memory_space<vmem>>, vector<9x8x512xf32>,
    %cst_20 = arith.constant 0.000000e+00 : f32
    %15 = vector.broadcast %cst_20 : f32 to vector<8x128xf32>
    %cst_21 = arith.constant 0.000000e+00 : f32
    %16 = vector.broadcast %cst_21 : f32 to vector<8x128xf32>
    %c0_i32 = arith.constant 0 : i32
    %17 = arith.index_cast %c0_i32 : i32 to index
    %c0_22 = arith.constant 0 : index
    %c0_23 = arith.constant 0 : index
    %18 = vector.load %arg9[%17, %c0_22, %c0_23] : memref<9x8x512xf32, #tpu.memory_space<vmem>>, vector<1x8x512xf32>
    %19 = vector.shape_cast %18 : vector<1x8x512xf32> to vector<8x512xf32>
    %cst_24 = arith.constant dense<0.000000e+00> : vector<8x512xf32>
    %20 = tpu.matmul %15, %3, %cst_24 {dimension_numbers = #tpu.dot_dimension_numbers<[1], [0], [0], [1], [0, 0, 1, 1], [], []>} : vector<8x128xf32>, vector<128x512xf32>, vector<8x512xf32> -> vector<8x512xf32>
    %21 = arith.addf %19, %20 : vector<8x512xf32>
    %22 = vector.extract_strided_slice %21 {offsets = [0, 0], sizes = [8, 128], strides = [1, 1]} : vector<8x512xf32> to vector<8x128xf32>
    %23 = arith.negf %22 : vector<8x128xf32>
    %24 = math.exp %23 : vector<8x128xf32>
    %cst_25 = arith.constant 1.000000e+00 : f32
    %25 = vector.broadcast %cst_25 : f32 to vector<8x128xf32>
    %26 = arith.addf %25, %24 : vector<8x128xf32>
    %27 = arith.divf %25, %26 : vector<8x128xf32>
    %28 = vector.extract_strided_slice %21 {offsets = [0, 128], sizes = [8, 128], strides = [1, 1]} : vector<8x512xf32> to vector<8x128xf32>
    %29 = arith.negf %28 : vector<8x128xf32>
    %30 = math.exp %29 : vector<8x128xf32>
    %cst_26 = arith.constant 1.000000e+00 : f32
    %31 = vector.broadcast %cst_26 : f32 to vector<8x128xf32>
    %32 = arith.addf %31, %30 : vector<8x128xf32>
    %33 = arith.divf %31, %32 : vector<8x128xf32>
    %34 = vector.extract_strided_slice %21 {offsets = [0, 256], sizes = [8, 128], strides = [1, 1]} : vector<8x512xf32> to vector<8x128xf32>
    %35 = math.tanh %34 : vector<8x128xf32>
    %36 = vector.extract_strided_slice %21 {offsets = [0, 384], sizes = [8, 128], strides = [1, 1]} : vector<8x512xf32> to vector<8x128xf32>
    %37 = arith.negf %36 : vector<8x128xf32>
    %38 = math.exp %37 : vector<8x128xf32>
    %cst_27 = arith.constant 1.000000e+00 : f32
    %39 = vector.broadcast %cst_27 : f32 to vector<8x128xf32>
    %40 = arith.addf %39, %38 : vector<8x128xf32>
    %41 = arith.divf %39, %40 : vector<8x128xf32>
    %42 = arith.mulf %33, %16 : vector<8x128xf32>
    %43 = arith.mulf %27, %35 : vector<8x128xf32>
    %44 = arith.addf %42, %43 : vector<8x128xf32>
    %45 = math.tanh %44 : vector<8x128xf32>
    %46 = arith.mulf %41, %45 : vector<8x128xf32>
    %47 = arith.index_cast %c0_i32 : i32 to index
    %c0_28 = arith.constant 0 : index
    %c0_29 = arith.constant 0 : index
    %48 = vector.load %arg8[%47, %c0_28, %c0_29] : memref<9x8x128xf32, #tpu.memory_space<vmem>>, vector<1x8x128xf32>
    %49 = vector.shape_cast %48 : vector<1x8x128xf32> to vector<8x128xf32>
    %50 = vector.shape_cast %46 : vector<8x128xf32> to vector<1x8x128xf32>
    tpu.vector_store %arg8[%47, %c0_28, %c0_29], %50 {strides = array<i32>} : memref<9x8x128xf32, #tpu.memory_space<vmem>>, vector<1x8x128xf32>,
    %c1_i32 = arith.constant 1 : i32
    %51 = arith.index_cast %c1_i32 : i32 to index
    %c0_30 = arith.constant 0 : index
    %c0_31 = arith.constant 0 : index
    %52 = vector.load %arg9[%51, %c0_30, %c0_31] : memref<9x8x512xf32, #tpu.memory_space<vmem>>, vector<1x8x512xf32>
    %53 = vector.shape_cast %52 : vector<1x8x512xf32> to vector<8x512xf32>
    %cst_32 = arith.constant dense<0.000000e+00> : vector<8x512xf32>
    %54 = tpu.matmul %46, %3, %cst_32 {dimension_numbers = #tpu.dot_dimension_numbers<[1], [0], [0], [1], [0, 0, 1, 1], [], []>} : vector<8x128xf32>, vector<128x512xf32>, vector<8x512xf32> -> vector<8x512xf32>
    %55 = arith.addf %53, %54 : vector<8x512xf32>
    %56 = vector.extract_strided_slice %55 {offsets = [0, 0], sizes = [8, 128], strides = [1, 1]} : vector<8x512xf32> to vector<8x128xf32>
    %57 = arith.negf %56 : vector<8x128xf32>
    %58 = math.exp %57 : vector<8x128xf32>
    %cst_33 = arith.constant 1.000000e+00 : f32
    %59 = vector.broadcast %cst_33 : f32 to vector<8x128xf32>
    %60 = arith.addf %59, %58 : vector<8x128xf32>
    %61 = arith.divf %59, %60 : vector<8x128xf32>
    %62 = vector.extract_strided_slice %55 {offsets = [0, 128], sizes = [8, 128], strides = [1, 1]} : vector<8x512xf32> to vector<8x128xf32>
    %63 = arith.negf %62 : vector<8x128xf32>
    %64 = math.exp %63 : vector<8x128xf32>
    %cst_34 = arith.constant 1.000000e+00 : f32
    %65 = vector.broadcast %cst_34 : f32 to vector<8x128xf32>
    %66 = arith.addf %65, %64 : vector<8x128xf32>
    %67 = arith.divf %65, %66 : vector<8x128xf32>
    %68 = vector.extract_strided_slice %55 {offsets = [0, 256], sizes = [8, 128], strides = [1, 1]} : vector<8x512xf32> to vector<8x128xf32>
    %69 = math.tanh %68 : vector<8x128xf32>
    %70 = vector.extract_strided_slice %55 {offsets = [0, 384], sizes = [8, 128], strides = [1, 1]} : vector<8x512xf32> to vector<8x128xf32>
    %71 = arith.negf %70 : vector<8x128xf32>
    %72 = math.exp %71 : vector<8x128xf32>
    %cst_35 = arith.constant 1.000000e+00 : f32
    %73 = vector.broadcast %cst_35 : f32 to vector<8x128xf32>
    %74 = arith.addf %73, %72 : vector<8x128xf32>
    %75 = arith.divf %73, %74 : vector<8x128xf32>
    %76 = arith.mulf %67, %44 : vector<8x128xf32>
    %77 = arith.mulf %61, %69 : vector<8x128xf32>
    %78 = arith.addf %76, %77 : vector<8x128xf32>
    %79 = math.tanh %78 : vector<8x128xf32>
    %80 = arith.mulf %75, %79 : vector<8x128xf32>
    %81 = arith.index_cast %c1_i32 : i32 to index
    %c0_36 = arith.constant 0 : index
    %c0_37 = arith.constant 0 : index
    %82 = vector.load %arg8[%81, %c0_36, %c0_37] : memref<9x8x128xf32, #tpu.memory_space<vmem>>, vector<1x8x128xf32>
    %83 = vector.shape_cast %82 : vector<1x8x128xf32> to vector<8x128xf32>
    %84 = vector.shape_cast %80 : vector<8x128xf32> to vector<1x8x128xf32>
    tpu.vector_store %arg8[%81, %c0_36, %c0_37], %84 {strides = array<i32>} : memref<9x8x128xf32, #tpu.memory_space<vmem>>, vector<1x8x128xf32>,
    %c2_i32 = arith.constant 2 : i32
    %85 = arith.index_cast %c2_i32 : i32 to index
    %c0_38 = arith.constant 0 : index
    %c0_39 = arith.constant 0 : index
    %86 = vector.load %arg9[%85, %c0_38, %c0_39] : memref<9x8x512xf32, #tpu.memory_space<vmem>>, vector<1x8x512xf32>
    %87 = vector.shape_cast %86 : vector<1x8x512xf32> to vector<8x512xf32>
    %cst_40 = arith.constant dense<0.000000e+00> : vector<8x512xf32>
    %88 = tpu.matmul %80, %3, %cst_40 {dimension_numbers = #tpu.dot_dimension_numbers<[1], [0], [0], [1], [0, 0, 1, 1], [], []>} : vector<8x128xf32>, vector<128x512xf32>, vector<8x512xf32> -> vector<8x512xf32>
    %89 = arith.addf %87, %88 : vector<8x512xf32>
    %90 = vector.extract_strided_slice %89 {offsets = [0, 0], sizes = [8, 128], strides = [1, 1]} : vector<8x512xf32> to vector<8x128xf32>
    %91 = arith.negf %90 : vector<8x128xf32>
    %92 = math.exp %91 : vector<8x128xf32>
    %cst_41 = arith.constant 1.000000e+00 : f32
    %93 = vector.broadcast %cst_41 : f32 to vector<8x128xf32>
    %94 = arith.addf %93, %92 : vector<8x128xf32>
    %95 = arith.divf %93, %94 : vector<8x128xf32>
    %96 = vector.extract_strided_slice %89 {offsets = [0, 128], sizes = [8, 128], strides = [1, 1]} : vector<8x512xf32> to vector<8x128xf32>
    %97 = arith.negf %96 : vector<8x128xf32>
    %98 = math.exp %97 : vector<8x128xf32>
    %cst_42 = arith.constant 1.000000e+00 : f32
    %99 = vector.broadcast %cst_42 : f32 to vector<8x128xf32>
    %100 = arith.addf %99, %98 : vector<8x128xf32>
    %101 = arith.divf %99, %100 : vector<8x128xf32>
    %102 = vector.extract_strided_slice %89 {offsets = [0, 256], sizes = [8, 128], strides = [1, 1]} : vector<8x512xf32> to vector<8x128xf32>
    %103 = math.tanh %102 : vector<8x128xf32>
    %104 = vector.extract_strided_slice %89 {offsets = [0, 384], sizes = [8, 128], strides = [1, 1]} : vector<8x512xf32> to vector<8x128xf32>
    %105 = arith.negf %104 : vector<8x128xf32>
    %106 = math.exp %105 : vector<8x128xf32>
    %cst_43 = arith.constant 1.000000e+00 : f32
    %107 = vector.broadcast %cst_43 : f32 to vector<8x128xf32>
    %108 = arith.addf %107, %106 : vector<8x128xf32>
    %109 = arith.divf %107, %108 : vector<8x128xf32>
    %110 = arith.mulf %101, %78 : vector<8x128xf32>
    %111 = arith.mulf %95, %103 : vector<8x128xf32>
    %112 = arith.addf %110, %111 : vector<8x128xf32>
    %113 = math.tanh %112 : vector<8x128xf32>
    %114 = arith.mulf %109, %113 : vector<8x128xf32>
    %115 = arith.index_cast %c2_i32 : i32 to index
    %c0_44 = arith.constant 0 : index
    %c0_45 = arith.constant 0 : index
    %116 = vector.load %arg8[%115, %c0_44, %c0_45] : memref<9x8x128xf32, #tpu.memory_space<vmem>>, vector<1x8x128xf32>
    %117 = vector.shape_cast %116 : vector<1x8x128xf32> to vector<8x128xf32>
    %118 = vector.shape_cast %114 : vector<8x128xf32> to vector<1x8x128xf32>
    tpu.vector_store %arg8[%115, %c0_44, %c0_45], %118 {strides = array<i32>} : memref<9x8x128xf32, #tpu.memory_space<vmem>>, vector<1x8x128xf32>,
    %c3_i32 = arith.constant 3 : i32
    %119 = arith.index_cast %c3_i32 : i32 to index
    %c0_46 = arith.constant 0 : index
    %c0_47 = arith.constant 0 : index
    %120 = vector.load %arg9[%119, %c0_46, %c0_47] : memref<9x8x512xf32, #tpu.memory_space<vmem>>, vector<1x8x512xf32>
    %121 = vector.shape_cast %120 : vector<1x8x512xf32> to vector<8x512xf32>
    %cst_48 = arith.constant dense<0.000000e+00> : vector<8x512xf32>
    %122 = tpu.matmul %114, %3, %cst_48 {dimension_numbers = #tpu.dot_dimension_numbers<[1], [0], [0], [1], [0, 0, 1, 1], [], []>} : vector<8x128xf32>, vector<128x512xf32>, vector<8x512xf32> -> vector<8x512xf32>
    %123 = arith.addf %121, %122 : vector<8x512xf32>
    %124 = vector.extract_strided_slice %123 {offsets = [0, 0], sizes = [8, 128], strides = [1, 1]} : vector<8x512xf32> to vector<8x128xf32>
    %125 = arith.negf %124 : vector<8x128xf32>
    %126 = math.exp %125 : vector<8x128xf32>
    %cst_49 = arith.constant 1.000000e+00 : f32
    %127 = vector.broadcast %cst_49 : f32 to vector<8x128xf32>
    %128 = arith.addf %127, %126 : vector<8x128xf32>
    %129 = arith.divf %127, %128 : vector<8x128xf32>
    %130 = vector.extract_strided_slice %123 {offsets = [0, 128], sizes = [8, 128], strides = [1, 1]} : vector<8x512xf32> to vector<8x128xf32>
    %131 = arith.negf %130 : vector<8x128xf32>
    %132 = math.exp %131 : vector<8x128xf32>
    %cst_50 = arith.constant 1.000000e+00 : f32
    %133 = vector.broadcast %cst_50 : f32 to vector<8x128xf32>
    %134 = arith.addf %133, %132 : vector<8x128xf32>
    %135 = arith.divf %133, %134 : vector<8x128xf32>
    %136 = vector.extract_strided_slice %123 {offsets = [0, 256], sizes = [8, 128], strides = [1, 1]} : vector<8x512xf32> to vector<8x128xf32>
    %137 = math.tanh %136 : vector<8x128xf32>
    %138 = vector.extract_strided_slice %123 {offsets = [0, 384], sizes = [8, 128], strides = [1, 1]} : vector<8x512xf32> to vector<8x128xf32>
    %139 = arith.negf %138 : vector<8x128xf32>
    %140 = math.exp %139 : vector<8x128xf32>
    %cst_51 = arith.constant 1.000000e+00 : f32
    %141 = vector.broadcast %cst_51 : f32 to vector<8x128xf32>
    %142 = arith.addf %141, %140 : vector<8x128xf32>
    %143 = arith.divf %141, %142 : vector<8x128xf32>
    %144 = arith.mulf %135, %112 : vector<8x128xf32>
    %145 = arith.mulf %129, %137 : vector<8x128xf32>
    %146 = arith.addf %144, %145 : vector<8x128xf32>
    %147 = math.tanh %146 : vector<8x128xf32>
    %148 = arith.mulf %143, %147 : vector<8x128xf32>
    %149 = arith.index_cast %c3_i32 : i32 to index
    %c0_52 = arith.constant 0 : index
    %c0_53 = arith.constant 0 : index
    %150 = vector.load %arg8[%149, %c0_52, %c0_53] : memref<9x8x128xf32, #tpu.memory_space<vmem>>, vector<1x8x128xf32>
    %151 = vector.shape_cast %150 : vector<1x8x128xf32> to vector<8x128xf32>
    %152 = vector.shape_cast %148 : vector<8x128xf32> to vector<1x8x128xf32>
    tpu.vector_store %arg8[%149, %c0_52, %c0_53], %152 {strides = array<i32>} : memref<9x8x128xf32, #tpu.memory_space<vmem>>, vector<1x8x128xf32>,
    %c4_i32 = arith.constant 4 : i32
    %153 = arith.index_cast %c4_i32 : i32 to index
    %c0_54 = arith.constant 0 : index
    %c0_55 = arith.constant 0 : index
    %154 = vector.load %arg9[%153, %c0_54, %c0_55] : memref<9x8x512xf32, #tpu.memory_space<vmem>>, vector<1x8x512xf32>
    %155 = vector.shape_cast %154 : vector<1x8x512xf32> to vector<8x512xf32>
    %cst_56 = arith.constant dense<0.000000e+00> : vector<8x512xf32>
    %156 = tpu.matmul %148, %3, %cst_56 {dimension_numbers = #tpu.dot_dimension_numbers<[1], [0], [0], [1], [0, 0, 1, 1], [], []>} : vector<8x128xf32>, vector<128x512xf32>, vector<8x512xf32> -> vector<8x512xf32>
    %157 = arith.addf %155, %156 : vector<8x512xf32>
    %158 = vector.extract_strided_slice %157 {offsets = [0, 0], sizes = [8, 128], strides = [1, 1]} : vector<8x512xf32> to vector<8x128xf32>
    %159 = arith.negf %158 : vector<8x128xf32>
    %160 = math.exp %159 : vector<8x128xf32>
    %cst_57 = arith.constant 1.000000e+00 : f32
    %161 = vector.broadcast %cst_57 : f32 to vector<8x128xf32>
    %162 = arith.addf %161, %160 : vector<8x128xf32>
    %163 = arith.divf %161, %162 : vector<8x128xf32>
    %164 = vector.extract_strided_slice %157 {offsets = [0, 128], sizes = [8, 128], strides = [1, 1]} : vector<8x512xf32> to vector<8x128xf32>
    %165 = arith.negf %164 : vector<8x128xf32>
    %166 = math.exp %165 : vector<8x128xf32>
    %cst_58 = arith.constant 1.000000e+00 : f32
    %167 = vector.broadcast %cst_58 : f32 to vector<8x128xf32>
    %168 = arith.addf %167, %166 : vector<8x128xf32>
    %169 = arith.divf %167, %168 : vector<8x128xf32>
    %170 = vector.extract_strided_slice %157 {offsets = [0, 256], sizes = [8, 128], strides = [1, 1]} : vector<8x512xf32> to vector<8x128xf32>
    %171 = math.tanh %170 : vector<8x128xf32>
    %172 = vector.extract_strided_slice %157 {offsets = [0, 384], sizes = [8, 128], strides = [1, 1]} : vector<8x512xf32> to vector<8x128xf32>
    %173 = arith.negf %172 : vector<8x128xf32>
    %174 = math.exp %173 : vector<8x128xf32>
    %cst_59 = arith.constant 1.000000e+00 : f32
    %175 = vector.broadcast %cst_59 : f32 to vector<8x128xf32>
    %176 = arith.addf %175, %174 : vector<8x128xf32>
    %177 = arith.divf %175, %176 : vector<8x128xf32>
    %178 = arith.mulf %169, %146 : vector<8x128xf32>
    %179 = arith.mulf %163, %171 : vector<8x128xf32>
    %180 = arith.addf %178, %179 : vector<8x128xf32>
    %181 = math.tanh %180 : vector<8x128xf32>
    %182 = arith.mulf %177, %181 : vector<8x128xf32>
    %183 = arith.index_cast %c4_i32 : i32 to index
    %c0_60 = arith.constant 0 : index
    %c0_61 = arith.constant 0 : index
    %184 = vector.load %arg8[%183, %c0_60, %c0_61] : memref<9x8x128xf32, #tpu.memory_space<vmem>>, vector<1x8x128xf32>
    %185 = vector.shape_cast %184 : vector<1x8x128xf32> to vector<8x128xf32>
    %186 = vector.shape_cast %182 : vector<8x128xf32> to vector<1x8x128xf32>
    tpu.vector_store %arg8[%183, %c0_60, %c0_61], %186 {strides = array<i32>} : memref<9x8x128xf32, #tpu.memory_space<vmem>>, vector<1x8x128xf32>,
    %c5_i32 = arith.constant 5 : i32
    %187 = arith.index_cast %c5_i32 : i32 to index
    %c0_62 = arith.constant 0 : index
    %c0_63 = arith.constant 0 : index
    %188 = vector.load %arg9[%187, %c0_62, %c0_63] : memref<9x8x512xf32, #tpu.memory_space<vmem>>, vector<1x8x512xf32>
    %189 = vector.shape_cast %188 : vector<1x8x512xf32> to vector<8x512xf32>
    %cst_64 = arith.constant dense<0.000000e+00> : vector<8x512xf32>
    %190 = tpu.matmul %182, %3, %cst_64 {dimension_numbers = #tpu.dot_dimension_numbers<[1], [0], [0], [1], [0, 0, 1, 1], [], []>} : vector<8x128xf32>, vector<128x512xf32>, vector<8x512xf32> -> vector<8x512xf32>
    %191 = arith.addf %189, %190 : vector<8x512xf32>
    %192 = vector.extract_strided_slice %191 {offsets = [0, 0], sizes = [8, 128], strides = [1, 1]} : vector<8x512xf32> to vector<8x128xf32>
    %193 = arith.negf %192 : vector<8x128xf32>
    %194 = math.exp %193 : vector<8x128xf32>
    %cst_65 = arith.constant 1.000000e+00 : f32
    %195 = vector.broadcast %cst_65 : f32 to vector<8x128xf32>
    %196 = arith.addf %195, %194 : vector<8x128xf32>
    %197 = arith.divf %195, %196 : vector<8x128xf32>
    %198 = vector.extract_strided_slice %191 {offsets = [0, 128], sizes = [8, 128], strides = [1, 1]} : vector<8x512xf32> to vector<8x128xf32>
    %199 = arith.negf %198 : vector<8x128xf32>
    %200 = math.exp %199 : vector<8x128xf32>
    %cst_66 = arith.constant 1.000000e+00 : f32
    %201 = vector.broadcast %cst_66 : f32 to vector<8x128xf32>
    %202 = arith.addf %201, %200 : vector<8x128xf32>
    %203 = arith.divf %201, %202 : vector<8x128xf32>
    %204 = vector.extract_strided_slice %191 {offsets = [0, 256], sizes = [8, 128], strides = [1, 1]} : vector<8x512xf32> to vector<8x128xf32>
    %205 = math.tanh %204 : vector<8x128xf32>
    %206 = vector.extract_strided_slice %191 {offsets = [0, 384], sizes = [8, 128], strides = [1, 1]} : vector<8x512xf32> to vector<8x128xf32>
    %207 = arith.negf %206 : vector<8x128xf32>
    %208 = math.exp %207 : vector<8x128xf32>
    %cst_67 = arith.constant 1.000000e+00 : f32
    %209 = vector.broadcast %cst_67 : f32 to vector<8x128xf32>
    %210 = arith.addf %209, %208 : vector<8x128xf32>
    %211 = arith.divf %209, %210 : vector<8x128xf32>
    %212 = arith.mulf %203, %180 : vector<8x128xf32>
    %213 = arith.mulf %197, %205 : vector<8x128xf32>
    %214 = arith.addf %212, %213 : vector<8x128xf32>
    %215 = math.tanh %214 : vector<8x128xf32>
    %216 = arith.mulf %211, %215 : vector<8x128xf32>
    %217 = arith.index_cast %c5_i32 : i32 to index
    %c0_68 = arith.constant 0 : index
    %c0_69 = arith.constant 0 : index
    %218 = vector.load %arg8[%217, %c0_68, %c0_69] : memref<9x8x128xf32, #tpu.memory_space<vmem>>, vector<1x8x128xf32>
    %219 = vector.shape_cast %218 : vector<1x8x128xf32> to vector<8x128xf32>
    %220 = vector.shape_cast %216 : vector<8x128xf32> to vector<1x8x128xf32>
    tpu.vector_store %arg8[%217, %c0_68, %c0_69], %220 {strides = array<i32>} : memref<9x8x128xf32, #tpu.memory_space<vmem>>, vector<1x8x128xf32>,
    %c6_i32 = arith.constant 6 : i32
    %221 = arith.index_cast %c6_i32 : i32 to index
    %c0_70 = arith.constant 0 : index
    %c0_71 = arith.constant 0 : index
    %222 = vector.load %arg9[%221, %c0_70, %c0_71] : memref<9x8x512xf32, #tpu.memory_space<vmem>>, vector<1x8x512xf32>
    %223 = vector.shape_cast %222 : vector<1x8x512xf32> to vector<8x512xf32>
    %cst_72 = arith.constant dense<0.000000e+00> : vector<8x512xf32>
    %224 = tpu.matmul %216, %3, %cst_72 {dimension_numbers = #tpu.dot_dimension_numbers<[1], [0], [0], [1], [0, 0, 1, 1], [], []>} : vector<8x128xf32>, vector<128x512xf32>, vector<8x512xf32> -> vector<8x512xf32>
    %225 = arith.addf %223, %224 : vector<8x512xf32>
    %226 = vector.extract_strided_slice %225 {offsets = [0, 0], sizes = [8, 128], strides = [1, 1]} : vector<8x512xf32> to vector<8x128xf32>
    %227 = arith.negf %226 : vector<8x128xf32>
    %228 = math.exp %227 : vector<8x128xf32>
    %cst_73 = arith.constant 1.000000e+00 : f32
    %229 = vector.broadcast %cst_73 : f32 to vector<8x128xf32>
    %230 = arith.addf %229, %228 : vector<8x128xf32>
    %231 = arith.divf %229, %230 : vector<8x128xf32>
    %232 = vector.extract_strided_slice %225 {offsets = [0, 128], sizes = [8, 128], strides = [1, 1]} : vector<8x512xf32> to vector<8x128xf32>
    %233 = arith.negf %232 : vector<8x128xf32>
    %234 = math.exp %233 : vector<8x128xf32>
    %cst_74 = arith.constant 1.000000e+00 : f32
    %235 = vector.broadcast %cst_74 : f32 to vector<8x128xf32>
    %236 = arith.addf %235, %234 : vector<8x128xf32>
    %237 = arith.divf %235, %236 : vector<8x128xf32>
    %238 = vector.extract_strided_slice %225 {offsets = [0, 256], sizes = [8, 128], strides = [1, 1]} : vector<8x512xf32> to vector<8x128xf32>
    %239 = math.tanh %238 : vector<8x128xf32>
    %240 = vector.extract_strided_slice %225 {offsets = [0, 384], sizes = [8, 128], strides = [1, 1]} : vector<8x512xf32> to vector<8x128xf32>
    %241 = arith.negf %240 : vector<8x128xf32>
    %242 = math.exp %241 : vector<8x128xf32>
    %cst_75 = arith.constant 1.000000e+00 : f32
    %243 = vector.broadcast %cst_75 : f32 to vector<8x128xf32>
    %244 = arith.addf %243, %242 : vector<8x128xf32>
    %245 = arith.divf %243, %244 : vector<8x128xf32>
    %246 = arith.mulf %237, %214 : vector<8x128xf32>
    %247 = arith.mulf %231, %239 : vector<8x128xf32>
    %248 = arith.addf %246, %247 : vector<8x128xf32>
    %249 = math.tanh %248 : vector<8x128xf32>
    %250 = arith.mulf %245, %249 : vector<8x128xf32>
    %251 = arith.index_cast %c6_i32 : i32 to index
    %c0_76 = arith.constant 0 : index
    %c0_77 = arith.constant 0 : index
    %252 = vector.load %arg8[%251, %c0_76, %c0_77] : memref<9x8x128xf32, #tpu.memory_space<vmem>>, vector<1x8x128xf32>
    %253 = vector.shape_cast %252 : vector<1x8x128xf32> to vector<8x128xf32>
    %254 = vector.shape_cast %250 : vector<8x128xf32> to vector<1x8x128xf32>
    tpu.vector_store %arg8[%251, %c0_76, %c0_77], %254 {strides = array<i32>} : memref<9x8x128xf32, #tpu.memory_space<vmem>>, vector<1x8x128xf32>,
    %c7_i32 = arith.constant 7 : i32
    %255 = arith.index_cast %c7_i32 : i32 to index
    %c0_78 = arith.constant 0 : index
    %c0_79 = arith.constant 0 : index
    %256 = vector.load %arg9[%255, %c0_78, %c0_79] : memref<9x8x512xf32, #tpu.memory_space<vmem>>, vector<1x8x512xf32>
    %257 = vector.shape_cast %256 : vector<1x8x512xf32> to vector<8x512xf32>
    %cst_80 = arith.constant dense<0.000000e+00> : vector<8x512xf32>
    %258 = tpu.matmul %250, %3, %cst_80 {dimension_numbers = #tpu.dot_dimension_numbers<[1], [0], [0], [1], [0, 0, 1, 1], [], []>} : vector<8x128xf32>, vector<128x512xf32>, vector<8x512xf32> -> vector<8x512xf32>
    %259 = arith.addf %257, %258 : vector<8x512xf32>
    %260 = vector.extract_strided_slice %259 {offsets = [0, 0], sizes = [8, 128], strides = [1, 1]} : vector<8x512xf32> to vector<8x128xf32>
    %261 = arith.negf %260 : vector<8x128xf32>
    %262 = math.exp %261 : vector<8x128xf32>
    %cst_81 = arith.constant 1.000000e+00 : f32
    %263 = vector.broadcast %cst_81 : f32 to vector<8x128xf32>
    %264 = arith.addf %263, %262 : vector<8x128xf32>
    %265 = arith.divf %263, %264 : vector<8x128xf32>
    %266 = vector.extract_strided_slice %259 {offsets = [0, 128], sizes = [8, 128], strides = [1, 1]} : vector<8x512xf32> to vector<8x128xf32>
    %267 = arith.negf %266 : vector<8x128xf32>
    %268 = math.exp %267 : vector<8x128xf32>
    %cst_82 = arith.constant 1.000000e+00 : f32
    %269 = vector.broadcast %cst_82 : f32 to vector<8x128xf32>
    %270 = arith.addf %269, %268 : vector<8x128xf32>
    %271 = arith.divf %269, %270 : vector<8x128xf32>
    %272 = vector.extract_strided_slice %259 {offsets = [0, 256], sizes = [8, 128], strides = [1, 1]} : vector<8x512xf32> to vector<8x128xf32>
    %273 = math.tanh %272 : vector<8x128xf32>
    %274 = vector.extract_strided_slice %259 {offsets = [0, 384], sizes = [8, 128], strides = [1, 1]} : vector<8x512xf32> to vector<8x128xf32>
    %275 = arith.negf %274 : vector<8x128xf32>
    %276 = math.exp %275 : vector<8x128xf32>
    %cst_83 = arith.constant 1.000000e+00 : f32
    %277 = vector.broadcast %cst_83 : f32 to vector<8x128xf32>
    %278 = arith.addf %277, %276 : vector<8x128xf32>
    %279 = arith.divf %277, %278 : vector<8x128xf32>
    %280 = arith.mulf %271, %248 : vector<8x128xf32>
    %281 = arith.mulf %265, %273 : vector<8x128xf32>
    %282 = arith.addf %280, %281 : vector<8x128xf32>
    %283 = math.tanh %282 : vector<8x128xf32>
    %284 = arith.mulf %279, %283 : vector<8x128xf32>
    %285 = arith.index_cast %c7_i32 : i32 to index
    %c0_84 = arith.constant 0 : index
    %c0_85 = arith.constant 0 : index
    %286 = vector.load %arg8[%285, %c0_84, %c0_85] : memref<9x8x128xf32, #tpu.memory_space<vmem>>, vector<1x8x128xf32>
    %287 = vector.shape_cast %286 : vector<1x8x128xf32> to vector<8x128xf32>
    %288 = vector.shape_cast %284 : vector<8x128xf32> to vector<1x8x128xf32>
    tpu.vector_store %arg8[%285, %c0_84, %c0_85], %288 {strides = array<i32>} : memref<9x8x128xf32, #tpu.memory_space<vmem>>, vector<1x8x128xf32>,
    %c8_i32 = arith.constant 8 : i32
    %289 = arith.index_cast %c8_i32 : i32 to index
    %c0_86 = arith.constant 0 : index
    %c0_87 = arith.constant 0 : index
    %290 = vector.load %arg9[%289, %c0_86, %c0_87] : memref<9x8x512xf32, #tpu.memory_space<vmem>>, vector<1x8x512xf32>
    %291 = vector.shape_cast %290 : vector<1x8x512xf32> to vector<8x512xf32>
    %cst_88 = arith.constant dense<0.000000e+00> : vector<8x512xf32>
    %292 = tpu.matmul %284, %3, %cst_88 {dimension_numbers = #tpu.dot_dimension_numbers<[1], [0], [0], [1], [0, 0, 1, 1], [], []>} : vector<8x128xf32>, vector<128x512xf32>, vector<8x512xf32> -> vector<8x512xf32>
    %293 = arith.addf %291, %292 : vector<8x512xf32>
    %294 = vector.extract_strided_slice %293 {offsets = [0, 0], sizes = [8, 128], strides = [1, 1]} : vector<8x512xf32> to vector<8x128xf32>
    %295 = arith.negf %294 : vector<8x128xf32>
    %296 = math.exp %295 : vector<8x128xf32>
    %cst_89 = arith.constant 1.000000e+00 : f32
    %297 = vector.broadcast %cst_89 : f32 to vector<8x128xf32>
    %298 = arith.addf %297, %296 : vector<8x128xf32>
    %299 = arith.divf %297, %298 : vector<8x128xf32>
    %300 = vector.extract_strided_slice %293 {offsets = [0, 128], sizes = [8, 128], strides = [1, 1]} : vector<8x512xf32> to vector<8x128xf32>
    %301 = arith.negf %300 : vector<8x128xf32>
    %302 = math.exp %301 : vector<8x128xf32>
    %cst_90 = arith.constant 1.000000e+00 : f32
    %303 = vector.broadcast %cst_90 : f32 to vector<8x128xf32>
    %304 = arith.addf %303, %302 : vector<8x128xf32>
    %305 = arith.divf %303, %304 : vector<8x128xf32>
    %306 = vector.extract_strided_slice %293 {offsets = [0, 256], sizes = [8, 128], strides = [1, 1]} : vector<8x512xf32> to vector<8x128xf32>
    %307 = math.tanh %306 : vector<8x128xf32>
    %308 = vector.extract_strided_slice %293 {offsets = [0, 384], sizes = [8, 128], strides = [1, 1]} : vector<8x512xf32> to vector<8x128xf32>
    %309 = arith.negf %308 : vector<8x128xf32>
    %310 = math.exp %309 : vector<8x128xf32>
    %cst_91 = arith.constant 1.000000e+00 : f32
    %311 = vector.broadcast %cst_91 : f32 to vector<8x128xf32>
    %312 = arith.addf %311, %310 : vector<8x128xf32>
    %313 = arith.divf %311, %312 : vector<8x128xf32>
    %314 = arith.mulf %305, %282 : vector<8x128xf32>
    %315 = arith.mulf %299, %307 : vector<8x128xf32>
    %316 = arith.addf %314, %315 : vector<8x128xf32>
    %317 = math.tanh %316 : vector<8x128xf32>
    %318 = arith.mulf %313, %317 : vector<8x128xf32>
    %319 = arith.index_cast %c8_i32 : i32 to index
    %c0_92 = arith.constant 0 : index
    %c0_93 = arith.constant 0 : index
    %320 = vector.load %arg8[%319, %c0_92, %c0_93] : memref<9x8x128xf32, #tpu.memory_space<vmem>>, vector<1x8x128xf32>
    %321 = vector.shape_cast %320 : vector<1x8x128xf32> to vector<8x128xf32>
    %322 = vector.shape_cast %318 : vector<8x128xf32> to vector<1x8x128xf32>
    tpu.vector_store %arg8[%319, %c0_92, %c0_93], %322 {strides = array<i32>} : memref<9x8x128xf32, #tpu.memory_space<vmem>>, vector<1x8x128xf32>,
    %c9_i32 = arith.constant 9 : i32
    %c1 = arith.constant 1 : index
    %c0_94 = arith.constant 0 : index
    %c0_95 = arith.constant 0 : index
    %323 = vector.load %arg3[%c1, %c0_94, %c0_95] : memref<2x128x512xf32, #tpu.memory_space<vmem>>, vector<1x128x512xf32>
    %324 = vector.shape_cast %323 : vector<1x128x512xf32> to vector<128x512xf32>
    %c0_96 = arith.constant 0 : index
    %c0_97 = arith.constant 0 : index
    %c0_98 = arith.constant 0 : index
    %325 = vector.load %arg8[%c0_96, %c0_97, %c0_98] : memref<9x8x128xf32, #tpu.memory_space<vmem>>, vector<9x8x128xf32>
    %326 = vector.shape_cast %325 : vector<9x8x128xf32> to vector<72x128xf32>
    %c1_99 = arith.constant 1 : index
    %c0_100 = arith.constant 0 : index
    %c0_101 = arith.constant 0 : index
    %327 = vector.load %arg2[%c1_99, %c0_100, %c0_101] : memref<2x128x512xf32, #tpu.memory_space<vmem>>, vector<1x128x512xf32>
    %328 = vector.shape_cast %327 : vector<1x128x512xf32> to vector<128x512xf32>
    %cst_102 = arith.constant dense<0.000000e+00> : vector<72x512xf32>
    %329 = tpu.matmul %326, %328, %cst_102 {dimension_numbers = #tpu.dot_dimension_numbers<[1], [0], [0], [1], [0, 0, 1, 1], [], []>} : vector<72x128xf32>, vector<128x512xf32>, vector<72x512xf32> -> vector<72x512xf32>
    %c1_103 = arith.constant 1 : index
    %c0_104 = arith.constant 0 : index
    %c0_105 = arith.constant 0 : index
    %330 = vector.load %arg4[%c1_103, %c0_104, %c0_105] : memref<2x1x512xf32, #tpu.memory_space<vmem>>, vector<1x1x512xf32>
    %331 = vector.shape_cast %330 : vector<1x1x512xf32> to vector<1x512xf32>
    %332 = vector.broadcast %331 : vector<1x512xf32> to vector<72x512xf32>
    %333 = arith.addf %329, %332 : vector<72x512xf32>
    %334 = vector.shape_cast %333 : vector<72x512xf32> to vector<9x8x512xf32>
    %c0_106 = arith.constant 0 : index
    %c0_107 = arith.constant 0 : index
    %c0_108 = arith.constant 0 : index
    %335 = vector.load %arg9[%c0_106, %c0_107, %c0_108] : memref<9x8x512xf32, #tpu.memory_space<vmem>>, vector<9x8x512xf32>
    tpu.vector_store %arg9[%c0_106, %c0_107, %c0_108], %334 {strides = array<i32>} : memref<9x8x512xf32, #tpu.memory_space<vmem>>, vector<9x8x512xf32>,
    %cst_109 = arith.constant 0.000000e+00 : f32
    %336 = vector.broadcast %cst_109 : f32 to vector<8x128xf32>
    %cst_110 = arith.constant 0.000000e+00 : f32
    %337 = vector.broadcast %cst_110 : f32 to vector<8x128xf32>
    %c0_i32_111 = arith.constant 0 : i32
    %338 = arith.index_cast %c0_i32_111 : i32 to index
    %c0_112 = arith.constant 0 : index
    %c0_113 = arith.constant 0 : index
    %339 = vector.load %arg9[%338, %c0_112, %c0_113] : memref<9x8x512xf32, #tpu.memory_space<vmem>>, vector<1x8x512xf32>
    %340 = vector.shape_cast %339 : vector<1x8x512xf32> to vector<8x512xf32>
    %cst_114 = arith.constant dense<0.000000e+00> : vector<8x512xf32>
    %341 = tpu.matmul %336, %324, %cst_114 {dimension_numbers = #tpu.dot_dimension_numbers<[1], [0], [0], [1], [0, 0, 1, 1], [], []>} : vector<8x128xf32>, vector<128x512xf32>, vector<8x512xf32> -> vector<8x512xf32>
    %342 = arith.addf %340, %341 : vector<8x512xf32>
    %343 = vector.extract_strided_slice %342 {offsets = [0, 0], sizes = [8, 128], strides = [1, 1]} : vector<8x512xf32> to vector<8x128xf32>
    %344 = arith.negf %343 : vector<8x128xf32>
    %345 = math.exp %344 : vector<8x128xf32>
    %cst_115 = arith.constant 1.000000e+00 : f32
    %346 = vector.broadcast %cst_115 : f32 to vector<8x128xf32>
    %347 = arith.addf %346, %345 : vector<8x128xf32>
    %348 = arith.divf %346, %347 : vector<8x128xf32>
    %349 = vector.extract_strided_slice %342 {offsets = [0, 128], sizes = [8, 128], strides = [1, 1]} : vector<8x512xf32> to vector<8x128xf32>
    %350 = arith.negf %349 : vector<8x128xf32>
    %351 = math.exp %350 : vector<8x128xf32>
    %cst_116 = arith.constant 1.000000e+00 : f32
    %352 = vector.broadcast %cst_116 : f32 to vector<8x128xf32>
    %353 = arith.addf %352, %351 : vector<8x128xf32>
    %354 = arith.divf %352, %353 : vector<8x128xf32>
    %355 = vector.extract_strided_slice %342 {offsets = [0, 256], sizes = [8, 128], strides = [1, 1]} : vector<8x512xf32> to vector<8x128xf32>
    %356 = math.tanh %355 : vector<8x128xf32>
    %357 = vector.extract_strided_slice %342 {offsets = [0, 384], sizes = [8, 128], strides = [1, 1]} : vector<8x512xf32> to vector<8x128xf32>
    %358 = arith.negf %357 : vector<8x128xf32>
    %359 = math.exp %358 : vector<8x128xf32>
    %cst_117 = arith.constant 1.000000e+00 : f32
    %360 = vector.broadcast %cst_117 : f32 to vector<8x128xf32>
    %361 = arith.addf %360, %359 : vector<8x128xf32>
    %362 = arith.divf %360, %361 : vector<8x128xf32>
    %363 = arith.mulf %354, %337 : vector<8x128xf32>
    %364 = arith.mulf %348, %356 : vector<8x128xf32>
    %365 = arith.addf %363, %364 : vector<8x128xf32>
    %366 = math.tanh %365 : vector<8x128xf32>
    %367 = arith.mulf %362, %366 : vector<8x128xf32>
    %368 = arith.index_cast %c0_i32_111 : i32 to index
    %c0_118 = arith.constant 0 : index
    %c0_119 = arith.constant 0 : index
    %369 = vector.load %arg8[%368, %c0_118, %c0_119] : memref<9x8x128xf32, #tpu.memory_space<vmem>>, vector<1x8x128xf32>
    %370 = vector.shape_cast %369 : vector<1x8x128xf32> to vector<8x128xf32>
    %371 = vector.shape_cast %367 : vector<8x128xf32> to vector<1x8x128xf32>
    tpu.vector_store %arg8[%368, %c0_118, %c0_119], %371 {strides = array<i32>} : memref<9x8x128xf32, #tpu.memory_space<vmem>>, vector<1x8x128xf32>,
    %c1_i32_120 = arith.constant 1 : i32
    %372 = arith.index_cast %c1_i32_120 : i32 to index
    %c0_121 = arith.constant 0 : index
    %c0_122 = arith.constant 0 : index
    %373 = vector.load %arg9[%372, %c0_121, %c0_122] : memref<9x8x512xf32, #tpu.memory_space<vmem>>, vector<1x8x512xf32>
    %374 = vector.shape_cast %373 : vector<1x8x512xf32> to vector<8x512xf32>
    %cst_123 = arith.constant dense<0.000000e+00> : vector<8x512xf32>
    %375 = tpu.matmul %367, %324, %cst_123 {dimension_numbers = #tpu.dot_dimension_numbers<[1], [0], [0], [1], [0, 0, 1, 1], [], []>} : vector<8x128xf32>, vector<128x512xf32>, vector<8x512xf32> -> vector<8x512xf32>
    %376 = arith.addf %374, %375 : vector<8x512xf32>
    %377 = vector.extract_strided_slice %376 {offsets = [0, 0], sizes = [8, 128], strides = [1, 1]} : vector<8x512xf32> to vector<8x128xf32>
    %378 = arith.negf %377 : vector<8x128xf32>
    %379 = math.exp %378 : vector<8x128xf32>
    %cst_124 = arith.constant 1.000000e+00 : f32
    %380 = vector.broadcast %cst_124 : f32 to vector<8x128xf32>
    %381 = arith.addf %380, %379 : vector<8x128xf32>
    %382 = arith.divf %380, %381 : vector<8x128xf32>
    %383 = vector.extract_strided_slice %376 {offsets = [0, 128], sizes = [8, 128], strides = [1, 1]} : vector<8x512xf32> to vector<8x128xf32>
    %384 = arith.negf %383 : vector<8x128xf32>
    %385 = math.exp %384 : vector<8x128xf32>
    %cst_125 = arith.constant 1.000000e+00 : f32
    %386 = vector.broadcast %cst_125 : f32 to vector<8x128xf32>
    %387 = arith.addf %386, %385 : vector<8x128xf32>
    %388 = arith.divf %386, %387 : vector<8x128xf32>
    %389 = vector.extract_strided_slice %376 {offsets = [0, 256], sizes = [8, 128], strides = [1, 1]} : vector<8x512xf32> to vector<8x128xf32>
    %390 = math.tanh %389 : vector<8x128xf32>
    %391 = vector.extract_strided_slice %376 {offsets = [0, 384], sizes = [8, 128], strides = [1, 1]} : vector<8x512xf32> to vector<8x128xf32>
    %392 = arith.negf %391 : vector<8x128xf32>
    %393 = math.exp %392 : vector<8x128xf32>
    %cst_126 = arith.constant 1.000000e+00 : f32
    %394 = vector.broadcast %cst_126 : f32 to vector<8x128xf32>
    %395 = arith.addf %394, %393 : vector<8x128xf32>
    %396 = arith.divf %394, %395 : vector<8x128xf32>
    %397 = arith.mulf %388, %365 : vector<8x128xf32>
    %398 = arith.mulf %382, %390 : vector<8x128xf32>
    %399 = arith.addf %397, %398 : vector<8x128xf32>
    %400 = math.tanh %399 : vector<8x128xf32>
    %401 = arith.mulf %396, %400 : vector<8x128xf32>
    %402 = arith.index_cast %c1_i32_120 : i32 to index
    %c0_127 = arith.constant 0 : index
    %c0_128 = arith.constant 0 : index
    %403 = vector.load %arg8[%402, %c0_127, %c0_128] : memref<9x8x128xf32, #tpu.memory_space<vmem>>, vector<1x8x128xf32>
    %404 = vector.shape_cast %403 : vector<1x8x128xf32> to vector<8x128xf32>
    %405 = vector.shape_cast %401 : vector<8x128xf32> to vector<1x8x128xf32>
    tpu.vector_store %arg8[%402, %c0_127, %c0_128], %405 {strides = array<i32>} : memref<9x8x128xf32, #tpu.memory_space<vmem>>, vector<1x8x128xf32>,
    %c2_i32_129 = arith.constant 2 : i32
    %406 = arith.index_cast %c2_i32_129 : i32 to index
    %c0_130 = arith.constant 0 : index
    %c0_131 = arith.constant 0 : index
    %407 = vector.load %arg9[%406, %c0_130, %c0_131] : memref<9x8x512xf32, #tpu.memory_space<vmem>>, vector<1x8x512xf32>
    %408 = vector.shape_cast %407 : vector<1x8x512xf32> to vector<8x512xf32>
    %cst_132 = arith.constant dense<0.000000e+00> : vector<8x512xf32>
    %409 = tpu.matmul %401, %324, %cst_132 {dimension_numbers = #tpu.dot_dimension_numbers<[1], [0], [0], [1], [0, 0, 1, 1], [], []>} : vector<8x128xf32>, vector<128x512xf32>, vector<8x512xf32> -> vector<8x512xf32>
    %410 = arith.addf %408, %409 : vector<8x512xf32>
    %411 = vector.extract_strided_slice %410 {offsets = [0, 0], sizes = [8, 128], strides = [1, 1]} : vector<8x512xf32> to vector<8x128xf32>
    %412 = arith.negf %411 : vector<8x128xf32>
    %413 = math.exp %412 : vector<8x128xf32>
    %cst_133 = arith.constant 1.000000e+00 : f32
    %414 = vector.broadcast %cst_133 : f32 to vector<8x128xf32>
    %415 = arith.addf %414, %413 : vector<8x128xf32>
    %416 = arith.divf %414, %415 : vector<8x128xf32>
    %417 = vector.extract_strided_slice %410 {offsets = [0, 128], sizes = [8, 128], strides = [1, 1]} : vector<8x512xf32> to vector<8x128xf32>
    %418 = arith.negf %417 : vector<8x128xf32>
    %419 = math.exp %418 : vector<8x128xf32>
    %cst_134 = arith.constant 1.000000e+00 : f32
    %420 = vector.broadcast %cst_134 : f32 to vector<8x128xf32>
    %421 = arith.addf %420, %419 : vector<8x128xf32>
    %422 = arith.divf %420, %421 : vector<8x128xf32>
    %423 = vector.extract_strided_slice %410 {offsets = [0, 256], sizes = [8, 128], strides = [1, 1]} : vector<8x512xf32> to vector<8x128xf32>
    %424 = math.tanh %423 : vector<8x128xf32>
    %425 = vector.extract_strided_slice %410 {offsets = [0, 384], sizes = [8, 128], strides = [1, 1]} : vector<8x512xf32> to vector<8x128xf32>
    %426 = arith.negf %425 : vector<8x128xf32>
    %427 = math.exp %426 : vector<8x128xf32>
    %cst_135 = arith.constant 1.000000e+00 : f32
    %428 = vector.broadcast %cst_135 : f32 to vector<8x128xf32>
    %429 = arith.addf %428, %427 : vector<8x128xf32>
    %430 = arith.divf %428, %429 : vector<8x128xf32>
    %431 = arith.mulf %422, %399 : vector<8x128xf32>
    %432 = arith.mulf %416, %424 : vector<8x128xf32>
    %433 = arith.addf %431, %432 : vector<8x128xf32>
    %434 = math.tanh %433 : vector<8x128xf32>
    %435 = arith.mulf %430, %434 : vector<8x128xf32>
    %436 = arith.index_cast %c2_i32_129 : i32 to index
    %c0_136 = arith.constant 0 : index
    %c0_137 = arith.constant 0 : index
    %437 = vector.load %arg8[%436, %c0_136, %c0_137] : memref<9x8x128xf32, #tpu.memory_space<vmem>>, vector<1x8x128xf32>
    %438 = vector.shape_cast %437 : vector<1x8x128xf32> to vector<8x128xf32>
    %439 = vector.shape_cast %435 : vector<8x128xf32> to vector<1x8x128xf32>
    tpu.vector_store %arg8[%436, %c0_136, %c0_137], %439 {strides = array<i32>} : memref<9x8x128xf32, #tpu.memory_space<vmem>>, vector<1x8x128xf32>,
    %c3_i32_138 = arith.constant 3 : i32
    %440 = arith.index_cast %c3_i32_138 : i32 to index
    %c0_139 = arith.constant 0 : index
    %c0_140 = arith.constant 0 : index
    %441 = vector.load %arg9[%440, %c0_139, %c0_140] : memref<9x8x512xf32, #tpu.memory_space<vmem>>, vector<1x8x512xf32>
    %442 = vector.shape_cast %441 : vector<1x8x512xf32> to vector<8x512xf32>
    %cst_141 = arith.constant dense<0.000000e+00> : vector<8x512xf32>
    %443 = tpu.matmul %435, %324, %cst_141 {dimension_numbers = #tpu.dot_dimension_numbers<[1], [0], [0], [1], [0, 0, 1, 1], [], []>} : vector<8x128xf32>, vector<128x512xf32>, vector<8x512xf32> -> vector<8x512xf32>
    %444 = arith.addf %442, %443 : vector<8x512xf32>
    %445 = vector.extract_strided_slice %444 {offsets = [0, 0], sizes = [8, 128], strides = [1, 1]} : vector<8x512xf32> to vector<8x128xf32>
    %446 = arith.negf %445 : vector<8x128xf32>
    %447 = math.exp %446 : vector<8x128xf32>
    %cst_142 = arith.constant 1.000000e+00 : f32
    %448 = vector.broadcast %cst_142 : f32 to vector<8x128xf32>
    %449 = arith.addf %448, %447 : vector<8x128xf32>
    %450 = arith.divf %448, %449 : vector<8x128xf32>
    %451 = vector.extract_strided_slice %444 {offsets = [0, 128], sizes = [8, 128], strides = [1, 1]} : vector<8x512xf32> to vector<8x128xf32>
    %452 = arith.negf %451 : vector<8x128xf32>
    %453 = math.exp %452 : vector<8x128xf32>
    %cst_143 = arith.constant 1.000000e+00 : f32
    %454 = vector.broadcast %cst_143 : f32 to vector<8x128xf32>
    %455 = arith.addf %454, %453 : vector<8x128xf32>
    %456 = arith.divf %454, %455 : vector<8x128xf32>
    %457 = vector.extract_strided_slice %444 {offsets = [0, 256], sizes = [8, 128], strides = [1, 1]} : vector<8x512xf32> to vector<8x128xf32>
    %458 = math.tanh %457 : vector<8x128xf32>
    %459 = vector.extract_strided_slice %444 {offsets = [0, 384], sizes = [8, 128], strides = [1, 1]} : vector<8x512xf32> to vector<8x128xf32>
    %460 = arith.negf %459 : vector<8x128xf32>
    %461 = math.exp %460 : vector<8x128xf32>
    %cst_144 = arith.constant 1.000000e+00 : f32
    %462 = vector.broadcast %cst_144 : f32 to vector<8x128xf32>
    %463 = arith.addf %462, %461 : vector<8x128xf32>
    %464 = arith.divf %462, %463 : vector<8x128xf32>
    %465 = arith.mulf %456, %433 : vector<8x128xf32>
    %466 = arith.mulf %450, %458 : vector<8x128xf32>
    %467 = arith.addf %465, %466 : vector<8x128xf32>
    %468 = math.tanh %467 : vector<8x128xf32>
    %469 = arith.mulf %464, %468 : vector<8x128xf32>
    %470 = arith.index_cast %c3_i32_138 : i32 to index
    %c0_145 = arith.constant 0 : index
    %c0_146 = arith.constant 0 : index
    %471 = vector.load %arg8[%470, %c0_145, %c0_146] : memref<9x8x128xf32, #tpu.memory_space<vmem>>, vector<1x8x128xf32>
    %472 = vector.shape_cast %471 : vector<1x8x128xf32> to vector<8x128xf32>
    %473 = vector.shape_cast %469 : vector<8x128xf32> to vector<1x8x128xf32>
    tpu.vector_store %arg8[%470, %c0_145, %c0_146], %473 {strides = array<i32>} : memref<9x8x128xf32, #tpu.memory_space<vmem>>, vector<1x8x128xf32>,
    %c4_i32_147 = arith.constant 4 : i32
    %474 = arith.index_cast %c4_i32_147 : i32 to index
    %c0_148 = arith.constant 0 : index
    %c0_149 = arith.constant 0 : index
    %475 = vector.load %arg9[%474, %c0_148, %c0_149] : memref<9x8x512xf32, #tpu.memory_space<vmem>>, vector<1x8x512xf32>
    %476 = vector.shape_cast %475 : vector<1x8x512xf32> to vector<8x512xf32>
    %cst_150 = arith.constant dense<0.000000e+00> : vector<8x512xf32>
    %477 = tpu.matmul %469, %324, %cst_150 {dimension_numbers = #tpu.dot_dimension_numbers<[1], [0], [0], [1], [0, 0, 1, 1], [], []>} : vector<8x128xf32>, vector<128x512xf32>, vector<8x512xf32> -> vector<8x512xf32>
    %478 = arith.addf %476, %477 : vector<8x512xf32>
    %479 = vector.extract_strided_slice %478 {offsets = [0, 0], sizes = [8, 128], strides = [1, 1]} : vector<8x512xf32> to vector<8x128xf32>
    %480 = arith.negf %479 : vector<8x128xf32>
    %481 = math.exp %480 : vector<8x128xf32>
    %cst_151 = arith.constant 1.000000e+00 : f32
    %482 = vector.broadcast %cst_151 : f32 to vector<8x128xf32>
    %483 = arith.addf %482, %481 : vector<8x128xf32>
    %484 = arith.divf %482, %483 : vector<8x128xf32>
    %485 = vector.extract_strided_slice %478 {offsets = [0, 128], sizes = [8, 128], strides = [1, 1]} : vector<8x512xf32> to vector<8x128xf32>
    %486 = arith.negf %485 : vector<8x128xf32>
    %487 = math.exp %486 : vector<8x128xf32>
    %cst_152 = arith.constant 1.000000e+00 : f32
    %488 = vector.broadcast %cst_152 : f32 to vector<8x128xf32>
    %489 = arith.addf %488, %487 : vector<8x128xf32>
    %490 = arith.divf %488, %489 : vector<8x128xf32>
    %491 = vector.extract_strided_slice %478 {offsets = [0, 256], sizes = [8, 128], strides = [1, 1]} : vector<8x512xf32> to vector<8x128xf32>
    %492 = math.tanh %491 : vector<8x128xf32>
    %493 = vector.extract_strided_slice %478 {offsets = [0, 384], sizes = [8, 128], strides = [1, 1]} : vector<8x512xf32> to vector<8x128xf32>
    %494 = arith.negf %493 : vector<8x128xf32>
    %495 = math.exp %494 : vector<8x128xf32>
    %cst_153 = arith.constant 1.000000e+00 : f32
    %496 = vector.broadcast %cst_153 : f32 to vector<8x128xf32>
    %497 = arith.addf %496, %495 : vector<8x128xf32>
    %498 = arith.divf %496, %497 : vector<8x128xf32>
    %499 = arith.mulf %490, %467 : vector<8x128xf32>
    %500 = arith.mulf %484, %492 : vector<8x128xf32>
    %501 = arith.addf %499, %500 : vector<8x128xf32>
    %502 = math.tanh %501 : vector<8x128xf32>
    %503 = arith.mulf %498, %502 : vector<8x128xf32>
    %504 = arith.index_cast %c4_i32_147 : i32 to index
    %c0_154 = arith.constant 0 : index
    %c0_155 = arith.constant 0 : index
    %505 = vector.load %arg8[%504, %c0_154, %c0_155] : memref<9x8x128xf32, #tpu.memory_space<vmem>>, vector<1x8x128xf32>
    %506 = vector.shape_cast %505 : vector<1x8x128xf32> to vector<8x128xf32>
    %507 = vector.shape_cast %503 : vector<8x128xf32> to vector<1x8x128xf32>
    tpu.vector_store %arg8[%504, %c0_154, %c0_155], %507 {strides = array<i32>} : memref<9x8x128xf32, #tpu.memory_space<vmem>>, vector<1x8x128xf32>,
    %c5_i32_156 = arith.constant 5 : i32
    %508 = arith.index_cast %c5_i32_156 : i32 to index
    %c0_157 = arith.constant 0 : index
    %c0_158 = arith.constant 0 : index
    %509 = vector.load %arg9[%508, %c0_157, %c0_158] : memref<9x8x512xf32, #tpu.memory_space<vmem>>, vector<1x8x512xf32>
    %510 = vector.shape_cast %509 : vector<1x8x512xf32> to vector<8x512xf32>
    %cst_159 = arith.constant dense<0.000000e+00> : vector<8x512xf32>
    %511 = tpu.matmul %503, %324, %cst_159 {dimension_numbers = #tpu.dot_dimension_numbers<[1], [0], [0], [1], [0, 0, 1, 1], [], []>} : vector<8x128xf32>, vector<128x512xf32>, vector<8x512xf32> -> vector<8x512xf32>
    %512 = arith.addf %510, %511 : vector<8x512xf32>
    %513 = vector.extract_strided_slice %512 {offsets = [0, 0], sizes = [8, 128], strides = [1, 1]} : vector<8x512xf32> to vector<8x128xf32>
    %514 = arith.negf %513 : vector<8x128xf32>
    %515 = math.exp %514 : vector<8x128xf32>
    %cst_160 = arith.constant 1.000000e+00 : f32
    %516 = vector.broadcast %cst_160 : f32 to vector<8x128xf32>
    %517 = arith.addf %516, %515 : vector<8x128xf32>
    %518 = arith.divf %516, %517 : vector<8x128xf32>
    %519 = vector.extract_strided_slice %512 {offsets = [0, 128], sizes = [8, 128], strides = [1, 1]} : vector<8x512xf32> to vector<8x128xf32>
    %520 = arith.negf %519 : vector<8x128xf32>
    %521 = math.exp %520 : vector<8x128xf32>
    %cst_161 = arith.constant 1.000000e+00 : f32
    %522 = vector.broadcast %cst_161 : f32 to vector<8x128xf32>
    %523 = arith.addf %522, %521 : vector<8x128xf32>
    %524 = arith.divf %522, %523 : vector<8x128xf32>
    %525 = vector.extract_strided_slice %512 {offsets = [0, 256], sizes = [8, 128], strides = [1, 1]} : vector<8x512xf32> to vector<8x128xf32>
    %526 = math.tanh %525 : vector<8x128xf32>
    %527 = vector.extract_strided_slice %512 {offsets = [0, 384], sizes = [8, 128], strides = [1, 1]} : vector<8x512xf32> to vector<8x128xf32>
    %528 = arith.negf %527 : vector<8x128xf32>
    %529 = math.exp %528 : vector<8x128xf32>
    %cst_162 = arith.constant 1.000000e+00 : f32
    %530 = vector.broadcast %cst_162 : f32 to vector<8x128xf32>
    %531 = arith.addf %530, %529 : vector<8x128xf32>
    %532 = arith.divf %530, %531 : vector<8x128xf32>
    %533 = arith.mulf %524, %501 : vector<8x128xf32>
    %534 = arith.mulf %518, %526 : vector<8x128xf32>
    %535 = arith.addf %533, %534 : vector<8x128xf32>
    %536 = math.tanh %535 : vector<8x128xf32>
    %537 = arith.mulf %532, %536 : vector<8x128xf32>
    %538 = arith.index_cast %c5_i32_156 : i32 to index
    %c0_163 = arith.constant 0 : index
    %c0_164 = arith.constant 0 : index
    %539 = vector.load %arg8[%538, %c0_163, %c0_164] : memref<9x8x128xf32, #tpu.memory_space<vmem>>, vector<1x8x128xf32>
    %540 = vector.shape_cast %539 : vector<1x8x128xf32> to vector<8x128xf32>
    %541 = vector.shape_cast %537 : vector<8x128xf32> to vector<1x8x128xf32>
    tpu.vector_store %arg8[%538, %c0_163, %c0_164], %541 {strides = array<i32>} : memref<9x8x128xf32, #tpu.memory_space<vmem>>, vector<1x8x128xf32>,
    %c6_i32_165 = arith.constant 6 : i32
    %542 = arith.index_cast %c6_i32_165 : i32 to index
    %c0_166 = arith.constant 0 : index
    %c0_167 = arith.constant 0 : index
    %543 = vector.load %arg9[%542, %c0_166, %c0_167] : memref<9x8x512xf32, #tpu.memory_space<vmem>>, vector<1x8x512xf32>
    %544 = vector.shape_cast %543 : vector<1x8x512xf32> to vector<8x512xf32>
    %cst_168 = arith.constant dense<0.000000e+00> : vector<8x512xf32>
    %545 = tpu.matmul %537, %324, %cst_168 {dimension_numbers = #tpu.dot_dimension_numbers<[1], [0], [0], [1], [0, 0, 1, 1], [], []>} : vector<8x128xf32>, vector<128x512xf32>, vector<8x512xf32> -> vector<8x512xf32>
    %546 = arith.addf %544, %545 : vector<8x512xf32>
    %547 = vector.extract_strided_slice %546 {offsets = [0, 0], sizes = [8, 128], strides = [1, 1]} : vector<8x512xf32> to vector<8x128xf32>
    %548 = arith.negf %547 : vector<8x128xf32>
    %549 = math.exp %548 : vector<8x128xf32>
    %cst_169 = arith.constant 1.000000e+00 : f32
    %550 = vector.broadcast %cst_169 : f32 to vector<8x128xf32>
    %551 = arith.addf %550, %549 : vector<8x128xf32>
    %552 = arith.divf %550, %551 : vector<8x128xf32>
    %553 = vector.extract_strided_slice %546 {offsets = [0, 128], sizes = [8, 128], strides = [1, 1]} : vector<8x512xf32> to vector<8x128xf32>
    %554 = arith.negf %553 : vector<8x128xf32>
    %555 = math.exp %554 : vector<8x128xf32>
    %cst_170 = arith.constant 1.000000e+00 : f32
    %556 = vector.broadcast %cst_170 : f32 to vector<8x128xf32>
    %557 = arith.addf %556, %555 : vector<8x128xf32>
    %558 = arith.divf %556, %557 : vector<8x128xf32>
    %559 = vector.extract_strided_slice %546 {offsets = [0, 256], sizes = [8, 128], strides = [1, 1]} : vector<8x512xf32> to vector<8x128xf32>
    %560 = math.tanh %559 : vector<8x128xf32>
    %561 = vector.extract_strided_slice %546 {offsets = [0, 384], sizes = [8, 128], strides = [1, 1]} : vector<8x512xf32> to vector<8x128xf32>
    %562 = arith.negf %561 : vector<8x128xf32>
    %563 = math.exp %562 : vector<8x128xf32>
    %cst_171 = arith.constant 1.000000e+00 : f32
    %564 = vector.broadcast %cst_171 : f32 to vector<8x128xf32>
    %565 = arith.addf %564, %563 : vector<8x128xf32>
    %566 = arith.divf %564, %565 : vector<8x128xf32>
    %567 = arith.mulf %558, %535 : vector<8x128xf32>
    %568 = arith.mulf %552, %560 : vector<8x128xf32>
    %569 = arith.addf %567, %568 : vector<8x128xf32>
    %570 = math.tanh %569 : vector<8x128xf32>
    %571 = arith.mulf %566, %570 : vector<8x128xf32>
    %572 = arith.index_cast %c6_i32_165 : i32 to index
    %c0_172 = arith.constant 0 : index
    %c0_173 = arith.constant 0 : index
    %573 = vector.load %arg8[%572, %c0_172, %c0_173] : memref<9x8x128xf32, #tpu.memory_space<vmem>>, vector<1x8x128xf32>
    %574 = vector.shape_cast %573 : vector<1x8x128xf32> to vector<8x128xf32>
    %575 = vector.shape_cast %571 : vector<8x128xf32> to vector<1x8x128xf32>
    tpu.vector_store %arg8[%572, %c0_172, %c0_173], %575 {strides = array<i32>} : memref<9x8x128xf32, #tpu.memory_space<vmem>>, vector<1x8x128xf32>,
    %c7_i32_174 = arith.constant 7 : i32
    %576 = arith.index_cast %c7_i32_174 : i32 to index
    %c0_175 = arith.constant 0 : index
    %c0_176 = arith.constant 0 : index
    %577 = vector.load %arg9[%576, %c0_175, %c0_176] : memref<9x8x512xf32, #tpu.memory_space<vmem>>, vector<1x8x512xf32>
    %578 = vector.shape_cast %577 : vector<1x8x512xf32> to vector<8x512xf32>
    %cst_177 = arith.constant dense<0.000000e+00> : vector<8x512xf32>
    %579 = tpu.matmul %571, %324, %cst_177 {dimension_numbers = #tpu.dot_dimension_numbers<[1], [0], [0], [1], [0, 0, 1, 1], [], []>} : vector<8x128xf32>, vector<128x512xf32>, vector<8x512xf32> -> vector<8x512xf32>
    %580 = arith.addf %578, %579 : vector<8x512xf32>
    %581 = vector.extract_strided_slice %580 {offsets = [0, 0], sizes = [8, 128], strides = [1, 1]} : vector<8x512xf32> to vector<8x128xf32>
    %582 = arith.negf %581 : vector<8x128xf32>
    %583 = math.exp %582 : vector<8x128xf32>
    %cst_178 = arith.constant 1.000000e+00 : f32
    %584 = vector.broadcast %cst_178 : f32 to vector<8x128xf32>
    %585 = arith.addf %584, %583 : vector<8x128xf32>
    %586 = arith.divf %584, %585 : vector<8x128xf32>
    %587 = vector.extract_strided_slice %580 {offsets = [0, 128], sizes = [8, 128], strides = [1, 1]} : vector<8x512xf32> to vector<8x128xf32>
    %588 = arith.negf %587 : vector<8x128xf32>
    %589 = math.exp %588 : vector<8x128xf32>
    %cst_179 = arith.constant 1.000000e+00 : f32
    %590 = vector.broadcast %cst_179 : f32 to vector<8x128xf32>
    %591 = arith.addf %590, %589 : vector<8x128xf32>
    %592 = arith.divf %590, %591 : vector<8x128xf32>
    %593 = vector.extract_strided_slice %580 {offsets = [0, 256], sizes = [8, 128], strides = [1, 1]} : vector<8x512xf32> to vector<8x128xf32>
    %594 = math.tanh %593 : vector<8x128xf32>
    %595 = vector.extract_strided_slice %580 {offsets = [0, 384], sizes = [8, 128], strides = [1, 1]} : vector<8x512xf32> to vector<8x128xf32>
    %596 = arith.negf %595 : vector<8x128xf32>
    %597 = math.exp %596 : vector<8x128xf32>
    %cst_180 = arith.constant 1.000000e+00 : f32
    %598 = vector.broadcast %cst_180 : f32 to vector<8x128xf32>
    %599 = arith.addf %598, %597 : vector<8x128xf32>
    %600 = arith.divf %598, %599 : vector<8x128xf32>
    %601 = arith.mulf %592, %569 : vector<8x128xf32>
    %602 = arith.mulf %586, %594 : vector<8x128xf32>
    %603 = arith.addf %601, %602 : vector<8x128xf32>
    %604 = math.tanh %603 : vector<8x128xf32>
    %605 = arith.mulf %600, %604 : vector<8x128xf32>
    %606 = arith.index_cast %c7_i32_174 : i32 to index
    %c0_181 = arith.constant 0 : index
    %c0_182 = arith.constant 0 : index
    %607 = vector.load %arg8[%606, %c0_181, %c0_182] : memref<9x8x128xf32, #tpu.memory_space<vmem>>, vector<1x8x128xf32>
    %608 = vector.shape_cast %607 : vector<1x8x128xf32> to vector<8x128xf32>
    %609 = vector.shape_cast %605 : vector<8x128xf32> to vector<1x8x128xf32>
    tpu.vector_store %arg8[%606, %c0_181, %c0_182], %609 {strides = array<i32>} : memref<9x8x128xf32, #tpu.memory_space<vmem>>, vector<1x8x128xf32>,
    %c8_i32_183 = arith.constant 8 : i32
    %610 = arith.index_cast %c8_i32_183 : i32 to index
    %c0_184 = arith.constant 0 : index
    %c0_185 = arith.constant 0 : index
    %611 = vector.load %arg9[%610, %c0_184, %c0_185] : memref<9x8x512xf32, #tpu.memory_space<vmem>>, vector<1x8x512xf32>
    %612 = vector.shape_cast %611 : vector<1x8x512xf32> to vector<8x512xf32>
    %cst_186 = arith.constant dense<0.000000e+00> : vector<8x512xf32>
    %613 = tpu.matmul %605, %324, %cst_186 {dimension_numbers = #tpu.dot_dimension_numbers<[1], [0], [0], [1], [0, 0, 1, 1], [], []>} : vector<8x128xf32>, vector<128x512xf32>, vector<8x512xf32> -> vector<8x512xf32>
    %614 = arith.addf %612, %613 : vector<8x512xf32>
    %615 = vector.extract_strided_slice %614 {offsets = [0, 0], sizes = [8, 128], strides = [1, 1]} : vector<8x512xf32> to vector<8x128xf32>
    %616 = arith.negf %615 : vector<8x128xf32>
    %617 = math.exp %616 : vector<8x128xf32>
    %cst_187 = arith.constant 1.000000e+00 : f32
    %618 = vector.broadcast %cst_187 : f32 to vector<8x128xf32>
    %619 = arith.addf %618, %617 : vector<8x128xf32>
    %620 = arith.divf %618, %619 : vector<8x128xf32>
    %621 = vector.extract_strided_slice %614 {offsets = [0, 128], sizes = [8, 128], strides = [1, 1]} : vector<8x512xf32> to vector<8x128xf32>
    %622 = arith.negf %621 : vector<8x128xf32>
    %623 = math.exp %622 : vector<8x128xf32>
    %cst_188 = arith.constant 1.000000e+00 : f32
    %624 = vector.broadcast %cst_188 : f32 to vector<8x128xf32>
    %625 = arith.addf %624, %623 : vector<8x128xf32>
    %626 = arith.divf %624, %625 : vector<8x128xf32>
    %627 = vector.extract_strided_slice %614 {offsets = [0, 256], sizes = [8, 128], strides = [1, 1]} : vector<8x512xf32> to vector<8x128xf32>
    %628 = math.tanh %627 : vector<8x128xf32>
    %629 = vector.extract_strided_slice %614 {offsets = [0, 384], sizes = [8, 128], strides = [1, 1]} : vector<8x512xf32> to vector<8x128xf32>
    %630 = arith.negf %629 : vector<8x128xf32>
    %631 = math.exp %630 : vector<8x128xf32>
    %cst_189 = arith.constant 1.000000e+00 : f32
    %632 = vector.broadcast %cst_189 : f32 to vector<8x128xf32>
    %633 = arith.addf %632, %631 : vector<8x128xf32>
    %634 = arith.divf %632, %633 : vector<8x128xf32>
    %635 = arith.mulf %626, %603 : vector<8x128xf32>
    %636 = arith.mulf %620, %628 : vector<8x128xf32>
    %637 = arith.addf %635, %636 : vector<8x128xf32>
    %638 = math.tanh %637 : vector<8x128xf32>
    %639 = arith.mulf %634, %638 : vector<8x128xf32>
    %640 = arith.index_cast %c8_i32_183 : i32 to index
    %c0_190 = arith.constant 0 : index
    %c0_191 = arith.constant 0 : index
    %641 = vector.load %arg8[%640, %c0_190, %c0_191] : memref<9x8x128xf32, #tpu.memory_space<vmem>>, vector<1x8x128xf32>
    %642 = vector.shape_cast %641 : vector<1x8x128xf32> to vector<8x128xf32>
    %643 = vector.shape_cast %639 : vector<8x128xf32> to vector<1x8x128xf32>
    tpu.vector_store %arg8[%640, %c0_190, %c0_191], %643 {strides = array<i32>} : memref<9x8x128xf32, #tpu.memory_space<vmem>>, vector<1x8x128xf32>,
    %c9_i32_192 = arith.constant 9 : i32
    %c0_193 = arith.constant 0 : index
    %c0_194 = arith.constant 0 : index
    %c0_195 = arith.constant 0 : index
    %644 = vector.load %arg8[%c0_193, %c0_194, %c0_195] : memref<9x8x128xf32, #tpu.memory_space<vmem>>, vector<9x8x128xf32>
    %645 = vector.shape_cast %644 : vector<9x8x128xf32> to vector<72x128xf32>
    %c0_196 = arith.constant 0 : index
    %c0_197 = arith.constant 0 : index
    %646 = vector.load %arg5[%c0_196, %c0_197] : memref<128x128xf32, #tpu.memory_space<vmem>>, vector<128x128xf32>
    %cst_198 = arith.constant dense<0.000000e+00> : vector<72x128xf32>
    %647 = tpu.matmul %645, %646, %cst_198 {dimension_numbers = #tpu.dot_dimension_numbers<[1], [0], [0], [1], [0, 0, 1, 1], [], []>} : vector<72x128xf32>, vector<128x128xf32>, vector<72x128xf32> -> vector<72x128xf32>
    %c0_199 = arith.constant 0 : index
    %c0_200 = arith.constant 0 : index
    %648 = vector.load %arg6[%c0_199, %c0_200] : memref<1x128xf32, #tpu.memory_space<vmem>>, vector<1x128xf32>
    %649 = vector.broadcast %648 : vector<1x128xf32> to vector<72x128xf32>
    %650 = arith.addf %647, %649 : vector<72x128xf32>
    %c0_201 = arith.constant 0 : index
    %c0_202 = arith.constant 0 : index
    %651 = vector.load %arg7[%c0_201, %c0_202] : memref<72x128xf32, #tpu.memory_space<vmem>>, vector<72x128xf32>
    tpu.vector_store %arg7[%c0_201, %c0_202], %650 {strides = array<i32>} : memref<72x128xf32, #tpu.memory_space<vmem>>, vector<72x128xf32>,
    return
  }
  func.func @transform_0(%arg0: i32) -> (i32, i32, i32) {
    %c0_i32 = arith.constant 0 : i32
    %c0_i32_0 = arith.constant 0 : i32
    %c0_i32_1 = arith.constant 0 : i32
    %c0_i32_2 = arith.constant 0 : i32
    return %c0_i32, %c0_i32_0, %c0_i32_1 : i32, i32, i32
  }
  func.func @transform_1(%arg0: i32) -> (i32, i32, i32) {
    %c0_i32 = arith.constant 0 : i32
    %c0_i32_0 = arith.constant 0 : i32
    %c0_i32_1 = arith.constant 0 : i32
    %c0_i32_2 = arith.constant 0 : i32
    return %c0_i32, %c0_i32_0, %c0_i32_1 : i32, i32, i32
  }
  func.func @transform_2(%arg0: i32) -> (i32, i32, i32) {
    %c0_i32 = arith.constant 0 : i32
    %c0_i32_0 = arith.constant 0 : i32
    %c0_i32_1 = arith.constant 0 : i32
    %c0_i32_2 = arith.constant 0 : i32
    return %c0_i32, %c0_i32_0, %c0_i32_1 : i32, i32, i32
  }
  func.func @transform_3(%arg0: i32) -> (i32, i32, i32) {
    %c0_i32 = arith.constant 0 : i32
    %c0_i32_0 = arith.constant 0 : i32
    %c0_i32_1 = arith.constant 0 : i32
    %c0_i32_2 = arith.constant 0 : i32
    return %c0_i32, %c0_i32_0, %c0_i32_1 : i32, i32, i32
  }
  func.func @transform_4(%arg0: i32) -> (i32, i32) {
    %c0_i32 = arith.constant 0 : i32
    %c0_i32_0 = arith.constant 0 : i32
    %c0_i32_1 = arith.constant 0 : i32
    return %c0_i32, %c0_i32_0 : i32, i32
  }
  func.func @transform_5(%arg0: i32) -> (i32, i32) {
    %c0_i32 = arith.constant 0 : i32
    %c0_i32_0 = arith.constant 0 : i32
    %c0_i32_1 = arith.constant 0 : i32
    return %c0_i32, %c0_i32_0 : i32, i32
  }
  func.func @transform_6(%arg0: i32) -> (i32, i32) {
    %c0_i32 = arith.constant 0 : i32
    %c0_i32_0 = arith.constant 0 : i32
    %c0_i32_1 = arith.constant 0 : i32
    return %c0_i32, %c0_i32_0 : i32, i32
  }
}

</mosaic_0001>

<bundles_post_ra>
// kernel: tpu_custom_call.1
= control target key start
LH: loop header
LB: loop body
LE: loop exit
PB: predicated region body
PF: predicated region fallthrough
CT: control target
= control target key end

     0   :  { %11 = vsyncpa [#allocation5], 0  ;;  %s7517_s0 = inlined_call_operand.hbm [shape: f32[9,8,128], index: 0, kind: input, shape index: {}]   ;;  %s7518_s1 = inlined_call_operand.hbm [shape: f32[2,128,512], index: 1, kind: input, shape index: {}]   ;;  %s7519_s2 = inlined_call_operand.hbm [shape: f32[2,128,512], index: 2, kind: input, shape index: {}]   ;;  %s7520_s3 = inlined_call_operand.vmem [shape: f32[2,1,512], index: 3, kind: input, shape index: {}]   ;;  %s7521_s4 = inlined_call_operand.hbm [shape: f32[128,128], index: 4, kind: input, shape index: {}]   ;;  %s7522_s5 = inlined_call_operand.vmem [shape: f32[1,128], index: 5, kind: input, shape index: {}]   ;;  %s7523_s6 = inlined_call_operand.hbm [shape: f32[72,128], index: 6, kind: output, shape index: {}]  }
   0x1   :  { %12 = vsyncpa [#allocation8], 0 }
   0x2   :  { %13 = vsyncpa [#allocation11], 0 }
   0x3   :  { %14 = vsyncpa [#allocation6], 0  ;;  %s6308_s21 = smov [#allocation7]   ;;  %s6190_s25 = scalar_lea.hbm %s7518_s1, 16384 }
   0x4   :  { %s32_s22 = sshll.u32 %s6308_s21, 4  ;;  %p6191_p0 = scmp.ne.s32.totalorder %s7518_s1, %s6190_s25  ;;  %s33_s22 = int_to_ptr.vmem [resolvable:$true] %s32_s22 }
   0x5   :  { %p6194_p1 = scmp.lt.u32.totalorder %s6190_s25, %s7518_s1 }
   0x7   :  { %p6196_p2 = pnand %p6194_p1, %p6191_p0 }
   0x9   :  { %6199 = shalt.err (!%p6196_p2)
}
   0xa   :  { %s6200_s30 = scalar_lea.vmem %s33_s22, 16384  ;;  %p6205_p4 = scmp.lt.s32.totalorder %s33_s22, %s33_s22 }
   0xb   :  { %p6201_p3 = scmp.ne.s32.totalorder %s33_s22, %s6200_s30  ;;  %p6206_p5 = scmp.lt.s32.totalorder %s6200_s30, %s6200_s30 }
   0xd   :  { %p6207_p6 = por %p6206_p5, %p6205_p4 }
   0xf   :  { %p6208_p7 = pnand %p6207_p6, %p6201_p3 }
  0x11   :  { %6211 = shalt.err (!%p6208_p7)
}
  0x12   :  { %s6309_s7 = smov 512   ;;  %s6310_s8 = smov 32  }
  0x13   :  { %38 = dma.hbm_to_vmem [thread:$0]  %s7518_s1, 16384, %s33_s22, [#allocation8], %s6309_s7, %s6309_s7, %s6310_s8  }
  0x14   :  { %s6311_s11 = smov [#allocation4]   ;;  %s6212_s15 = scalar_lea.hbm %s7517_s0, 1152 }
  0x15   :  { %s20_s12 = sshll.u32 %s6311_s11, 4  ;;  %p6213_p8 = scmp.ne.s32.totalorder %s7517_s0, %s6212_s15  ;;  %s21_s12 = int_to_ptr.vmem [resolvable:$true] %s20_s12 }
  0x16   :  { %p6216_p9 = scmp.lt.u32.totalorder %s6212_s15, %s7517_s0 }
  0x18   :  { %p6218_p10 = pnand %p6216_p9, %p6213_p8 }
  0x1a   :  { %6221 = shalt.err (!%p6218_p10)
}
  0x1b   :  { %s6222_s20 = scalar_lea.vmem %s21_s12, 1152  ;;  %p6227_p12 = scmp.lt.s32.totalorder %s21_s12, %s21_s12 }
  0x1c   :  { %p6223_p11 = scmp.ne.s32.totalorder %s21_s12, %s6222_s20  ;;  %p6228_p13 = scmp.lt.s32.totalorder %s6222_s20, %s6222_s20 }
  0x1e   :  { %p6229_p0 = por %p6228_p13, %p6227_p12 }
  0x20   :  { %p6230_p1 = pnand %p6229_p0, %p6223_p11 }
  0x22   :  { %6233 = shalt.err (!%p6230_p1)
}
  0x23   :  { %s6312_s1 = smov 128   ;;  %s6313_s21 = smov 8  }
  0x24   :  { %26 = dma.hbm_to_vmem [thread:$0]  %s7517_s0, 1152, %s21_s12, [#allocation5], %s6312_s1, %s6312_s1, %s6313_s21  }
  0x25   :  { %s6314_s24 = smov [#allocation9]   ;;  %s6315_s26 = smov [#allocation10]  }
  0x26   :  { %s44_s25 = sshll.u32 %s6314_s24, 4  ;;  %s58_s27 = sshll.u32 %s6315_s26, 4  ;;  %s45_s25 = int_to_ptr.vmem [resolvable:$true] %s44_s25  ;;  %s6385_s27 = int_to_ptr.vmem [resolvable:$true] %s58_s27 }
  0x27   :  { %s6234_s30 = scalar_lea.hbm %s7519_s2, 16384 }
  0x28   :  { %p6235_p2 = scmp.ne.s32.totalorder %s7519_s2, %s6234_s30  ;;  %p6238_p3 = scmp.lt.u32.totalorder %s6234_s30, %s7519_s2 }
  0x2a   :  { %p6240_p4 = pnand %p6238_p3, %p6235_p2 }
  0x2c   :  { %6243 = shalt.err (!%p6240_p4)
}
  0x2d   :  { %s6244_s0 = scalar_lea.vmem %s45_s25, 16384  ;;  %p6249_p6 = scmp.lt.s32.totalorder %s45_s25, %s45_s25 }
  0x2e   :  { %p6245_p5 = scmp.ne.s32.totalorder %s45_s25, %s6244_s0  ;;  %p6250_p7 = scmp.lt.s32.totalorder %s6244_s0, %s6244_s0 }
  0x30   :  { %p6251_p8 = por %p6250_p7, %p6249_p6 }
  0x32   :  { %p6252_p9 = pnand %p6251_p8, %p6245_p5 }
  0x34   :  { %6255 = shalt.err (!%p6252_p9)
}
  0x35   :  { %50 = dma.hbm_to_vmem [thread:$0]  %s7519_s2, 16384, %s45_s25, [#allocation8], %s6309_s7, %s6309_s7, %s6310_s8  }
  0x36   :  { %s6256_s17 = scalar_lea.hbm %s7521_s4, 2048 }
  0x37   :  { %p6257_p10 = scmp.ne.s32.totalorder %s7521_s4, %s6256_s17  ;;  %p6260_p11 = scmp.lt.u32.totalorder %s6256_s17, %s7521_s4 }
  0x39   :  { %p6262_p12 = pnand %p6260_p11, %p6257_p10 }
  0x3b   :  { %6265 = shalt.err (!%p6262_p12)
}
  0x3c   :  { %s6266_s23 = scalar_lea.vmem %s6385_s27, 2048  ;;  %p6271_p0 = scmp.lt.s32.totalorder %s6385_s27, %s6385_s27 }
  0x3d   :  { %p6267_p13 = scmp.ne.s32.totalorder %s6385_s27, %s6266_s23  ;;  %p6272_p1 = scmp.lt.s32.totalorder %s6266_s23, %s6266_s23 }
  0x3f   :  { %p6273_p2 = por %p6272_p1, %p6271_p0 }
  0x41   :  { %p6274_p3 = pnand %p6273_p2, %p6267_p13 }
  0x43   :  { %6277 = shalt.err (!%p6274_p3)
}
  0x44   :  { %64 = dma.hbm_to_vmem [thread:$0]  %s7521_s4, 2048, %s6385_s27, [#allocation11], %s6312_s1, %s6312_s1, %s6313_s21  }
  0x45   :  { %6300 = dma.done.wait [#allocation5], 1152  }
  0x46   :  { %6301 = vsyncadd [#allocation5], 4294966144 }
  0x47   :  { %6302 = dma.done.wait [#allocation8], 32768  }
  0x48   :  { %6303 = vsyncadd [#allocation8], 4294934528 }
  0x49   :  { %6304 = dma.done.wait [#allocation11], 2048  }
  0x4a   :  { %6305 = vsyncadd [#allocation11], 4294965248  ;;  %v6316_v0 = vmov 0.0   ;;  %v173_v1 = vld [vmem:[#allocation7 + $0x18] sm:$0xff]  ;;  %v172_v3 = vld [vmem:[#allocation7 + $0x10] sm:$0xff]  ;;  %vm6318_vm0 = vmmov 0  }
  0x4b   :  { %439 = vmatprep.mubr.f32.mxu1 %v6316_v0  ;;  %320 = vmatprep.mubr.f32.mxu0 %v6316_v0  ;;  %v177_v2 = vld [vmem:[#allocation7 + $0x38] sm:$0xff]  ;;  %v176_v5 = vld [vmem:[#allocation7 + $0x30] sm:$0xff]  ;;  %v171_v28 = vld [vmem:[#allocation7 + $0x8] sm:$0xff] }
  0x4c   :  { %v4474_v4 = vpack.c.bf16 %v177_v2, %v173_v1  ;;  %v181_v6 = vld [vmem:[#allocation7 + $0x58] sm:$0xff]  ;;  %v4476_v8 = vpack.c.bf16 %v176_v5, %v172_v3  ;;  %v180_v10 = vld [vmem:[#allocation7 + $0x50] sm:$0xff]  ;;  %v175_v29 = vld [vmem:[#allocation7 + $0x28] sm:$0xff] }
  0x4d   :  { %v185_v7 = vld [vmem:[#allocation7 + $0x78] sm:$0xff]  ;;  %v184_v11 = vld [vmem:[#allocation7 + $0x70] sm:$0xff]  ;;  %v4442_v32 = vpack.c.bf16 %v175_v29, %v171_v28  ;;  %v170_v33 = vld [vmem:[#allocation7] sm:$0xff] }
  0x4e   :  { %v4478_v9 = vpack.c.bf16 %v185_v7, %v181_v6  ;;  %v189_v12 = vld [vmem:[#allocation7 + $0x98] sm:$0xff]  ;;  %4475 = vmatprep.subr.bf16.mxu1 %v4474_v4  ;;  %v4480_v14 = vpack.c.bf16 %v184_v11, %v180_v10  ;;  %v188_v16 = vld [vmem:[#allocation7 + $0x90] sm:$0xff]  ;;  %v174_v34 = vld [vmem:[#allocation7 + $0x20] sm:$0xff] }
  0x4f   :  { %v193_v13 = vld [vmem:[#allocation7 + $0xb8] sm:$0xff]  ;;  %4477 = vmatpush1.bf16.msra.mxu1 %v4476_v8  ;;  %v192_v17 = vld [vmem:[#allocation7 + $0xb0] sm:$0xff]  ;;  %v4444_v37 = vpack.c.bf16 %v174_v34, %v170_v33  ;;  %v179_v38 = vld [vmem:[#allocation7 + $0x48] sm:$0xff]  ;;  %4443 = vmatprep.subr.bf16.mxu0 %v4442_v32 }
  0x50   :  { %4479 = vmatprep.subr.bf16.mxu1 %v4478_v9  ;;  %v4482_v15 = vpack.c.bf16 %v193_v13, %v189_v12  ;;  %v197_v18 = vld [vmem:[#allocation7 + $0xd8] sm:$0xff]  ;;  %v4484_v20 = vpack.c.bf16 %v192_v17, %v188_v16  ;;  %v196_v22 = vld [vmem:[#allocation7 + $0xd0] sm:$0xff]  ;;  %v183_v39 = vld [vmem:[#allocation7 + $0x68] sm:$0xff] }
  0x51   :  { %v201_v19 = vld [vmem:[#allocation7 + $0xf8] sm:$0xff]  ;;  %v200_v23 = vld [vmem:[#allocation7 + $0xf0] sm:$0xff]  ;;  %4445 = vmatpush1.bf16.msra.mxu0 %v4444_v37  ;;  %v4446_v41 = vpack.c.bf16 %v183_v39, %v179_v38  ;;  %v178_v42 = vld [vmem:[#allocation7 + $0x40] sm:$0xff] }
  0x52   :  { %v4486_v21 = vpack.c.bf16 %v201_v19, %v197_v18  ;;  %v205_v24 = vld [vmem:[#allocation7 + $0x118] sm:$0xff]  ;;  %v4488_v26 = vpack.c.bf16 %v200_v23, %v196_v22  ;;  %v204_v27 = vld [vmem:[#allocation7 + $0x110] sm:$0xff]  ;;  %v182_v43 = vld [vmem:[#allocation7 + $0x60] sm:$0xff] }
  0x53   :  { %4481 = vmatpush1.bf16.msra.mxu1 %v4480_v14  ;;  %v209_v25 = vld [vmem:[#allocation7 + $0x138] sm:$0xff]  ;;  %v208_v31 = vld [vmem:[#allocation7 + $0x130] sm:$0xff]  ;;  %v4448_v47 = vpack.c.bf16 %v182_v43, %v178_v42  ;;  %v187_v48 = vld [vmem:[#allocation7 + $0x88] sm:$0xff]  ;;  %4447 = vmatprep.subr.bf16.mxu0 %v4446_v41 }
  0x54   :  { %4483 = vmatprep.subr.bf16.mxu1 %v4482_v15  ;;  %v4490_v30 = vpack.c.bf16 %v209_v25, %v205_v24  ;;  %v213_v35 = vld [vmem:[#allocation7 + $0x158] sm:$0xff]  ;;  %v4492_v40 = vpack.c.bf16 %v208_v31, %v204_v27  ;;  %v212_v45 = vld [vmem:[#allocation7 + $0x150] sm:$0xff]  ;;  %v191_v51 = vld [vmem:[#allocation7 + $0xa8] sm:$0xff] }
  0x55   :  { %v217_v36 = vld [vmem:[#allocation7 + $0x178] sm:$0xff]  ;;  %v216_v46 = vld [vmem:[#allocation7 + $0x170] sm:$0xff]  ;;  %v4450_v52 = vpack.c.bf16 %v191_v51, %v187_v48  ;;  %v186_v53 = vld [vmem:[#allocation7 + $0x80] sm:$0xff]  ;;  %4449 = vmatpush1.bf16.msra.mxu0 %v4448_v47 }
  0x56   :  { %v4494_v44 = vpack.c.bf16 %v217_v36, %v213_v35  ;;  %v221_v49 = vld [vmem:[#allocation7 + $0x198] sm:$0xff]  ;;  %v190_v54 = vld [vmem:[#allocation7 + $0xa0] sm:$0xff]  ;;  %v4496_v55 = vpack.c.bf16 %v216_v46, %v212_v45  ;;  %v220_v56 = vld [vmem:[#allocation7 + $0x190] sm:$0xff] }
  0x57   :  { %4485 = vmatpush1.bf16.msra.mxu1 %v4484_v20  ;;  %v225_v50 = vld [vmem:[#allocation7 + $0x1b8] sm:$0xff]  ;;  %v4452_v57 = vpack.c.bf16 %v190_v54, %v186_v53  ;;  %v195_v58 = vld [vmem:[#allocation7 + $0xc8] sm:$0xff]  ;;  %v224_v61 = vld [vmem:[#allocation7 + $0x1b0] sm:$0xff]  ;;  %4451 = vmatprep.subr.bf16.mxu0 %v4450_v52 }
  0x58   :  { %4487 = vmatprep.subr.bf16.mxu1 %v4486_v21  ;;  %v199_v59 = vld [vmem:[#allocation7 + $0xe8] sm:$0xff]  ;;  %v4498_v60 = vpack.c.bf16 %v225_v50, %v221_v49  ;;  %v194_v63 = vld [vmem:[#allocation7 + $0xc0] sm:$0xff]  ;;  %v229_v2 = vld [vmem:[#allocation7 + $0x1d8] sm:$0xff]  ;;  %v4500_v6 = vpack.c.bf16 %v224_v61, %v220_v56 }
  0x59   :  { %v4454_v62 = vpack.c.bf16 %v199_v59, %v195_v58  ;;  %v198_v1 = vld [vmem:[#allocation7 + $0xe0] sm:$0xff]  ;;  %v233_v3 = vld [vmem:[#allocation7 + $0x1f8] sm:$0xff]  ;;  %v203_v4 = vld [vmem:[#allocation7 + $0x108] sm:$0xff]  ;;  %4453 = vmatpush1.bf16.msra.mxu0 %v4452_v57 }
  0x5a   :  { %v207_v5 = vld [vmem:[#allocation7 + $0x128] sm:$0xff]  ;;  %v228_v7 = vld [vmem:[#allocation7 + $0x1d0] sm:$0xff]  ;;  %v4456_v9 = vpack.c.bf16 %v198_v1, %v194_v63  ;;  %v4502_v10 = vpack.c.bf16 %v233_v3, %v229_v2  ;;  %v202_v13 = vld [vmem:[#allocation7 + $0x100] sm:$0xff] }
  0x5b   :  { %4489 = vmatpush1.bf16.msra.mxu1 %v4488_v26  ;;  %v232_v8 = vld [vmem:[#allocation7 + $0x1f0] sm:$0xff]  ;;  %v98_v11 = vld [vmem:[#allocation9 + $0x8] sm:$0xff]  ;;  %4455 = vmatprep.subr.bf16.mxu0 %v4454_v62  ;;  %v4458_v12 = vpack.c.bf16 %v207_v5, %v203_v4  ;;  %v206_v14 = vld [vmem:[#allocation7 + $0x120] sm:$0xff] }
  0x5c   :  { %4491 = vmatprep.subr.bf16.mxu1 %v4490_v30  ;;  %v102_v15 = vld [vmem:[#allocation9 + $0x28] sm:$0xff]  ;;  %v4504_v18 = vpack.c.bf16 %v232_v8, %v228_v7  ;;  %v4460_v19 = vpack.c.bf16 %v206_v14, %v202_v13  ;;  %v97_v21 = vld [vmem:[#allocation9] sm:$0xff]  ;;  %v6426_v30 = vld [vmem:[#allocation4] sm:$0xff] }
  0x5d   :  { %v211_v16 = vld [vmem:[#allocation7 + $0x148] sm:$0xff]  ;;  %4457 = vmatpush1.bf16.msra.mxu0 %v4456_v9  ;;  %v6424_v20 = vpack.c.bf16 %v102_v15, %v98_v11  ;;  %v101_v22 = vld [vmem:[#allocation9 + $0x20] sm:$0xff]  ;;  %v82_v62 = vld [vmem:[#allocation4 + $0x18] sm:$0xff] }
  0x5e   :  { %v215_v17 = vld [vmem:[#allocation7 + $0x168] sm:$0xff]  ;;  %4459 = vmatprep.subr.bf16.mxu0 %v4458_v12  ;;  %v210_v26 = vld [vmem:[#allocation7 + $0x140] sm:$0xff]  ;;  %v6428_v31 = vpack.c.bf16 %v101_v22, %v97_v21 }
  0x5f   :  { %4493 = vmatpush1.bf16.msra.mxu1 %v4492_v40  ;;  %v106_v23 = vld [vmem:[#allocation9 + $0x48] sm:$0xff]  ;;  %v4462_v24 = vpack.c.bf16 %v215_v17, %v211_v16  ;;  %v214_v27 = vld [vmem:[#allocation7 + $0x160] sm:$0xff] }
  0x60   :  { %4495 = vmatprep.subr.bf16.mxu1 %v4494_v44  ;;  %v110_v25 = vld [vmem:[#allocation9 + $0x68] sm:$0xff]  ;;  %v105_v33 = vld [vmem:[#allocation9 + $0x40] sm:$0xff]  ;;  %v4464_v36 = vpack.c.bf16 %v214_v27, %v210_v26  ;;  %v100_v26 = vld [vmem:[#allocation9 + $0x18] sm:$0xff] }
  0x61   :  { %v219_v28 = vld [vmem:[#allocation7 + $0x188] sm:$0xff]  ;;  %4461 = vmatpush1.bf16.msra.mxu0 %v4460_v19  ;;  %v6431_v32 = vpack.c.bf16 %v110_v25, %v106_v23  ;;  %v109_v34 = vld [vmem:[#allocation9 + $0x60] sm:$0xff]  ;;  %v104_v27 = vld [vmem:[#allocation9 + $0x38] sm:$0xff] }
  0x62   :  { %v223_v29 = vld [vmem:[#allocation7 + $0x1a8] sm:$0xff]  ;;  %4463 = vmatprep.subr.bf16.mxu0 %v4462_v24  ;;  %v218_v39 = vld [vmem:[#allocation7 + $0x180] sm:$0xff]  ;;  %v6438_v44 = vpack.c.bf16 %v109_v34, %v105_v33  ;;  %v87_v33 = vld [vmem:[#allocation4 + $0x40] sm:$0xff] }
  0x63   :  { %4497 = vmatpush1.bf16.msra.mxu1 %v4496_v55  ;;  %v114_v35 = vld [vmem:[#allocation9 + $0x88] sm:$0xff]  ;;  %v4466_v38 = vpack.c.bf16 %v223_v29, %v219_v28  ;;  %v222_v40 = vld [vmem:[#allocation7 + $0x1a0] sm:$0xff]  ;;  %v86_v28 = vld [vmem:[#allocation4 + $0x38] sm:$0xff] }
  0x64   :  { %4499 = vmatprep.subr.bf16.mxu1 %v4498_v60  ;;  %v118_v37 = vld [vmem:[#allocation9 + $0xa8] sm:$0xff]  ;;  %v6436_v43 = vld [vmem:[#allocation4 + $0x8] sm:$0xff]  ;;  %v4468_v49 = vpack.c.bf16 %v222_v40, %v218_v39  ;;  %v99_v34 = vld [vmem:[#allocation9 + $0x10] sm:$0xff] }
  0x65   :  { %v227_v41 = vld [vmem:[#allocation7 + $0x1c8] sm:$0xff]  ;;  %v6441_v45 = vpack.c.bf16 %v118_v37, %v114_v35  ;;  %v113_v46 = vld [vmem:[#allocation9 + $0x80] sm:$0xff]  ;;  %4465 = vmatpush1.bf16.msra.mxu0 %v4464_v36  ;;  %v103_v35 = vld [vmem:[#allocation9 + $0x30] sm:$0xff] }
  0x66   :  { %v231_v42 = vld [vmem:[#allocation7 + $0x1e8] sm:$0xff]  ;;  %v117_v47 = vld [vmem:[#allocation9 + $0xa0] sm:$0xff]  ;;  %4467 = vmatprep.subr.bf16.mxu0 %v4466_v38  ;;  %v108_v36 = vld [vmem:[#allocation9 + $0x58] sm:$0xff]  ;;  %v6508_v38 = vpack.c.bf16 %v103_v35, %v99_v34  ;;  %v236_v35 = vlaneseq }
  0x67   :  { %4501 = vmatpush1.bf16.msra.mxu1 %v4500_v6  ;;  %v122_v48 = vld [vmem:[#allocation9 + $0xc8] sm:$0xff]  ;;  %v4470_v51 = vpack.c.bf16 %v231_v42, %v227_v41  ;;  %v226_v52 = vld [vmem:[#allocation7 + $0x1c0] sm:$0xff]  ;;  %v6446_v55 = vpack.c.bf16 %v117_v47, %v113_v46  ;;  %v83_v6 = vld [vmem:[#allocation4 + $0x20] sm:$0xff] }
  0x68   :  { %4503 = vmatprep.subr.bf16.mxu1 %v4502_v10  ;;  %v126_v50 = vld [vmem:[#allocation9 + $0xe8] sm:$0xff]  ;;  %v230_v53 = vld [vmem:[#allocation7 + $0x1e0] sm:$0xff]  ;;  %v112_v37 = vld [vmem:[#allocation9 + $0x78] sm:$0xff] }
  0x69   :  { %v81_v54 = vld [vmem:[#allocation4 + $0x10] sm:$0xff]  ;;  %v6449_v56 = vpack.c.bf16 %v126_v50, %v122_v48  ;;  %v121_v57 = vld [vmem:[#allocation9 + $0xc0] sm:$0xff]  ;;  %4469 = vmatpush1.bf16.msra.mxu0 %v4468_v49  ;;  %v4472_v59 = vpack.c.bf16 %v230_v53, %v226_v52  ;;  %v6510_v39 = vpack.c.bf16 %v112_v37, %v108_v36  ;;  %v107_v40 = vld [vmem:[#allocation9 + $0x50] sm:$0xff]  ;;  %v6584_v36 = vshrl.u32 %v236_v35, 7 }
  0x6a   :  { %v125_v58 = vld [vmem:[#allocation9 + $0xe0] sm:$0xff]  ;;  %v130_v60 = vld [vmem:[#allocation9 + $0x108] sm:$0xff]  ;;  %4471 = vmatprep.subr.bf16.mxu0 %v4470_v51  ;;  %v111_v41 = vld [vmem:[#allocation9 + $0x70] sm:$0xff] }
  0x6b   :  { %4505 = vmatpush1.bf16.msra.mxu1 %v4504_v18  ;;  %v134_v61 = vld [vmem:[#allocation9 + $0x128] sm:$0xff]  ;;  %v6453_v63 = vpack.c.bf16 %v125_v58, %v121_v57  ;;  %v129_v2 = vld [vmem:[#allocation9 + $0x100] sm:$0xff]  ;;  %v116_v42 = vld [vmem:[#allocation9 + $0x98] sm:$0xff]  ;;  %v6517_v46 = vpack.c.bf16 %v111_v41, %v107_v40  ;;  %v238_v37 = vsub.s32 0, %v6584_v36  ;;  %v242_v41 = vsub.s32 1, %v6584_v36 }
  0x6c   :  { %4507 = vmatprep.subr.bf16.mxu1 %v6424_v20  ;;  %v6456_v1 = vpack.c.bf16 %v134_v61, %v130_v60  ;;  %v133_v3 = vld [vmem:[#allocation9 + $0x120] sm:$0xff]  ;;  %v138_v4 = vld [vmem:[#allocation9 + $0x148] sm:$0xff]  ;;  %v115_v48 = vld [vmem:[#allocation9 + $0x90] sm:$0xff] }
  0x6d   :  { %4473 = vmatpush1.bf16.msra.mxu0 %v4472_v59  ;;  %v142_v5 = vld [vmem:[#allocation9 + $0x168] sm:$0xff]  ;;  %v6461_v7 = vpack.c.bf16 %v133_v3, %v129_v2  ;;  %v137_v9 = vld [vmem:[#allocation9 + $0x140] sm:$0xff]  ;;  %v119_v49 = vld [vmem:[#allocation9 + $0xb0] sm:$0xff] }
  0x6e   :  { %440 = vmatmul.mubr.f32.vlgmr.msra.gmra.mrb[0].mxu1 %v6426_v30  ;;  %4571 = vmatprep.subr.bf16.mxu0 %v6424_v20  ;;  %v6464_v8 = vpack.c.bf16 %v142_v5, %v138_v4  ;;  %v141_v10 = vld [vmem:[#allocation9 + $0x160] sm:$0xff]  ;;  %v146_v11 = vld [vmem:[#allocation9 + $0x188] sm:$0xff]  ;;  %v124_v50 = vld [vmem:[#allocation9 + $0xd8] sm:$0xff]  ;;  %v6527_v52 = vpack.c.bf16 %v119_v49, %v115_v48 }
  0x6f   :  { %4509 = vmatpush1.bf16.msra.mxu1 %v6428_v31  ;;  %445 = vmatprep.mubr.f32.mxu1 %v6316_v0  ;;  %v150_v12 = vld [vmem:[#allocation9 + $0x1a8] sm:$0xff]  ;;  %v84_v13 = vld [vmem:[#allocation4 + $0x28] sm:$0xff]  ;;  %v6472_v14 = vpack.c.bf16 %v141_v10, %v137_v9  ;;  %v128_v51 = vld [vmem:[#allocation9 + $0xf8] sm:$0xff] }
  0x70   :  { %4511 = vmatprep.subr.bf16.mxu1 %v6431_v32  ;;  %321 = vmatmul.mubr.f32.vlgmr.msra.gmra.mrb[0].mxu0 %v6426_v30  ;;  %v6475_v15 = vpack.c.bf16 %v150_v12, %v146_v11  ;;  %v145_v16 = vld [vmem:[#allocation9 + $0x180] sm:$0xff]  ;;  %v154_v18 = vld [vmem:[#allocation9 + $0x1c8] sm:$0xff]  ;;  %v6496_v30 = vpack.c.bf16 %v104_v27, %v100_v26  ;;  %v6530_v53 = vpack.c.bf16 %v128_v51, %v124_v50  ;;  %v127_v57 = vld [vmem:[#allocation9 + $0xf0] sm:$0xff] }
  0x71   :  { %4573 = vmatpush1.bf16.msra.mxu0 %v6428_v31  ;;  %326 = vmatprep.mubr.f32.mxu0 %v6316_v0  ;;  %v149_v17 = vld [vmem:[#allocation9 + $0x1a0] sm:$0xff]  ;;  %v158_v19 = vld [vmem:[#allocation9 + $0x1e8] sm:$0xff]  ;;  %v132_v58 = vld [vmem:[#allocation9 + $0x118] sm:$0xff] }
  0x72   :  { %446 = vmatmul.mubr.f32.gmra.mrb[2].mxu1 %v6436_v43  ;;  %4575 = vmatprep.subr.bf16.mxu0 %v6431_v32  ;;  %v85_v21 = vld [vmem:[#allocation4 + $0x30] sm:$0xff]  ;;  %v6483_v22 = vpack.c.bf16 %v149_v17, %v145_v16  ;;  %v6486_v23 = vpack.c.bf16 %v158_v19, %v154_v18  ;;  %v153_v24 = vld [vmem:[#allocation9 + $0x1c0] sm:$0xff]  ;;  %v136_v59 = vld [vmem:[#allocation9 + $0x138] sm:$0xff] }
  0x73   :  { %4513 = vmatpush1.bf16.msra.mxu1 %v6438_v44  ;;  %451 = vmatprep.mubr.f32.mxu1 %v6316_v0  ;;  %v157_v25 = vld [vmem:[#allocation9 + $0x1e0] sm:$0xff]  ;;  %v6539_v61 = vpack.c.bf16 %v136_v59, %v132_v58  ;;  %v135_v2 = vld [vmem:[#allocation9 + $0x130] sm:$0xff]  ;;  %v140_v3 = vld [vmem:[#allocation9 + $0x158] sm:$0xff] }
  0x74   :  { %4515 = vmatprep.subr.bf16.mxu1 %v6441_v45  ;;  %327 = vmatmul.mubr.f32.gmra.mrb[2].mxu0 %v6436_v43  ;;  %v6493_v29 = vpack.c.bf16 %v157_v25, %v153_v24  ;;  %v120_v43 = vld [vmem:[#allocation9 + $0xb8] sm:$0xff]  ;;  %v139_v9 = vld [vmem:[#allocation9 + $0x150] sm:$0xff] }
  0x75   :  { %4577 = vmatpush1.bf16.msra.mxu0 %v6438_v44  ;;  %332 = vmatprep.mubr.f32.mxu0 %v6316_v0  ;;  %v6521_v47 = vpack.c.bf16 %v120_v43, %v116_v42  ;;  %v144_v4 = vld [vmem:[#allocation9 + $0x178] sm:$0xff]  ;;  %v143_v10 = vld [vmem:[#allocation9 + $0x170] sm:$0xff] }
  0x76   :  { %452 = vmatmul.mubr.f32.gmra.mrb[4].mxu1 %v81_v54  ;;  %4579 = vmatprep.subr.bf16.mxu0 %v6441_v45  ;;  %v148_v11 = vld [vmem:[#allocation9 + $0x198] sm:$0xff]  ;;  %v147_v17 = vld [vmem:[#allocation9 + $0x190] sm:$0xff] }
  0x77   :  { %4517 = vmatpush1.bf16.msra.mxu1 %v6446_v55  ;;  %457 = vmatprep.mubr.f32.mxu1 %v6316_v0  ;;  %v152_v12 = vld [vmem:[#allocation9 + $0x1b8] sm:$0xff]  ;;  %v151_v18 = vld [vmem:[#allocation9 + $0x1b0] sm:$0xff] }
  0x78   :  { %4519 = vmatprep.subr.bf16.mxu1 %v6449_v56  ;;  %333 = vmatmul.mubr.f32.gmra.mrb[4].mxu0 %v81_v54  ;;  %v123_v54 = vld [vmem:[#allocation9 + $0xd0] sm:$0xff]  ;;  %v6552_v16 = vpack.c.bf16 %v152_v12, %v148_v11  ;;  %v156_v19 = vld [vmem:[#allocation9 + $0x1d8] sm:$0xff]  ;;  %v6555_v24 = vpack.c.bf16 %v151_v18, %v147_v17 }
  0x79   :  { %4581 = vmatpush1.bf16.msra.mxu0 %v6446_v55  ;;  %338 = vmatprep.mubr.f32.mxu0 %v6316_v0  ;;  %v6536_v60 = vpack.c.bf16 %v127_v57, %v123_v54  ;;  %v155_v26 = vld [vmem:[#allocation9 + $0x1d0] sm:$0xff]  ;;  %v234_v40 = vld [vmem:[%s7520_s3] sm:$0xf] }
  0x7a   :  { %458 = vmatmul.mubr.f32.gmra.mrb[6].mxu1 %v82_v62  ;;  %4583 = vmatprep.subr.bf16.mxu0 %v6449_v56  ;;  %v159_v27 = vld [vmem:[#allocation9 + $0x1f0] sm:$0xff]  ;;  %v6593_v42 = vrot.slane %v234_v40, %v238_v37  ;;  %v6597_v43 = vrot.slane %v234_v40, %v242_v41 }
  0x7b   :  { %463 = vmatprep.mubr.f32.mxu1 %v6316_v0  ;;  %4521 = vmatpush1.bf16.msra.mxu1 %v6453_v63 }
  0x7c   :  { %4523 = vmatprep.subr.bf16.mxu1 %v6456_v1  ;;  %339 = vmatmul.mubr.f32.gmra.mrb[6].mxu0 %v82_v62  ;;  %v131_v62 = vld [vmem:[#allocation9 + $0x110] sm:$0xff] }
  0x7d   :  { %344 = vmatprep.mubr.f32.mxu0 %v6316_v0  ;;  %4585 = vmatpush1.bf16.msra.mxu0 %v6453_v63  ;;  %v6543_v5 = vpack.c.bf16 %v135_v2, %v131_v62  ;;  %v246_v62 = vsub.s32 2, %v6584_v36 }
  0x7e   :  { %464 = vmatmul.mubr.f32.gmra.mrb[8].mxu1 %v83_v6  ;;  %4587 = vmatprep.subr.bf16.mxu0 %v6456_v1 }
  0x7f   :  { %469 = vmatprep.mubr.f32.mxu1 %v6316_v0  ;;  %4525 = vmatpush1.bf16.msra.mxu1 %v6461_v7 }
  0x80   :  { %4527 = vmatprep.subr.bf16.mxu1 %v6464_v8  ;;  %345 = vmatmul.mubr.f32.gmra.mrb[8].mxu0 %v83_v6  ;;  %v6546_v6 = vpack.c.bf16 %v144_v4, %v140_v3  ;;  %v250_v3 = vsub.s32 3, %v6584_v36 }
  0x81   :  { %350 = vmatprep.mubr.f32.mxu0 %v6316_v0  ;;  %4589 = vmatpush1.bf16.msra.mxu0 %v6461_v7 }
  0x82   :  { %470 = vmatmul.mubr.f32.gmra.mrb[10].mxu1 %v84_v13  ;;  %4591 = vmatprep.subr.bf16.mxu0 %v6464_v8  ;;  %v6609_v12 = vrot.slane %v234_v40, %v250_v3 }
  0x83   :  { %475 = vmatprep.mubr.f32.mxu1 %v6316_v0  ;;  %4529 = vmatpush1.bf16.msra.mxu1 %v6472_v14 }
  0x84   :  { %4531 = vmatprep.subr.bf16.mxu1 %v6475_v15  ;;  %351 = vmatmul.mubr.f32.gmra.mrb[10].mxu0 %v84_v13  ;;  %v6549_v13 = vpack.c.bf16 %v143_v10, %v139_v9  ;;  %v6605_v10 = vrot.slane %v234_v40, %v246_v62 }
  0x85   :  { %356 = vmatprep.mubr.f32.mxu0 %v6316_v0  ;;  %4593 = vmatpush1.bf16.msra.mxu0 %v6472_v14 }
  0x86   :  { %476 = vmatmul.mubr.f32.gmra.mrb[12].mxu1 %v85_v21  ;;  %4595 = vmatprep.subr.bf16.mxu0 %v6475_v15 }
  0x87   :  { %481 = vmatprep.mubr.f32.mxu1 %v6316_v0  ;;  %4533 = vmatpush1.bf16.msra.mxu1 %v6483_v22 }
  0x88   :  { %4535 = vmatprep.subr.bf16.mxu1 %v6486_v23  ;;  %357 = vmatmul.mubr.f32.gmra.mrb[12].mxu0 %v85_v21  ;;  %v160_v21 = vld [vmem:[#allocation9 + $0x1f8] sm:$0xff] }
  0x89   :  { %362 = vmatprep.mubr.f32.mxu0 %v6316_v0  ;;  %4597 = vmatpush1.bf16.msra.mxu0 %v6483_v22  ;;  %v6558_v25 = vpack.c.bf16 %v160_v21, %v156_v19 }
  0x8a   :  { %482 = vmatmul.mubr.f32.gmra.mrb[14].mxu1 %v86_v28  ;;  %4599 = vmatprep.subr.bf16.mxu0 %v6486_v23 }
  0x8b   :  { %487 = vmatprep.mubr.f32.mxu1 %v6316_v0  ;;  %4537 = vmatpush1.bf16.msra.mxu1 %v6493_v29 }
  0x8c   :  { %4539 = vmatprep.subr.bf16.mxu1 %v6496_v30  ;;  %363 = vmatmul.mubr.f32.gmra.mrb[14].mxu0 %v86_v28  ;;  %v6561_v28 = vpack.c.bf16 %v159_v27, %v155_v26 }
  0x8d   :  { %368 = vmatprep.mubr.f32.mxu0 %v6316_v0  ;;  %4601 = vmatpush1.bf16.msra.mxu0 %v6493_v29 }
  0x8e   :  { %488 = vmatmul.mubr.f32.gmra.mrb[16].mxu1 %v87_v33  ;;  %4635 = vmatprep.subr.bf16.mxu0 %v6424_v20 }
  0x8f   :  { %598 = vmatprep.mubr.f32.mxu1 %v6316_v0 }
  0x90   :  { %369 = vmatmul.mubr.f32.gmra.mrb[16].mxu0 %v87_v33 }
  0x91   :  { %774 = vmatprep.mubr.f32.mxu0 %v6316_v0 }
  0x92   :  { %599 = vmatmul.mubr.f32.vlgmr.msra.gmra.mrb[18].mxu1 %v6316_v0 }
  0x93   :  { %4541 = vmatpush1.bf16.msra.mxu1 %v6508_v38  ;;  %669 = vmatprep.mubr.f32.mxu1 %v6316_v0 }
  0x94   :  { %4543 = vmatprep.subr.bf16.mxu1 %v6510_v39 }
  0x97   :  { %4545 = vmatpush1.bf16.msra.mxu1 %v6517_v46 }
  0x98   :  { %4547 = vmatprep.subr.bf16.mxu1 %v6521_v47 }
  0x9b   :  { %4549 = vmatpush1.bf16.msra.mxu1 %v6527_v52 }
  0x9c   :  { %4551 = vmatprep.subr.bf16.mxu1 %v6530_v53 }
  0x9f   :  { %4553 = vmatpush1.bf16.msra.mxu1 %v6536_v60 }
  0xa0   :  { %4555 = vmatprep.subr.bf16.mxu1 %v6539_v61 }
  0xa3   :  { %4557 = vmatpush1.bf16.msra.mxu1 %v6543_v5 }
  0xa4   :  { %4559 = vmatprep.subr.bf16.mxu1 %v6546_v6 }
  0xa7   :  { %4561 = vmatpush1.bf16.msra.mxu1 %v6549_v13 }
  0xa8   :  { %4563 = vmatprep.subr.bf16.mxu1 %v6552_v16 }
  0xab   :  { %4565 = vmatpush1.bf16.msra.mxu1 %v6555_v24 }
  0xac   :  { %4567 = vmatprep.subr.bf16.mxu1 %v6558_v25 }
  0xaf   :  { %4569 = vmatpush1.bf16.msra.mxu1 %v6561_v28 }
  0xb0   :  { %4603 = vmatprep.subr.bf16.mxu1 %v6496_v30 }
  0xb2   :  { %670 = vmatmul.mubr.f32.vlgmr.msra.gmra.mrb[0].mxu1 %v6316_v0 }
  0xb3   :  { %4605 = vmatpush1.bf16.msra.mxu1 %v6508_v38  ;;  %845 = vmatprep.mubr.f32.mxu1 %v6316_v0 }
  0xb4   :  { %4607 = vmatprep.subr.bf16.mxu1 %v6510_v39 }
  0xb7   :  { %4609 = vmatpush1.bf16.msra.mxu1 %v6517_v46 }
  0xb8   :  { %4611 = vmatprep.subr.bf16.mxu1 %v6521_v47 }
  0xbb   :  { %4613 = vmatpush1.bf16.msra.mxu1 %v6527_v52 }
  0xbc   :  { %4615 = vmatprep.subr.bf16.mxu1 %v6530_v53 }
  0xbf   :  { %4617 = vmatpush1.bf16.msra.mxu1 %v6536_v60 }
  0xc0   :  { %4619 = vmatprep.subr.bf16.mxu1 %v6539_v61 }
  0xc3   :  { %4621 = vmatpush1.bf16.msra.mxu1 %v6543_v5 }
  0xc4   :  { %4623 = vmatprep.subr.bf16.mxu1 %v6546_v6 }
  0xc7   :  { %4625 = vmatpush1.bf16.msra.mxu1 %v6549_v13 }
  0xc8   :  { %4627 = vmatprep.subr.bf16.mxu1 %v6552_v16 }
  0xcb   :  { %4629 = vmatpush1.bf16.msra.mxu1 %v6555_v24 }
  0xcc   :  { %4631 = vmatprep.subr.bf16.mxu1 %v6558_v25 }
  0xcf   :  { %4633 = vmatpush1.bf16.msra.mxu1 %v6561_v28 }
  0xd0   :  { %4667 = vmatprep.subr.bf16.mxu1 %v6496_v30 }
 0x143   :  { %v322_v33 = vpop.f32.mrb[0].mxu0 }
 0x144   :  { %v324_v34 = vpop.f32.mrb[1].mxu0  ;;  %v323_v48 = vadd.f32 %v322_v33, %v6593_v42 }
 0x145   :  { %v325_v49 = vadd.f32 %v324_v34, %v6597_v43 }
 0x165   :  { %v600_v50 = vpop.f32.mrb[18].mxu1 }
 0x166   :  { %v676_v51 = vadd.f32 %v600_v50, %v323_v48  ;;  %v602_v54 = vpop.f32.mrb[19].mxu1 }
 0x167   :  { %v677_v57 = vadd.f32 %v602_v54, %v325_v49 }
 0x168   :  { %v4302_v59 = vmul.f32 -1.442695, %v676_v51 }
 0x169   :  { %v4303_v58 = vmul.f32 -1.442695, %v677_v57 }
 0x16b   :  { %5902 = vpow2.f32 %v4303_v58 }
 0x16c   :  { %5904 = vpow2.f32 %v4302_v59 }
 0x175   :  { %v5903_v2 = vpop.eup %5902 }
 0x176   :  { %v5905_v4 = vpop.eup %5904  ;;  %v689_v9 = vadd.f32 1.0, %v5903_v2 }
 0x177   :  { %v683_v11 = vadd.f32 1.0, %v5905_v4 }
 0x178   :  { %5906 = vrcp.f32 %v689_v9 }
 0x179   :  { %5908 = vrcp.f32 %v683_v11 }
 0x182   :  { %v5907_v27 = vpop.eup %5906 }
 0x183   :  { %v5909_v33 = vpop.eup %5908  ;;  %v699_v35 = vmul.f32 0.0, %v5907_v27 }
 0x185   :  { %v671_v17 = vpop.f32.mrb[0].mxu1 }
 0x186   :  { %v5766_v18 = vadd.f32 %v671_v17, %v6605_v10  ;;  %v673_v19 = vpop.f32.mrb[1].mxu1 }
 0x187   :  { %v5767_v21 = vadd.f32 %v673_v19, %v6609_v12 }
 0x188   :  { %5910 = vtanh.f32 %v5766_v18 }
 0x189   :  { %v4304_v26 = vmul.f32 -1.442695, %v5767_v21 }
 0x18b   :  { %5912 = vpow2.f32 %v4304_v26 }
 0x192   :  { %v5911_v34 = vpop.eup %5910 }
 0x193   :  { %v700_v48 = vmul.f32 %v5911_v34, %v5909_v33 }
 0x195   :  { %v5913_v49 = vpop.eup %5912  ;;  %v6613_v50 = vadd.f32 %v700_v48, %v699_v35 }
 0x196   :  { %v696_v40 = vadd.f32 1.0, %v5913_v49 }
 0x197   :  { %5914 = vtanh.f32 %v6613_v50 }
 0x198   :  { %5916 = vrcp.f32 %v696_v40 }
 0x1a1   :  { %v5915_v51 = vpop.eup %5914 }
 0x1a2   :  { %v5917_v54 = vpop.eup %5916 }
 0x1a3   :  { %v6616_v57 = vmul.f32 %v5917_v54, %v5915_v51 }
 0x1a5   :  { %775 = vmatmul.mubr.f32.vlgmr.msra.gmra.mrb[2].mxu0 %v6616_v57  ;;  %846 = vmatmul.mubr.f32.vlgmr.msra.gmra.mrb[2].mxu1 %v6616_v57 }
 0x1a6   :  { %4637 = vmatpush1.bf16.msra.mxu0 %v6428_v31  ;;  %4669 = vmatpush1.bf16.msra.mxu1 %v6508_v38 }
 0x1a7   :  { %4639 = vmatprep.subr.bf16.mxu0 %v6431_v32  ;;  %4671 = vmatprep.subr.bf16.mxu1 %v6510_v39 }
 0x1a8   :  { %951 = vmatprep.mubr.f32.mxu0 %v6316_v0  ;;  %1022 = vmatprep.mubr.f32.mxu1 %v6316_v0 }
 0x1aa   :  { %4641 = vmatpush1.bf16.msra.mxu0 %v6438_v44  ;;  %4673 = vmatpush1.bf16.msra.mxu1 %v6517_v46 }
 0x1ab   :  { %4643 = vmatprep.subr.bf16.mxu0 %v6441_v45  ;;  %4675 = vmatprep.subr.bf16.mxu1 %v6521_v47 }
 0x1ae   :  { %4645 = vmatpush1.bf16.msra.mxu0 %v6446_v55  ;;  %4677 = vmatpush1.bf16.msra.mxu1 %v6527_v52 }
 0x1af   :  { %4647 = vmatprep.subr.bf16.mxu0 %v6449_v56  ;;  %4679 = vmatprep.subr.bf16.mxu1 %v6530_v53 }
 0x1b2   :  { %4649 = vmatpush1.bf16.msra.mxu0 %v6453_v63  ;;  %4681 = vmatpush1.bf16.msra.mxu1 %v6536_v60 }
 0x1b3   :  { %4651 = vmatprep.subr.bf16.mxu0 %v6456_v1  ;;  %4683 = vmatprep.subr.bf16.mxu1 %v6539_v61 }
 0x1b6   :  { %4653 = vmatpush1.bf16.msra.mxu0 %v6461_v7  ;;  %4685 = vmatpush1.bf16.msra.mxu1 %v6543_v5 }
 0x1b7   :  { %4655 = vmatprep.subr.bf16.mxu0 %v6464_v8  ;;  %4687 = vmatprep.subr.bf16.mxu1 %v6546_v6 }
 0x1ba   :  { %4657 = vmatpush1.bf16.msra.mxu0 %v6472_v14  ;;  %4689 = vmatpush1.bf16.msra.mxu1 %v6549_v13 }
 0x1bb   :  { %4659 = vmatprep.subr.bf16.mxu0 %v6475_v15  ;;  %4691 = vmatprep.subr.bf16.mxu1 %v6552_v16 }
 0x1be   :  { %4661 = vmatpush1.bf16.msra.mxu0 %v6483_v22  ;;  %4693 = vmatpush1.bf16.msra.mxu1 %v6555_v24 }
 0x1bf   :  { %4663 = vmatprep.subr.bf16.mxu0 %v6486_v23  ;;  %4695 = vmatprep.subr.bf16.mxu1 %v6558_v25 }
 0x1c2   :  { %4665 = vmatpush1.bf16.msra.mxu0 %v6493_v29  ;;  %4697 = vmatpush1.bf16.msra.mxu1 %v6561_v28 }
 0x1c3   :  { %4699 = vmatprep.subr.bf16.mxu0 %v6424_v20  ;;  %4731 = vmatprep.subr.bf16.mxu1 %v6496_v30 }
 0x278   :  { %v776_v58 = vpop.f32.mrb[2].mxu0  ;;  %v847_v59 = vpop.f32.mrb[2].mxu1 }
 0x279   :  { %v5750_v2 = vadd.f32 %v776_v58, %v6593_v42  ;;  %v778_v4 = vpop.f32.mrb[3].mxu0  ;;  %v849_v9 = vpop.f32.mrb[3].mxu1  ;;  %v5768_v26 = vadd.f32 %v847_v59, %v6605_v10 }
 0x27a   :  { %v5751_v11 = vadd.f32 %v778_v4, %v6597_v43  ;;  %v5769_v19 = vadd.f32 %v849_v9, %v6609_v12 }
 0x27b   :  { %v4305_v17 = vmul.f32 -1.442695, %v5750_v2 }
 0x27c   :  { %v4306_v18 = vmul.f32 -1.442695, %v5751_v11  ;;  %v4307_v21 = vmul.f32 -1.442695, %v5769_v19 }
 0x27d   :  { %5918 = vpow2.f32 %v4305_v17 }
 0x27e   :  { %5920 = vpow2.f32 %v4306_v18 }
 0x27f   :  { %5922 = vpow2.f32 %v4307_v21 }
 0x280   :  { %5924 = vtanh.f32 %v5768_v26 }
 0x287   :  { %v5919_v27 = vpop.eup %5918 }
 0x288   :  { %v5921_v33 = vpop.eup %5920  ;;  %v859_v34 = vadd.f32 1.0, %v5919_v27 }
 0x289   :  { %v865_v35 = vadd.f32 1.0, %v5921_v33  ;;  %v5923_v48 = vpop.eup %5922 }
 0x28a   :  { %5926 = vrcp.f32 %v859_v34  ;;  %v5925_v49 = vpop.eup %5924  ;;  %v872_v58 = vadd.f32 1.0, %v5923_v48 }
 0x28b   :  { %5928 = vrcp.f32 %v865_v35 }
 0x28c   :  { %5930 = vrcp.f32 %v872_v58 }
 0x294   :  { %v5927_v40 = vpop.eup %5926 }
 0x295   :  { %v5929_v51 = vpop.eup %5928  ;;  %v876_v54 = vmul.f32 %v5927_v40, %v5925_v49 }
 0x296   :  { %v875_v2 = vmul.f32 %v5929_v51, %v6613_v50  ;;  %v5931_v59 = vpop.eup %5930 }
 0x298   :  { %v6659_v4 = vadd.f32 %v876_v54, %v875_v2 }
 0x29a   :  { %5932 = vtanh.f32 %v6659_v4 }
 0x2a4   :  { %v5933_v9 = vpop.eup %5932 }
 0x2a5   :  { %v6662_v11 = vmul.f32 %v5933_v9, %v5931_v59 }
 0x2a7   :  { %952 = vmatmul.mubr.f32.vlgmr.msra.gmra.mrb[4].mxu0 %v6662_v11  ;;  %1023 = vmatmul.mubr.f32.vlgmr.msra.gmra.mrb[4].mxu1 %v6662_v11 }
 0x2a8   :  { %4701 = vmatpush1.bf16.msra.mxu0 %v6428_v31  ;;  %4733 = vmatpush1.bf16.msra.mxu1 %v6508_v38 }
 0x2a9   :  { %4703 = vmatprep.subr.bf16.mxu0 %v6431_v32  ;;  %4735 = vmatprep.subr.bf16.mxu1 %v6510_v39 }
 0x2aa   :  { %1128 = vmatprep.mubr.f32.mxu0 %v6316_v0  ;;  %1199 = vmatprep.mubr.f32.mxu1 %v6316_v0 }
 0x2ac   :  { %4705 = vmatpush1.bf16.msra.mxu0 %v6438_v44  ;;  %4737 = vmatpush1.bf16.msra.mxu1 %v6517_v46 }
 0x2ad   :  { %4707 = vmatprep.subr.bf16.mxu0 %v6441_v45  ;;  %4739 = vmatprep.subr.bf16.mxu1 %v6521_v47 }
 0x2b0   :  { %4709 = vmatpush1.bf16.msra.mxu0 %v6446_v55  ;;  %4741 = vmatpush1.bf16.msra.mxu1 %v6527_v52 }
 0x2b1   :  { %4711 = vmatprep.subr.bf16.mxu0 %v6449_v56  ;;  %4743 = vmatprep.subr.bf16.mxu1 %v6530_v53 }
 0x2b4   :  { %4713 = vmatpush1.bf16.msra.mxu0 %v6453_v63  ;;  %4745 = vmatpush1.bf16.msra.mxu1 %v6536_v60 }
 0x2b5   :  { %4715 = vmatprep.subr.bf16.mxu0 %v6456_v1  ;;  %4747 = vmatprep.subr.bf16.mxu1 %v6539_v61 }
 0x2b8   :  { %4717 = vmatpush1.bf16.msra.mxu0 %v6461_v7  ;;  %4749 = vmatpush1.bf16.msra.mxu1 %v6543_v5 }
 0x2b9   :  { %4719 = vmatprep.subr.bf16.mxu0 %v6464_v8  ;;  %4751 = vmatprep.subr.bf16.mxu1 %v6546_v6 }
 0x2bc   :  { %4721 = vmatpush1.bf16.msra.mxu0 %v6472_v14  ;;  %4753 = vmatpush1.bf16.msra.mxu1 %v6549_v13 }
 0x2bd   :  { %4723 = vmatprep.subr.bf16.mxu0 %v6475_v15  ;;  %4755 = vmatprep.subr.bf16.mxu1 %v6552_v16 }
 0x2c0   :  { %4725 = vmatpush1.bf16.msra.mxu0 %v6483_v22  ;;  %4757 = vmatpush1.bf16.msra.mxu1 %v6555_v24 }
 0x2c1   :  { %4727 = vmatprep.subr.bf16.mxu0 %v6486_v23  ;;  %4759 = vmatprep.subr.bf16.mxu1 %v6558_v25 }
 0x2c4   :  { %4729 = vmatpush1.bf16.msra.mxu0 %v6493_v29  ;;  %4761 = vmatpush1.bf16.msra.mxu1 %v6561_v28 }
 0x2c5   :  { %4763 = vmatprep.subr.bf16.mxu0 %v6424_v20  ;;  %4795 = vmatprep.subr.bf16.mxu1 %v6496_v30 }
 0x37a   :  { %v953_v50 = vpop.f32.mrb[4].mxu0  ;;  %v1024_v17 = vpop.f32.mrb[4].mxu1 }
 0x37b   :  { %v5752_v18 = vadd.f32 %v953_v50, %v6593_v42  ;;  %v955_v19 = vpop.f32.mrb[5].mxu0  ;;  %v1026_v21 = vpop.f32.mrb[5].mxu1  ;;  %v5770_v48 = vadd.f32 %v1024_v17, %v6605_v10 }
 0x37c   :  { %v5753_v26 = vadd.f32 %v955_v19, %v6597_v43  ;;  %v5771_v34 = vadd.f32 %v1026_v21, %v6609_v12 }
 0x37d   :  { %v4308_v27 = vmul.f32 -1.442695, %v5752_v18 }
 0x37e   :  { %v4309_v33 = vmul.f32 -1.442695, %v5753_v26  ;;  %v4310_v35 = vmul.f32 -1.442695, %v5771_v34 }
 0x37f   :  { %5934 = vpow2.f32 %v4308_v27 }
 0x380   :  { %5936 = vpow2.f32 %v4309_v33 }
 0x381   :  { %5938 = vpow2.f32 %v4310_v35 }
 0x382   :  { %5940 = vtanh.f32 %v5770_v48 }
 0x389   :  { %v5935_v49 = vpop.eup %5934 }
 0x38a   :  { %v5937_v40 = vpop.eup %5936  ;;  %v1036_v51 = vadd.f32 1.0, %v5935_v49 }
 0x38b   :  { %v1042_v54 = vadd.f32 1.0, %v5937_v40  ;;  %v5939_v58 = vpop.eup %5938 }
 0x38c   :  { %5942 = vrcp.f32 %v1036_v51  ;;  %v5941_v2 = vpop.eup %5940  ;;  %v1049_v18 = vadd.f32 1.0, %v5939_v58 }
 0x38d   :  { %5944 = vrcp.f32 %v1042_v54 }
 0x38e   :  { %5946 = vrcp.f32 %v1049_v18 }
 0x396   :  { %v5943_v59 = vpop.eup %5942 }
 0x397   :  { %v5945_v9 = vpop.eup %5944  ;;  %v1053_v50 = vmul.f32 %v5943_v59, %v5941_v2 }
 0x398   :  { %v1052_v19 = vmul.f32 %v5945_v9, %v6659_v4  ;;  %v5947_v17 = vpop.eup %5946 }
 0x39a   :  { %v6705_v21 = vadd.f32 %v1053_v50, %v1052_v19 }
 0x39c   :  { %5948 = vtanh.f32 %v6705_v21 }
 0x3a6   :  { %v5949_v26 = vpop.eup %5948 }
 0x3a7   :  { %v6708_v27 = vmul.f32 %v5949_v26, %v5947_v17 }
 0x3a9   :  { %1129 = vmatmul.mubr.f32.vlgmr.msra.gmra.mrb[6].mxu0 %v6708_v27  ;;  %1200 = vmatmul.mubr.f32.vlgmr.msra.gmra.mrb[6].mxu1 %v6708_v27 }
 0x3aa   :  { %4765 = vmatpush1.bf16.msra.mxu0 %v6428_v31  ;;  %4797 = vmatpush1.bf16.msra.mxu1 %v6508_v38 }
 0x3ab   :  { %4767 = vmatprep.subr.bf16.mxu0 %v6431_v32  ;;  %4799 = vmatprep.subr.bf16.mxu1 %v6510_v39 }
 0x3ac   :  { %1305 = vmatprep.mubr.f32.mxu0 %v6316_v0  ;;  %1376 = vmatprep.mubr.f32.mxu1 %v6316_v0 }
 0x3ae   :  { %4769 = vmatpush1.bf16.msra.mxu0 %v6438_v44  ;;  %4801 = vmatpush1.bf16.msra.mxu1 %v6517_v46 }
 0x3af   :  { %4771 = vmatprep.subr.bf16.mxu0 %v6441_v45  ;;  %4803 = vmatprep.subr.bf16.mxu1 %v6521_v47 }
 0x3b2   :  { %4773 = vmatpush1.bf16.msra.mxu0 %v6446_v55  ;;  %4805 = vmatpush1.bf16.msra.mxu1 %v6527_v52 }
 0x3b3   :  { %4775 = vmatprep.subr.bf16.mxu0 %v6449_v56  ;;  %4807 = vmatprep.subr.bf16.mxu1 %v6530_v53 }
 0x3b6   :  { %4777 = vmatpush1.bf16.msra.mxu0 %v6453_v63  ;;  %4809 = vmatpush1.bf16.msra.mxu1 %v6536_v60 }
 0x3b7   :  { %4779 = vmatprep.subr.bf16.mxu0 %v6456_v1  ;;  %4811 = vmatprep.subr.bf16.mxu1 %v6539_v61 }
 0x3ba   :  { %4781 = vmatpush1.bf16.msra.mxu0 %v6461_v7  ;;  %4813 = vmatpush1.bf16.msra.mxu1 %v6543_v5 }
 0x3bb   :  { %4783 = vmatprep.subr.bf16.mxu0 %v6464_v8  ;;  %4815 = vmatprep.subr.bf16.mxu1 %v6546_v6 }
 0x3be   :  { %4785 = vmatpush1.bf16.msra.mxu0 %v6472_v14  ;;  %4817 = vmatpush1.bf16.msra.mxu1 %v6549_v13 }
 0x3bf   :  { %4787 = vmatprep.subr.bf16.mxu0 %v6475_v15  ;;  %4819 = vmatprep.subr.bf16.mxu1 %v6552_v16 }
 0x3c2   :  { %4789 = vmatpush1.bf16.msra.mxu0 %v6483_v22  ;;  %4821 = vmatpush1.bf16.msra.mxu1 %v6555_v24 }
 0x3c3   :  { %4791 = vmatprep.subr.bf16.mxu0 %v6486_v23  ;;  %4823 = vmatprep.subr.bf16.mxu1 %v6558_v25 }
 0x3c6   :  { %4793 = vmatpush1.bf16.msra.mxu0 %v6493_v29  ;;  %4825 = vmatpush1.bf16.msra.mxu1 %v6561_v28 }
 0x3c7   :  { %4827 = vmatprep.subr.bf16.mxu0 %v6424_v20  ;;  %4859 = vmatprep.subr.bf16.mxu1 %v6496_v30 }
 0x47c   :  { %v1130_v4 = vpop.f32.mrb[6].mxu0  ;;  %v1201_v33 = vpop.f32.mrb[6].mxu1 }
 0x47d   :  { %v5754_v34 = vadd.f32 %v1130_v4, %v6593_v42  ;;  %v1132_v35 = vpop.f32.mrb[7].mxu0  ;;  %v1203_v48 = vpop.f32.mrb[7].mxu1  ;;  %v5772_v2 = vadd.f32 %v1201_v33, %v6605_v10 }
 0x47e   :  { %v5755_v49 = vadd.f32 %v1132_v35, %v6597_v43  ;;  %v5773_v54 = vadd.f32 %v1203_v48, %v6609_v12 }
 0x47f   :  { %v4311_v40 = vmul.f32 -1.442695, %v5754_v34 }
 0x480   :  { %v4312_v51 = vmul.f32 -1.442695, %v5755_v49  ;;  %v4313_v58 = vmul.f32 -1.442695, %v5773_v54 }
 0x481   :  { %5950 = vpow2.f32 %v4311_v40 }
 0x482   :  { %5952 = vpow2.f32 %v4312_v51 }
 0x483   :  { %5954 = vpow2.f32 %v4313_v58 }
 0x484   :  { %5956 = vtanh.f32 %v5772_v2 }
 0x48b   :  { %v5951_v59 = vpop.eup %5950 }
 0x48c   :  { %v5953_v9 = vpop.eup %5952  ;;  %v1213_v50 = vadd.f32 1.0, %v5951_v59 }
 0x48d   :  { %v1219_v18 = vadd.f32 1.0, %v5953_v9  ;;  %v5955_v19 = vpop.eup %5954 }
 0x48e   :  { %5958 = vrcp.f32 %v1213_v50  ;;  %v5957_v17 = vpop.eup %5956  ;;  %v1226_v35 = vadd.f32 1.0, %v5955_v19 }
 0x48f   :  { %5960 = vrcp.f32 %v1219_v18 }
 0x490   :  { %5962 = vrcp.f32 %v1226_v35 }
 0x498   :  { %v5959_v26 = vpop.eup %5958 }
 0x499   :  { %v5961_v4 = vpop.eup %5960  ;;  %v1230_v34 = vmul.f32 %v5959_v26, %v5957_v17 }
 0x49a   :  { %v1229_v49 = vmul.f32 %v5961_v4, %v6705_v21  ;;  %v5963_v33 = vpop.eup %5962 }
 0x49c   :  { %v6751_v48 = vadd.f32 %v1230_v34, %v1229_v49 }
 0x49e   :  { %5964 = vtanh.f32 %v6751_v48 }
 0x4a8   :  { %v5965_v40 = vpop.eup %5964 }
 0x4a9   :  { %v6754_v51 = vmul.f32 %v5965_v40, %v5963_v33 }
 0x4ab   :  { %1306 = vmatmul.mubr.f32.vlgmr.msra.gmra.mrb[8].mxu0 %v6754_v51  ;;  %1377 = vmatmul.mubr.f32.vlgmr.msra.gmra.mrb[8].mxu1 %v6754_v51 }
 0x4ac   :  { %4829 = vmatpush1.bf16.msra.mxu0 %v6428_v31  ;;  %4861 = vmatpush1.bf16.msra.mxu1 %v6508_v38 }
 0x4ad   :  { %4831 = vmatprep.subr.bf16.mxu0 %v6431_v32  ;;  %4863 = vmatprep.subr.bf16.mxu1 %v6510_v39 }
 0x4ae   :  { %1482 = vmatprep.mubr.f32.mxu0 %v6316_v0  ;;  %1553 = vmatprep.mubr.f32.mxu1 %v6316_v0 }
 0x4b0   :  { %4833 = vmatpush1.bf16.msra.mxu0 %v6438_v44  ;;  %4865 = vmatpush1.bf16.msra.mxu1 %v6517_v46 }
 0x4b1   :  { %4835 = vmatprep.subr.bf16.mxu0 %v6441_v45  ;;  %4867 = vmatprep.subr.bf16.mxu1 %v6521_v47 }
 0x4b4   :  { %4837 = vmatpush1.bf16.msra.mxu0 %v6446_v55  ;;  %4869 = vmatpush1.bf16.msra.mxu1 %v6527_v52 }
 0x4b5   :  { %4839 = vmatprep.subr.bf16.mxu0 %v6449_v56  ;;  %4871 = vmatprep.subr.bf16.mxu1 %v6530_v53 }
 0x4b8   :  { %4841 = vmatpush1.bf16.msra.mxu0 %v6453_v63  ;;  %4873 = vmatpush1.bf16.msra.mxu1 %v6536_v60 }
 0x4b9   :  { %4843 = vmatprep.subr.bf16.mxu0 %v6456_v1  ;;  %4875 = vmatprep.subr.bf16.mxu1 %v6539_v61 }
 0x4bc   :  { %4845 = vmatpush1.bf16.msra.mxu0 %v6461_v7  ;;  %4877 = vmatpush1.bf16.msra.mxu1 %v6543_v5 }
 0x4bd   :  { %4847 = vmatprep.subr.bf16.mxu0 %v6464_v8  ;;  %4879 = vmatprep.subr.bf16.mxu1 %v6546_v6 }
 0x4c0   :  { %4849 = vmatpush1.bf16.msra.mxu0 %v6472_v14  ;;  %4881 = vmatpush1.bf16.msra.mxu1 %v6549_v13 }
 0x4c1   :  { %4851 = vmatprep.subr.bf16.mxu0 %v6475_v15  ;;  %4883 = vmatprep.subr.bf16.mxu1 %v6552_v16 }
 0x4c4   :  { %4853 = vmatpush1.bf16.msra.mxu0 %v6483_v22  ;;  %4885 = vmatpush1.bf16.msra.mxu1 %v6555_v24 }
 0x4c5   :  { %4855 = vmatprep.subr.bf16.mxu0 %v6486_v23  ;;  %4887 = vmatprep.subr.bf16.mxu1 %v6558_v25 }
 0x4c8   :  { %4857 = vmatpush1.bf16.msra.mxu0 %v6493_v29  ;;  %4889 = vmatpush1.bf16.msra.mxu1 %v6561_v28 }
 0x4c9   :  { %4891 = vmatprep.subr.bf16.mxu0 %v6424_v20  ;;  %4923 = vmatprep.subr.bf16.mxu1 %v6496_v30 }
 0x57e   :  { %v1307_v21 = vpop.f32.mrb[8].mxu0  ;;  %v1378_v54 = vpop.f32.mrb[8].mxu1 }
 0x57f   :  { %v5756_v58 = vadd.f32 %v1307_v21, %v6593_v42  ;;  %v1309_v2 = vpop.f32.mrb[9].mxu0  ;;  %v1380_v59 = vpop.f32.mrb[9].mxu1  ;;  %v5774_v26 = vadd.f32 %v1378_v54, %v6605_v10 }
 0x580   :  { %v5757_v9 = vadd.f32 %v1309_v2, %v6597_v43  ;;  %v5775_v19 = vadd.f32 %v1380_v59, %v6609_v12 }
 0x581   :  { %v4314_v50 = vmul.f32 -1.442695, %v5756_v58 }
 0x582   :  { %v4315_v18 = vmul.f32 -1.442695, %v5757_v9  ;;  %v4316_v17 = vmul.f32 -1.442695, %v5775_v19 }
 0x583   :  { %5966 = vpow2.f32 %v4314_v50 }
 0x584   :  { %5968 = vpow2.f32 %v4315_v18 }
 0x585   :  { %5970 = vpow2.f32 %v4316_v17 }
 0x586   :  { %5972 = vtanh.f32 %v5774_v26 }
 0x58d   :  { %v5967_v4 = vpop.eup %5966 }
 0x58e   :  { %v5969_v34 = vpop.eup %5968  ;;  %v1390_v35 = vadd.f32 1.0, %v5967_v4 }
 0x58f   :  { %v1396_v49 = vadd.f32 1.0, %v5969_v34  ;;  %v5971_v33 = vpop.eup %5970 }
 0x590   :  { %5974 = vrcp.f32 %v1390_v35  ;;  %v5973_v40 = vpop.eup %5972  ;;  %v1403_v9 = vadd.f32 1.0, %v5971_v33 }
 0x591   :  { %5976 = vrcp.f32 %v1396_v49 }
 0x592   :  { %5978 = vrcp.f32 %v1403_v9 }
 0x59a   :  { %v5975_v21 = vpop.eup %5974 }
 0x59b   :  { %v5977_v58 = vpop.eup %5976  ;;  %v1407_v2 = vmul.f32 %v5975_v21, %v5973_v40 }
 0x59c   :  { %v1406_v50 = vmul.f32 %v5977_v58, %v6751_v48  ;;  %v5979_v54 = vpop.eup %5978 }
 0x59e   :  { %v6797_v59 = vadd.f32 %v1407_v2, %v1406_v50 }
 0x5a0   :  { %5980 = vtanh.f32 %v6797_v59 }
 0x5aa   :  { %v5981_v18 = vpop.eup %5980 }
 0x5ab   :  { %v6800_v19 = vmul.f32 %v5981_v18, %v5979_v54 }
 0x5ad   :  { %1483 = vmatmul.mubr.f32.vlgmr.msra.gmra.mrb[10].mxu0 %v6800_v19  ;;  %1554 = vmatmul.mubr.f32.vlgmr.msra.gmra.mrb[10].mxu1 %v6800_v19 }
 0x5ae   :  { %4893 = vmatpush1.bf16.msra.mxu0 %v6428_v31  ;;  %4925 = vmatpush1.bf16.msra.mxu1 %v6508_v38 }
 0x5af   :  { %4895 = vmatprep.subr.bf16.mxu0 %v6431_v32  ;;  %4927 = vmatprep.subr.bf16.mxu1 %v6510_v39 }
 0x5b0   :  { %1659 = vmatprep.mubr.f32.mxu0 %v6316_v0  ;;  %1730 = vmatprep.mubr.f32.mxu1 %v6316_v0 }
 0x5b2   :  { %4897 = vmatpush1.bf16.msra.mxu0 %v6438_v44  ;;  %4929 = vmatpush1.bf16.msra.mxu1 %v6517_v46 }
 0x5b3   :  { %4899 = vmatprep.subr.bf16.mxu0 %v6441_v45  ;;  %4931 = vmatprep.subr.bf16.mxu1 %v6521_v47 }
 0x5b6   :  { %4901 = vmatpush1.bf16.msra.mxu0 %v6446_v55  ;;  %4933 = vmatpush1.bf16.msra.mxu1 %v6527_v52 }
 0x5b7   :  { %4903 = vmatprep.subr.bf16.mxu0 %v6449_v56  ;;  %4935 = vmatprep.subr.bf16.mxu1 %v6530_v53 }
 0x5ba   :  { %4905 = vmatpush1.bf16.msra.mxu0 %v6453_v63  ;;  %4937 = vmatpush1.bf16.msra.mxu1 %v6536_v60 }
 0x5bb   :  { %4907 = vmatprep.subr.bf16.mxu0 %v6456_v1  ;;  %4939 = vmatprep.subr.bf16.mxu1 %v6539_v61 }
 0x5be   :  { %4909 = vmatpush1.bf16.msra.mxu0 %v6461_v7  ;;  %4941 = vmatpush1.bf16.msra.mxu1 %v6543_v5 }
 0x5bf   :  { %4911 = vmatprep.subr.bf16.mxu0 %v6464_v8  ;;  %4943 = vmatprep.subr.bf16.mxu1 %v6546_v6 }
 0x5c2   :  { %4913 = vmatpush1.bf16.msra.mxu0 %v6472_v14  ;;  %4945 = vmatpush1.bf16.msra.mxu1 %v6549_v13 }
 0x5c3   :  { %4915 = vmatprep.subr.bf16.mxu0 %v6475_v15  ;;  %4947 = vmatprep.subr.bf16.mxu1 %v6552_v16 }
 0x5c6   :  { %4917 = vmatpush1.bf16.msra.mxu0 %v6483_v22  ;;  %4949 = vmatpush1.bf16.msra.mxu1 %v6555_v24 }
 0x5c7   :  { %4919 = vmatprep.subr.bf16.mxu0 %v6486_v23  ;;  %4951 = vmatprep.subr.bf16.mxu1 %v6558_v25 }
 0x5ca   :  { %4921 = vmatpush1.bf16.msra.mxu0 %v6493_v29  ;;  %4953 = vmatpush1.bf16.msra.mxu1 %v6561_v28 }
 0x5cb   :  { %4955 = vmatprep.subr.bf16.mxu0 %v6424_v20  ;;  %4987 = vmatprep.subr.bf16.mxu1 %v6496_v30 }
 0x680   :  { %v1484_v48 = vpop.f32.mrb[10].mxu0  ;;  %v1555_v17 = vpop.f32.mrb[10].mxu1 }
 0x681   :  { %v5758_v26 = vadd.f32 %v1484_v48, %v6593_v42  ;;  %v1486_v4 = vpop.f32.mrb[11].mxu0  ;;  %v1557_v34 = vpop.f32.mrb[11].mxu1  ;;  %v5776_v58 = vadd.f32 %v1555_v17, %v6605_v10 }
 0x682   :  { %v5759_v35 = vadd.f32 %v1486_v4, %v6597_v43  ;;  %v5777_v40 = vadd.f32 %v1557_v34, %v6609_v12 }
 0x683   :  { %v4317_v49 = vmul.f32 -1.442695, %v5758_v26 }
 0x684   :  { %v4318_v33 = vmul.f32 -1.442695, %v5759_v35  ;;  %v4319_v21 = vmul.f32 -1.442695, %v5777_v40 }
 0x685   :  { %5982 = vpow2.f32 %v4317_v49 }
 0x686   :  { %5984 = vpow2.f32 %v4318_v33 }
 0x687   :  { %5986 = vpow2.f32 %v4319_v21 }
 0x688   :  { %5988 = vtanh.f32 %v5776_v58 }
 0x68f   :  { %v5983_v2 = vpop.eup %5982 }
 0x690   :  { %v5985_v9 = vpop.eup %5984  ;;  %v1567_v50 = vadd.f32 1.0, %v5983_v2 }
 0x691   :  { %v1573_v54 = vadd.f32 1.0, %v5985_v9  ;;  %v5987_v18 = vpop.eup %5986 }
 0x692   :  { %5990 = vrcp.f32 %v1567_v50  ;;  %v5989_v48 = vpop.eup %5988  ;;  %v1580_v49 = vadd.f32 1.0, %v5987_v18 }
 0x693   :  { %5992 = vrcp.f32 %v1573_v54 }
 0x694   :  { %5994 = vrcp.f32 %v1580_v49 }
 0x69c   :  { %v5991_v4 = vpop.eup %5990 }
 0x69d   :  { %v5993_v26 = vpop.eup %5992  ;;  %v1584_v35 = vmul.f32 %v5991_v4, %v5989_v48 }
 0x69e   :  { %v1583_v33 = vmul.f32 %v5993_v26, %v6797_v59  ;;  %v5995_v17 = vpop.eup %5994 }
 0x6a0   :  { %v6843_v34 = vadd.f32 %v1584_v35, %v1583_v33 }
 0x6a2   :  { %5996 = vtanh.f32 %v6843_v34 }
 0x6ac   :  { %v5997_v40 = vpop.eup %5996 }
 0x6ad   :  { %v6846_v21 = vmul.f32 %v5997_v40, %v5995_v17 }
 0x6af   :  { %1660 = vmatmul.mubr.f32.vlgmr.msra.gmra.mrb[12].mxu0 %v6846_v21  ;;  %1731 = vmatmul.mubr.f32.vlgmr.msra.gmra.mrb[12].mxu1 %v6846_v21 }
 0x6b0   :  { %4957 = vmatpush1.bf16.msra.mxu0 %v6428_v31  ;;  %4989 = vmatpush1.bf16.msra.mxu1 %v6508_v38 }
 0x6b1   :  { %4959 = vmatprep.subr.bf16.mxu0 %v6431_v32  ;;  %4991 = vmatprep.subr.bf16.mxu1 %v6510_v39 }
 0x6b2   :  { %1836 = vmatprep.mubr.f32.mxu0 %v6316_v0  ;;  %1907 = vmatprep.mubr.f32.mxu1 %v6316_v0 }
 0x6b4   :  { %4961 = vmatpush1.bf16.msra.mxu0 %v6438_v44  ;;  %4993 = vmatpush1.bf16.msra.mxu1 %v6517_v46 }
 0x6b5   :  { %4963 = vmatprep.subr.bf16.mxu0 %v6441_v45  ;;  %4995 = vmatprep.subr.bf16.mxu1 %v6521_v47 }
 0x6b8   :  { %4965 = vmatpush1.bf16.msra.mxu0 %v6446_v55  ;;  %4997 = vmatpush1.bf16.msra.mxu1 %v6527_v52 }
 0x6b9   :  { %4967 = vmatprep.subr.bf16.mxu0 %v6449_v56  ;;  %4999 = vmatprep.subr.bf16.mxu1 %v6530_v53 }
 0x6bc   :  { %4969 = vmatpush1.bf16.msra.mxu0 %v6453_v63  ;;  %5001 = vmatpush1.bf16.msra.mxu1 %v6536_v60 }
 0x6bd   :  { %4971 = vmatprep.subr.bf16.mxu0 %v6456_v1  ;;  %5003 = vmatprep.subr.bf16.mxu1 %v6539_v61 }
 0x6c0   :  { %4973 = vmatpush1.bf16.msra.mxu0 %v6461_v7  ;;  %5005 = vmatpush1.bf16.msra.mxu1 %v6543_v5 }
 0x6c1   :  { %4975 = vmatprep.subr.bf16.mxu0 %v6464_v8  ;;  %5007 = vmatprep.subr.bf16.mxu1 %v6546_v6 }
 0x6c4   :  { %4977 = vmatpush1.bf16.msra.mxu0 %v6472_v14  ;;  %5009 = vmatpush1.bf16.msra.mxu1 %v6549_v13 }
 0x6c5   :  { %4979 = vmatprep.subr.bf16.mxu0 %v6475_v15  ;;  %5011 = vmatprep.subr.bf16.mxu1 %v6552_v16 }
 0x6c8   :  { %4981 = vmatpush1.bf16.msra.mxu0 %v6483_v22  ;;  %5013 = vmatpush1.bf16.msra.mxu1 %v6555_v24 }
 0x6c9   :  { %4983 = vmatprep.subr.bf16.mxu0 %v6486_v23  ;;  %5015 = vmatprep.subr.bf16.mxu1 %v6558_v25 }
 0x6cc   :  { %4985 = vmatpush1.bf16.msra.mxu0 %v6493_v29  ;;  %5017 = vmatpush1.bf16.msra.mxu1 %v6561_v28 }
 0x6cd   :  { %5019 = vmatprep.subr.bf16.mxu0 %v6424_v20  ;;  %5051 = vmatprep.subr.bf16.mxu1 %v6496_v30 }
 0x782   :  { %v1661_v59 = vpop.f32.mrb[12].mxu0  ;;  %v1732_v58 = vpop.f32.mrb[12].mxu1 }
 0x783   :  { %v5760_v2 = vadd.f32 %v1661_v59, %v6593_v42  ;;  %v1663_v9 = vpop.f32.mrb[13].mxu0  ;;  %v1734_v50 = vpop.f32.mrb[13].mxu1  ;;  %v5778_v35 = vadd.f32 %v1732_v58, %v6605_v10 }
 0x784   :  { %v5761_v54 = vadd.f32 %v1663_v9, %v6597_v43  ;;  %v5779_v4 = vadd.f32 %v1734_v50, %v6609_v12 }
 0x785   :  { %v4320_v18 = vmul.f32 -1.442695, %v5760_v2 }
 0x786   :  { %v4321_v48 = vmul.f32 -1.442695, %v5761_v54  ;;  %v4322_v26 = vmul.f32 -1.442695, %v5779_v4 }
 0x787   :  { %5998 = vpow2.f32 %v4320_v18 }
 0x788   :  { %6000 = vpow2.f32 %v4321_v48 }
 0x789   :  { %6002 = vpow2.f32 %v4322_v26  ;;  %v2198_v26 = vld [vmem:[#allocation7 + $0x210] sm:$0xff] }
 0x78a   :  { %6004 = vtanh.f32 %v5778_v35  ;;  %v2202_v35 = vld [vmem:[#allocation7 + $0x230] sm:$0xff] }
 0x791   :  { %v5999_v20 = vpop.eup %5998 }
 0x792   :  { %v6001_v49 = vpop.eup %6000  ;;  %v1744_v30 = vadd.f32 1.0, %v5999_v20  ;;  %v2205_v20 = vld [vmem:[#allocation7 + $0x248] sm:$0xff] }
 0x793   :  { %v1750_v33 = vadd.f32 1.0, %v6001_v49  ;;  %v6003_v17 = vpop.eup %6002  ;;  %v2209_v49 = vld [vmem:[#allocation7 + $0x268] sm:$0xff] }
 0x794   :  { %6006 = vrcp.f32 %v1744_v30  ;;  %v6005_v40 = vpop.eup %6004  ;;  %v1757_v54 = vadd.f32 1.0, %v6003_v17  ;;  %v2207_v30 = vld [vmem:[#allocation7 + $0x258] sm:$0xff] }
 0x795   :  { %6008 = vrcp.f32 %v1750_v33  ;;  %v2211_v33 = vld [vmem:[#allocation7 + $0x278] sm:$0xff] }
 0x796   :  { %6010 = vrcp.f32 %v1757_v54  ;;  %v2208_v54 = vld [vmem:[#allocation7 + $0x260] sm:$0xff] }
 0x79e   :  { %v6007_v59 = vpop.eup %6006 }
 0x79f   :  { %v6009_v2 = vpop.eup %6008  ;;  %v1761_v9 = vmul.f32 %v6007_v59, %v6005_v40 }
 0x7a0   :  { %v1760_v18 = vmul.f32 %v6009_v2, %v6843_v34  ;;  %v6011_v58 = vpop.eup %6010  ;;  %v2200_v34 = vld [vmem:[#allocation7 + $0x220] sm:$0xff]  ;;  %v5116_v2 = vpack.c.bf16 %v2202_v35, %v2198_v26 }
 0x7a1   :  { %v2228_v35 = vld [vmem:[#allocation7 + $0x300] sm:$0xff] }
 0x7a2   :  { %v6889_v50 = vadd.f32 %v1761_v9, %v1760_v18  ;;  %v2204_v9 = vld [vmem:[#allocation7 + $0x240] sm:$0xff] }
 0x7a4   :  { %6012 = vtanh.f32 %v6889_v50 }
 0x7ae   :  { %v6013_v48 = vpop.eup %6012 }
 0x7af   :  { %v6892_v4 = vmul.f32 %v6013_v48, %v6011_v58  ;;  %v5118_v58 = vpack.c.bf16 %v2211_v33, %v2207_v30  ;;  %v2206_v48 = vld [vmem:[#allocation7 + $0x250] sm:$0xff] }
 0x7b0   :  { %v2230_v33 = vld [vmem:[#allocation7 + $0x310] sm:$0xff] }
 0x7b1   :  { %1837 = vmatmul.mubr.f32.vlgmr.msra.gmra.mrb[14].mxu0 %v6892_v4  ;;  %1908 = vmatmul.mubr.f32.vlgmr.msra.gmra.mrb[14].mxu1 %v6892_v4 }
 0x7b2   :  { %5021 = vmatpush1.bf16.msra.mxu0 %v6428_v31  ;;  %5053 = vmatpush1.bf16.msra.mxu1 %v6508_v38  ;;  %v2197_v31 = vld [vmem:[#allocation7 + $0x208] sm:$0xff] }
 0x7b3   :  { %5023 = vmatprep.subr.bf16.mxu0 %v6431_v32  ;;  %5055 = vmatprep.subr.bf16.mxu1 %v6510_v39  ;;  %v2201_v32 = vld [vmem:[#allocation7 + $0x228] sm:$0xff] }
 0x7b4   :  { %2013 = vmatprep.mubr.f32.mxu0 %v6316_v0  ;;  %2084 = vmatprep.mubr.f32.mxu1 %v6316_v0 }
 0x7b6   :  { %5025 = vmatpush1.bf16.msra.mxu0 %v6438_v44  ;;  %5057 = vmatpush1.bf16.msra.mxu1 %v6517_v46  ;;  %v2199_v44 = vld [vmem:[#allocation7 + $0x218] sm:$0xff] }
 0x7b7   :  { %5027 = vmatprep.subr.bf16.mxu0 %v6441_v45  ;;  %5059 = vmatprep.subr.bf16.mxu1 %v6521_v47  ;;  %v5082_v45 = vpack.c.bf16 %v2201_v32, %v2197_v31  ;;  %v2210_v31 = vld [vmem:[#allocation7 + $0x270] sm:$0xff]  ;;  %v2213_v32 = vld [vmem:[#allocation7 + $0x288] sm:$0xff] }
 0x7ba   :  { %5029 = vmatpush1.bf16.msra.mxu0 %v6446_v55  ;;  %5061 = vmatpush1.bf16.msra.mxu1 %v6527_v52  ;;  %v2203_v55 = vld [vmem:[#allocation7 + $0x238] sm:$0xff] }
 0x7bb   :  { %5031 = vmatprep.subr.bf16.mxu0 %v6449_v56  ;;  %5063 = vmatprep.subr.bf16.mxu1 %v6530_v53  ;;  %v5114_v56 = vpack.c.bf16 %v2203_v55, %v2199_v44  ;;  %v2217_v44 = vld [vmem:[#allocation7 + $0x2a8] sm:$0xff]  ;;  %v2219_v55 = vld [vmem:[#allocation7 + $0x2b8] sm:$0xff] }
 0x7be   :  { %5033 = vmatpush1.bf16.msra.mxu0 %v6453_v63  ;;  %5065 = vmatpush1.bf16.msra.mxu1 %v6536_v60 }
 0x7bf   :  { %5035 = vmatprep.subr.bf16.mxu0 %v6456_v1  ;;  %5067 = vmatprep.subr.bf16.mxu1 %v6539_v61 }
 0x7c2   :  { %5037 = vmatpush1.bf16.msra.mxu0 %v6461_v7  ;;  %5069 = vmatpush1.bf16.msra.mxu1 %v6543_v5 }
 0x7c3   :  { %5039 = vmatprep.subr.bf16.mxu0 %v6464_v8  ;;  %5071 = vmatprep.subr.bf16.mxu1 %v6546_v6 }
 0x7c6   :  { %5041 = vmatpush1.bf16.msra.mxu0 %v6472_v14  ;;  %5073 = vmatpush1.bf16.msra.mxu1 %v6549_v13 }
 0x7c7   :  { %5043 = vmatprep.subr.bf16.mxu0 %v6475_v15  ;;  %5075 = vmatprep.subr.bf16.mxu1 %v6552_v16 }
 0x7ca   :  { %5045 = vmatpush1.bf16.msra.mxu0 %v6483_v22  ;;  %5077 = vmatpush1.bf16.msra.mxu1 %v6555_v24 }
 0x7cb   :  { %5047 = vmatprep.subr.bf16.mxu0 %v6486_v23  ;;  %5079 = vmatprep.subr.bf16.mxu1 %v6558_v25 }
 0x7ce   :  { %5049 = vmatpush1.bf16.msra.mxu0 %v6493_v29  ;;  %5081 = vmatpush1.bf16.msra.mxu1 %v6561_v28  ;;  %v2196_v28 = vld [vmem:[#allocation7 + $0x200] sm:$0xff] }
 0x7cf   :  { %5083 = vmatprep.subr.bf16.mxu0 %v5082_v45  ;;  %5115 = vmatprep.subr.bf16.mxu1 %v5114_v56  ;;  %v5084_v59 = vpack.c.bf16 %v2200_v34, %v2196_v28  ;;  %v2215_v45 = vld [vmem:[#allocation7 + $0x298] sm:$0xff]  ;;  %v5088_v56 = vpack.c.bf16 %v2208_v54, %v2204_v9 }
 0x7d0   :  { %v2235_v28 = vld [vmem:[#allocation7 + $0x338] sm:$0xff] }
 0x7d1   :  { %v2243_v9 = vld [vmem:[#allocation7 + $0x378] sm:$0xff] }
 0x884   :  { %v1838_v63 = vpop.f32.mrb[14].mxu0  ;;  %v1909_v1 = vpop.f32.mrb[14].mxu1 }
 0x885   :  { %v5762_v7 = vadd.f32 %v1838_v63, %v6593_v42  ;;  %v1840_v8 = vpop.f32.mrb[15].mxu0  ;;  %v1911_v14 = vpop.f32.mrb[15].mxu1  ;;  %v5780_v39 = vadd.f32 %v1909_v1, %v6605_v10  ;;  %v5120_v63 = vpack.c.bf16 %v2210_v31, %v2206_v48  ;;  %v2212_v1 = vld [vmem:[#allocation7 + $0x280] sm:$0xff] }
 0x886   :  { %v5763_v15 = vadd.f32 %v1840_v8, %v6597_v43  ;;  %v5781_v29 = vadd.f32 %v1911_v14, %v6609_v12  ;;  %v5090_v8 = vpack.c.bf16 %v2217_v44, %v2213_v32  ;;  %v5122_v14 = vpack.c.bf16 %v2219_v55, %v2215_v45  ;;  %v2240_v48 = vld [vmem:[#allocation7 + $0x360] sm:$0xff]  ;;  %v2238_v44 = vld [vmem:[#allocation7 + $0x350] sm:$0xff]  ;;  %v2245_v55 = vld [vmem:[#allocation7 + $0x388] sm:$0xff] }
 0x887   :  { %v4323_v22 = vmul.f32 -1.442695, %v5762_v7  ;;  %v2216_v7 = vld [vmem:[#allocation7 + $0x2a0] sm:$0xff]  ;;  %v2242_v45 = vld [vmem:[#allocation7 + $0x370] sm:$0xff] }
 0x888   :  { %v4324_v23 = vmul.f32 -1.442695, %v5763_v15  ;;  %v4325_v38 = vmul.f32 -1.442695, %v5781_v29  ;;  %v2214_v15 = vld [vmem:[#allocation7 + $0x290] sm:$0xff]  ;;  %v2225_v29 = vld [vmem:[#allocation7 + $0x2e8] sm:$0xff] }
 0x889   :  { %6014 = vpow2.f32 %v4323_v22  ;;  %v2218_v22 = vld [vmem:[#allocation7 + $0x2b0] sm:$0xff] }
 0x88a   :  { %6016 = vpow2.f32 %v4324_v23  ;;  %v2221_v23 = vld [vmem:[#allocation7 + $0x2c8] sm:$0xff] }
 0x88b   :  { %6018 = vpow2.f32 %v4325_v38  ;;  %v2223_v38 = vld [vmem:[#allocation7 + $0x2d8] sm:$0xff] }
 0x88c   :  { %6020 = vtanh.f32 %v5780_v39  ;;  %v2227_v39 = vld [vmem:[#allocation7 + $0x2f8] sm:$0xff] }
 0x893   :  { %v6015_v46 = vpop.eup %6014 }
 0x894   :  { %v6017_v47 = vpop.eup %6016  ;;  %v1921_v52 = vadd.f32 1.0, %v6015_v46  ;;  %v5092_v46 = vpack.c.bf16 %v2216_v7, %v2212_v1  ;;  %v2251_v1 = vld [vmem:[#allocation7 + $0x3b8] sm:$0xff] }
 0x895   :  { %v1927_v53 = vadd.f32 1.0, %v6017_v47  ;;  %v6019_v60 = vpop.eup %6018  ;;  %v5124_v47 = vpack.c.bf16 %v2218_v22, %v2214_v15  ;;  %v2248_v15 = vld [vmem:[#allocation7 + $0x3a0] sm:$0xff] }
 0x896   :  { %6022 = vrcp.f32 %v1921_v52  ;;  %v6021_v61 = vpop.eup %6020  ;;  %v1934_v16 = vadd.f32 1.0, %v6019_v60  ;;  %v2220_v52 = vld [vmem:[#allocation7 + $0x2c0] sm:$0xff]  ;;  %v5094_v60 = vpack.c.bf16 %v2225_v29, %v2221_v23  ;;  %v2246_v29 = vld [vmem:[#allocation7 + $0x390] sm:$0xff] }
 0x897   :  { %6024 = vrcp.f32 %v1927_v53  ;;  %v2224_v53 = vld [vmem:[#allocation7 + $0x2e0] sm:$0xff] }
 0x898   :  { %6026 = vrcp.f32 %v1934_v16  ;;  %v2233_v16 = vld [vmem:[#allocation7 + $0x328] sm:$0xff]  ;;  %v5096_v34 = vpack.c.bf16 %v2224_v53, %v2220_v52  ;;  %v2259_v52 = vld [vmem:[#allocation7 + $0x3f8] sm:$0xff] }
 0x8a0   :  { %v6023_v5 = vpop.eup %6022 }
 0x8a1   :  { %v6025_v6 = vpop.eup %6024  ;;  %v1938_v13 = vmul.f32 %v6023_v5, %v6021_v61  ;;  %v5126_v61 = vpack.c.bf16 %v2227_v39, %v2223_v38  ;;  %v2222_v5 = vld [vmem:[#allocation7 + $0x2d0] sm:$0xff]  ;;  %v2253_v39 = vld [vmem:[#allocation7 + $0x3c8] sm:$0xff] }
 0x8a2   :  { %v1937_v24 = vmul.f32 %v6025_v6, %v6889_v50  ;;  %v6027_v17 = vpop.eup %6026  ;;  %v5086_v50 = vpack.c.bf16 %v2209_v49, %v2205_v20  ;;  %v2226_v6 = vld [vmem:[#allocation7 + $0x2f0] sm:$0xff]  ;;  %v2232_v20 = vld [vmem:[#allocation7 + $0x320] sm:$0xff] }
 0x8a3   :  { %v5128_v26 = vpack.c.bf16 %v2226_v6, %v2222_v5  ;;  %v5100_v54 = vpack.c.bf16 %v2232_v20, %v2228_v35  ;;  %v2250_v38 = vld [vmem:[#allocation7 + $0x3b0] sm:$0xff] }
 0x8a4   :  { %v6933_v25 = vadd.f32 %v1938_v13, %v1937_v24  ;;  %v2229_v13 = vld [vmem:[#allocation7 + $0x308] sm:$0xff]  ;;  %v2231_v24 = vld [vmem:[#allocation7 + $0x318] sm:$0xff]  ;;  %v2124_v20 = vld [vmem:[#allocation9 + $0x210] sm:$0xff] }
 0x8a5   :  { %v5098_v49 = vpack.c.bf16 %v2233_v16, %v2229_v13  ;;  %v5130_v30 = vpack.c.bf16 %v2235_v28, %v2231_v24  ;;  %v2256_v13 = vld [vmem:[#allocation7 + $0x3e0] sm:$0xff]  ;;  %v2254_v16 = vld [vmem:[#allocation7 + $0x3d0] sm:$0xff] }
 0x8a6   :  { %6028 = vtanh.f32 %v6933_v25  ;;  %v2258_v24 = vld [vmem:[#allocation7 + $0x3f0] sm:$0xff] }
 0x8b0   :  { %v6029_v40 = vpop.eup %6028 }
 0x8b1   :  { %v6936_v18 = vmul.f32 %v6029_v40, %v6027_v17  ;;  %v2234_v17 = vld [vmem:[#allocation7 + $0x330] sm:$0xff]  ;;  %v2237_v40 = vld [vmem:[#allocation7 + $0x348] sm:$0xff] }
 0x8b3   :  { %2014 = vmatmul.mubr.f32.vlgmr.msra.gmra.mrb[16].mxu0 %v6936_v18  ;;  %2085 = vmatmul.mubr.f32.vlgmr.msra.gmra.mrb[16].mxu1 %v6936_v18 }
 0x8b4   :  { %5085 = vmatpush1.bf16.msra.mxu0 %v5084_v59  ;;  %5117 = vmatpush1.bf16.msra.mxu1 %v5116_v2  ;;  %v2241_v59 = vld [vmem:[#allocation7 + $0x368] sm:$0xff]  ;;  %v2239_v2 = vld [vmem:[#allocation7 + $0x358] sm:$0xff] }
 0x8b5   :  { %5087 = vmatprep.subr.bf16.mxu0 %v5086_v50  ;;  %5119 = vmatprep.subr.bf16.mxu1 %v5118_v58  ;;  %v5132_v50 = vpack.c.bf16 %v2234_v17, %v2230_v33  ;;  %v2236_v58 = vld [vmem:[#allocation7 + $0x340] sm:$0xff]  ;;  %v5102_v31 = vpack.c.bf16 %v2241_v59, %v2237_v40  ;;  %v5134_v32 = vpack.c.bf16 %v2243_v9, %v2239_v2  ;;  %v2135_v33 = vld [vmem:[#allocation9 + $0x268] sm:$0xff]  ;;  %v2133_v17 = vld [vmem:[#allocation9 + $0x258] sm:$0xff] }
 0x8b6   :  { %2347 = vmatprep.mubr.f32.mxu0 %v6316_v0  ;;  %2466 = vmatprep.mubr.f32.mxu1 %v6316_v0  ;;  %v5104_v7 = vpack.c.bf16 %v2240_v48, %v2236_v58  ;;  %v2130_v59 = vld [vmem:[#allocation9 + $0x240] sm:$0xff]  ;;  %v2137_v9 = vld [vmem:[#allocation9 + $0x278] sm:$0xff]  ;;  %v2132_v58 = vld [vmem:[#allocation9 + $0x250] sm:$0xff] }
 0x8b7   :  { %v2134_v2 = vld [vmem:[#allocation9 + $0x260] sm:$0xff]  ;;  %v2136_v48 = vld [vmem:[#allocation9 + $0x270] sm:$0xff] }
 0x8b8   :  { %5089 = vmatpush1.bf16.msra.mxu0 %v5088_v56  ;;  %5121 = vmatpush1.bf16.msra.mxu1 %v5120_v63  ;;  %v2249_v56 = vld [vmem:[#allocation7 + $0x3a8] sm:$0xff]  ;;  %v2247_v63 = vld [vmem:[#allocation7 + $0x398] sm:$0xff] }
 0x8b9   :  { %5091 = vmatprep.subr.bf16.mxu0 %v5090_v8  ;;  %5123 = vmatprep.subr.bf16.mxu1 %v5122_v14  ;;  %v5136_v8 = vpack.c.bf16 %v2242_v45, %v2238_v44  ;;  %v2244_v14 = vld [vmem:[#allocation7 + $0x380] sm:$0xff]  ;;  %v5106_v22 = vpack.c.bf16 %v2249_v56, %v2245_v55  ;;  %v5138_v23 = vpack.c.bf16 %v2251_v1, %v2247_v63  ;;  %v2143_v44 = vld [vmem:[#allocation9 + $0x2a8] sm:$0xff]  ;;  %v2141_v45 = vld [vmem:[#allocation9 + $0x298] sm:$0xff] }
 0x8ba   :  { %v5108_v53 = vpack.c.bf16 %v2248_v15, %v2244_v14  ;;  %v2138_v56 = vld [vmem:[#allocation9 + $0x280] sm:$0xff]  ;;  %v2145_v1 = vld [vmem:[#allocation9 + $0x2b8] sm:$0xff]  ;;  %v2140_v14 = vld [vmem:[#allocation9 + $0x290] sm:$0xff] }
 0x8bb   :  { %v2142_v63 = vld [vmem:[#allocation9 + $0x2a0] sm:$0xff]  ;;  %v2144_v15 = vld [vmem:[#allocation9 + $0x2b0] sm:$0xff] }
 0x8bc   :  { %5093 = vmatpush1.bf16.msra.mxu0 %v5092_v46  ;;  %5125 = vmatpush1.bf16.msra.mxu1 %v5124_v47  ;;  %v2257_v46 = vld [vmem:[#allocation7 + $0x3e8] sm:$0xff]  ;;  %v2255_v47 = vld [vmem:[#allocation7 + $0x3d8] sm:$0xff] }
 0x8bd   :  { %5095 = vmatprep.subr.bf16.mxu0 %v5094_v60  ;;  %5127 = vmatprep.subr.bf16.mxu1 %v5126_v61  ;;  %v5140_v60 = vpack.c.bf16 %v2250_v38, %v2246_v29  ;;  %v2252_v61 = vld [vmem:[#allocation7 + $0x3c0] sm:$0xff]  ;;  %v5110_v5 = vpack.c.bf16 %v2257_v46, %v2253_v39  ;;  %v5142_v6 = vpack.c.bf16 %v2259_v52, %v2255_v47  ;;  %v2151_v29 = vld [vmem:[#allocation9 + $0x2e8] sm:$0xff]  ;;  %v2149_v38 = vld [vmem:[#allocation9 + $0x2d8] sm:$0xff] }
 0x8be   :  { %v5112_v28 = vpack.c.bf16 %v2256_v13, %v2252_v61  ;;  %v2146_v46 = vld [vmem:[#allocation9 + $0x2c0] sm:$0xff]  ;;  %v2153_v52 = vld [vmem:[#allocation9 + $0x2f8] sm:$0xff]  ;;  %v2148_v61 = vld [vmem:[#allocation9 + $0x2d0] sm:$0xff] }
 0x8bf   :  { %v2150_v47 = vld [vmem:[#allocation9 + $0x2e0] sm:$0xff] }
 0x8c0   :  { %5097 = vmatpush1.bf16.msra.mxu0 %v5096_v34  ;;  %5129 = vmatpush1.bf16.msra.mxu1 %v5128_v26  ;;  %v5144_v34 = vpack.c.bf16 %v2258_v24, %v2254_v16  ;;  %v2159_v16 = vld [vmem:[#allocation9 + $0x328] sm:$0xff]  ;;  %v2154_v24 = vld [vmem:[#allocation9 + $0x300] sm:$0xff] }
 0x8c1   :  { %5099 = vmatprep.subr.bf16.mxu0 %v5098_v49  ;;  %5131 = vmatprep.subr.bf16.mxu1 %v5130_v30  ;;  %v2128_v49 = vld [vmem:[#allocation9 + $0x230] sm:$0xff]  ;;  %v2131_v30 = vld [vmem:[#allocation9 + $0x248] sm:$0xff] }
 0x8c2   :  { %v6985_v40 = vpack.c.bf16 %v2135_v33, %v2131_v30 }
 0x8c4   :  { %5101 = vmatpush1.bf16.msra.mxu0 %v5100_v54  ;;  %5133 = vmatpush1.bf16.msra.mxu1 %v5132_v50  ;;  %v6988_v54 = vpack.c.bf16 %v2134_v2, %v2130_v59  ;;  %v6990_v50 = vpack.c.bf16 %v2137_v9, %v2133_v17  ;;  %v2162_v17 = vld [vmem:[#allocation9 + $0x340] sm:$0xff]  ;;  %v2165_v2 = vld [vmem:[#allocation9 + $0x358] sm:$0xff] }
 0x8c5   :  { %5103 = vmatprep.subr.bf16.mxu0 %v5102_v31  ;;  %5135 = vmatprep.subr.bf16.mxu1 %v5134_v32  ;;  %v6993_v31 = vpack.c.bf16 %v2136_v48, %v2132_v58  ;;  %v2139_v32 = vld [vmem:[#allocation9 + $0x288] sm:$0xff]  ;;  %v2166_v59 = vld [vmem:[#allocation9 + $0x360] sm:$0xff]  ;;  %v2169_v9 = vld [vmem:[#allocation9 + $0x378] sm:$0xff] }
 0x8c6   :  { %v6997_v55 = vpack.c.bf16 %v2143_v44, %v2139_v32  ;;  %v2164_v58 = vld [vmem:[#allocation9 + $0x350] sm:$0xff]  ;;  %v7035_v32 = vpack.c.bf16 %v2166_v59, %v2162_v17  ;;  %v7037_v44 = vpack.c.bf16 %v2169_v9, %v2165_v2 }
 0x8c7   :  { %v2168_v48 = vld [vmem:[#allocation9 + $0x370] sm:$0xff] }
 0x8c8   :  { %5105 = vmatpush1.bf16.msra.mxu0 %v5104_v7  ;;  %5137 = vmatpush1.bf16.msra.mxu1 %v5136_v8  ;;  %v7000_v7 = vpack.c.bf16 %v2142_v63, %v2138_v56  ;;  %v7002_v8 = vpack.c.bf16 %v2145_v1, %v2141_v45  ;;  %v2171_v45 = vld [vmem:[#allocation9 + $0x388] sm:$0xff]  ;;  %v2170_v63 = vld [vmem:[#allocation9 + $0x380] sm:$0xff]  ;;  %v7041_v1 = vpack.c.bf16 %v2168_v48, %v2164_v58 }
 0x8c9   :  { %5107 = vmatprep.subr.bf16.mxu0 %v5106_v22  ;;  %5139 = vmatprep.subr.bf16.mxu1 %v5138_v23  ;;  %v7005_v22 = vpack.c.bf16 %v2144_v15, %v2140_v14  ;;  %v2147_v23 = vld [vmem:[#allocation9 + $0x2c8] sm:$0xff]  ;;  %v2174_v15 = vld [vmem:[#allocation9 + $0x3a0] sm:$0xff] }
 0x8ca   :  { %v7010_v39 = vpack.c.bf16 %v2151_v29, %v2147_v23  ;;  %v2175_v56 = vld [vmem:[#allocation9 + $0x3a8] sm:$0xff]  ;;  %v2173_v23 = vld [vmem:[#allocation9 + $0x398] sm:$0xff] }
 0x8cb   :  { %v7043_v14 = vpack.c.bf16 %v2175_v56, %v2171_v45  ;;  %v2177_v29 = vld [vmem:[#allocation9 + $0x3b8] sm:$0xff] }
 0x8cc   :  { %5109 = vmatpush1.bf16.msra.mxu0 %v5108_v53  ;;  %5141 = vmatpush1.bf16.msra.mxu1 %v5140_v60  ;;  %v7012_v53 = vpack.c.bf16 %v2150_v47, %v2146_v46  ;;  %v7014_v60 = vpack.c.bf16 %v2153_v52, %v2149_v38  ;;  %v7046_v38 = vpack.c.bf16 %v2177_v29, %v2173_v23  ;;  %v2172_v46 = vld [vmem:[#allocation9 + $0x390] sm:$0xff] }
 0x8cd   :  { %5111 = vmatprep.subr.bf16.mxu0 %v5110_v5  ;;  %5143 = vmatprep.subr.bf16.mxu1 %v5142_v6  ;;  %v2152_v5 = vld [vmem:[#allocation9 + $0x2f0] sm:$0xff]  ;;  %v2155_v6 = vld [vmem:[#allocation9 + $0x308] sm:$0xff]  ;;  %v7049_v52 = vpack.c.bf16 %v2174_v15, %v2170_v63 }
 0x8ce   :  { %v7017_v13 = vpack.c.bf16 %v2152_v5, %v2148_v61  ;;  %v2176_v47 = vld [vmem:[#allocation9 + $0x3b0] sm:$0xff]  ;;  %v2179_v5 = vld [vmem:[#allocation9 + $0x3c8] sm:$0xff] }
 0x8cf   :  { %v7053_v61 = vpack.c.bf16 %v2176_v47, %v2172_v46 }
 0x8d0   :  { %5113 = vmatpush1.bf16.msra.mxu0 %v5112_v28  ;;  %5145 = vmatpush1.bf16.msra.mxu1 %v5144_v34  ;;  %v2158_v28 = vld [vmem:[#allocation9 + $0x320] sm:$0xff]  ;;  %v7021_v34 = vpack.c.bf16 %v2159_v16, %v2155_v6  ;;  %v2183_v6 = vld [vmem:[#allocation9 + $0x3e8] sm:$0xff]  ;;  %v2181_v16 = vld [vmem:[#allocation9 + $0x3d8] sm:$0xff] }
 0x8d3   :  { %2348 = vmatmul.mubr.f32.vlgmr.msra.gmra.mrb[18].mxu0 %v6616_v57  ;;  %2467 = vmatmul.mubr.f32.vlgmr.msra.gmra.mrb[20].mxu1 %v6616_v57  ;;  %v2123_v57 = vld [vmem:[#allocation9 + $0x208] sm:$0xff] }
 0x8d4   :  { %2353 = vmatprep.mubr.f32.mxu0 %v6316_v0  ;;  %2472 = vmatprep.mubr.f32.mxu1 %v6316_v0 }
 0x8d7   :  { %2354 = vmatmul.mubr.f32.gmra.mrb[20].mxu0 %v6662_v11  ;;  %2473 = vmatmul.mubr.f32.gmra.mrb[22].mxu1 %v6662_v11  ;;  %v2127_v11 = vld [vmem:[#allocation9 + $0x228] sm:$0xff] }
 0x8d8   :  { %2359 = vmatprep.mubr.f32.mxu0 %v6316_v0  ;;  %2478 = vmatprep.mubr.f32.mxu1 %v6316_v0 }
 0x8db   :  { %2360 = vmatmul.mubr.f32.gmra.mrb[22].mxu0 %v6708_v27  ;;  %2479 = vmatmul.mubr.f32.gmra.mrb[24].mxu1 %v6708_v27  ;;  %v2125_v27 = vld [vmem:[#allocation9 + $0x218] sm:$0xff] }
 0x8dc   :  { %2365 = vmatprep.mubr.f32.mxu0 %v6316_v0  ;;  %2484 = vmatprep.mubr.f32.mxu1 %v6316_v0 }
 0x8df   :  { %2366 = vmatmul.mubr.f32.gmra.mrb[24].mxu0 %v6754_v51  ;;  %2485 = vmatmul.mubr.f32.gmra.mrb[26].mxu1 %v6754_v51  ;;  %v6974_v51 = vpack.c.bf16 %v2127_v11, %v2123_v57  ;;  %v7023_v57 = vpack.c.bf16 %v2158_v28, %v2154_v24  ;;  %v2157_v11 = vld [vmem:[#allocation9 + $0x318] sm:$0xff]  ;;  %v7058_v24 = vpack.c.bf16 %v2183_v6, %v2179_v5 }
 0x8e0   :  { %2371 = vmatprep.mubr.f32.mxu0 %v6316_v0  ;;  %2490 = vmatprep.mubr.f32.mxu1 %v6316_v0  ;;  %v2185_v28 = vld [vmem:[#allocation9 + $0x3f8] sm:$0xff] }
 0x8e1   :  { %5147 = vmatprep.subr.bf16.mxu0 %v6974_v51 }
 0x8e3   :  { %2372 = vmatmul.mubr.f32.gmra.mrb[26].mxu0 %v6800_v19  ;;  %2491 = vmatmul.mubr.f32.gmra.mrb[28].mxu1 %v6800_v19  ;;  %v2122_v19 = vld [vmem:[#allocation9 + $0x200] sm:$0xff] }
 0x8e4   :  { %2377 = vmatprep.mubr.f32.mxu0 %v6316_v0  ;;  %2496 = vmatprep.mubr.f32.mxu1 %v6316_v0 }
 0x8e7   :  { %2378 = vmatmul.mubr.f32.gmra.mrb[28].mxu0 %v6846_v21  ;;  %2497 = vmatmul.mubr.f32.gmra.mrb[30].mxu1 %v6846_v21  ;;  %v2126_v21 = vld [vmem:[#allocation9 + $0x220] sm:$0xff] }
 0x8e8   :  { %2383 = vmatprep.mubr.f32.mxu0 %v6316_v0  ;;  %2502 = vmatprep.mubr.f32.mxu1 %v6316_v0  ;;  %v6976_v26 = vpack.c.bf16 %v2126_v21, %v2122_v19  ;;  %v2156_v19 = vld [vmem:[#allocation9 + $0x310] sm:$0xff] }
 0x8ea   :  { %5149 = vmatpush1.bf16.msra.mxu0 %v6976_v26 }
 0x8eb   :  { %2384 = vmatmul.mubr.f32.gmra.mrb[30].mxu0 %v6892_v4  ;;  %2503 = vmatmul.mubr.f32.gmra.mrb[32].mxu1 %v6892_v4  ;;  %v2129_v4 = vld [vmem:[#allocation9 + $0x238] sm:$0xff] }
 0x8ec   :  { %2389 = vmatprep.mubr.f32.mxu0 %v6316_v0  ;;  %2508 = vmatprep.mubr.f32.mxu1 %v6316_v0  ;;  %v6978_v35 = vpack.c.bf16 %v2129_v4, %v2125_v27  ;;  %v2161_v27 = vld [vmem:[#allocation9 + $0x338] sm:$0xff]  ;;  %v2160_v4 = vld [vmem:[#allocation9 + $0x330] sm:$0xff] }
 0x8ed   :  { %5151 = vmatprep.subr.bf16.mxu0 %v6985_v40  ;;  %v7026_v21 = vpack.c.bf16 %v2161_v27, %v2157_v11  ;;  %v7029_v30 = vpack.c.bf16 %v2160_v4, %v2156_v19  ;;  %v2178_v11 = vld [vmem:[#allocation9 + $0x3c0] sm:$0xff]  ;;  %v7060_v19 = vpack.c.bf16 %v2185_v28, %v2181_v16 }
 0x8ee   :  { %5179 = vmatprep.subr.bf16.mxu1 %v6978_v35  ;;  %5153 = vmatpush1.bf16.msra.mxu0 %v6988_v54  ;;  %v2182_v27 = vld [vmem:[#allocation9 + $0x3e0] sm:$0xff] }
 0x8ef   :  { %2390 = vmatmul.mubr.f32.gmra.mrb[32].mxu0 %v6936_v18  ;;  %2509 = vmatmul.mubr.f32.gmra.mrb[34].mxu1 %v6936_v18  ;;  %v6981_v18 = vpack.c.bf16 %v2128_v49, %v2124_v20  ;;  %v2163_v20 = vld [vmem:[#allocation9 + $0x348] sm:$0xff]  ;;  %v7062_v4 = vpack.c.bf16 %v2182_v27, %v2178_v11 }
 0x8f0   :  { %2395 = vmatprep.mubr.f32.mxu0 %v6316_v0  ;;  %2514 = vmatprep.mubr.f32.mxu1 %v6316_v0  ;;  %v2167_v49 = vld [vmem:[#allocation9 + $0x368] sm:$0xff] }
 0x8f1   :  { %5181 = vmatpush1.bf16.msra.mxu1 %v6981_v18  ;;  %5155 = vmatprep.subr.bf16.mxu0 %v6997_v55  ;;  %v7031_v33 = vpack.c.bf16 %v2167_v49, %v2163_v20  ;;  %v2180_v20 = vld [vmem:[#allocation9 + $0x3d0] sm:$0xff] }
 0x8f2   :  { %5183 = vmatprep.subr.bf16.mxu1 %v6990_v50  ;;  %5157 = vmatpush1.bf16.msra.mxu0 %v7000_v7  ;;  %v2184_v49 = vld [vmem:[#allocation9 + $0x3f0] sm:$0xff] }
 0x8f3   :  { %5159 = vmatprep.subr.bf16.mxu0 %v7010_v39  ;;  %v7065_v17 = vpack.c.bf16 %v2184_v49, %v2180_v20 }
 0x8f5   :  { %5185 = vmatpush1.bf16.msra.mxu1 %v6993_v31 }
 0x8f6   :  { %5187 = vmatprep.subr.bf16.mxu1 %v7002_v8  ;;  %5161 = vmatpush1.bf16.msra.mxu0 %v7012_v53 }
 0x8f7   :  { %5163 = vmatprep.subr.bf16.mxu0 %v7021_v34 }
 0x8f9   :  { %5189 = vmatpush1.bf16.msra.mxu1 %v7005_v22 }
 0x8fa   :  { %5191 = vmatprep.subr.bf16.mxu1 %v7014_v60  ;;  %5165 = vmatpush1.bf16.msra.mxu0 %v7023_v57 }
 0x8fb   :  { %5167 = vmatprep.subr.bf16.mxu0 %v7031_v33 }
 0x8fd   :  { %5193 = vmatpush1.bf16.msra.mxu1 %v7017_v13 }
 0x8fe   :  { %5195 = vmatprep.subr.bf16.mxu1 %v7026_v21  ;;  %5169 = vmatpush1.bf16.msra.mxu0 %v7035_v32 }
 0x8ff   :  { %5171 = vmatprep.subr.bf16.mxu0 %v7043_v14 }
 0x901   :  { %5197 = vmatpush1.bf16.msra.mxu1 %v7029_v30 }
 0x902   :  { %5199 = vmatprep.subr.bf16.mxu1 %v7037_v44  ;;  %5173 = vmatpush1.bf16.msra.mxu0 %v7049_v52 }
 0x903   :  { %5175 = vmatprep.subr.bf16.mxu0 %v7058_v24 }
 0x905   :  { %5201 = vmatpush1.bf16.msra.mxu1 %v7041_v1 }
 0x906   :  { %5203 = vmatprep.subr.bf16.mxu1 %v7046_v38  ;;  %5177 = vmatpush1.bf16.msra.mxu0 %v7062_v4 }
 0x907   :  { %5211 = vmatprep.subr.bf16.mxu0 %v6974_v51 }
 0x909   :  { %5205 = vmatpush1.bf16.msra.mxu1 %v7053_v61 }
 0x90a   :  { %5207 = vmatprep.subr.bf16.mxu1 %v7060_v19 }
 0x90d   :  { %5209 = vmatpush1.bf16.msra.mxu1 %v7065_v17 }
 0x90e   :  { %5243 = vmatprep.subr.bf16.mxu1 %v6978_v35 }
 0x986   :  { %v2015_v59 = vpop.f32.mrb[16].mxu0  ;;  %v2086_v2 = vpop.f32.mrb[16].mxu1 }
 0x987   :  { %v5764_v9 = vadd.f32 %v2015_v59, %v6593_v42  ;;  %v2017_v58 = vpop.f32.mrb[17].mxu0  ;;  %v2088_v48 = vpop.f32.mrb[17].mxu1  ;;  %v5782_v29 = vadd.f32 %v2086_v2, %v6605_v10 }
 0x988   :  { %v5765_v45 = vadd.f32 %v2017_v58, %v6597_v43  ;;  %v5783_v15 = vadd.f32 %v2088_v48, %v6609_v12 }
 0x989   :  { %v4326_v56 = vmul.f32 -1.442695, %v5764_v9 }
 0x98a   :  { %v4327_v63 = vmul.f32 -1.442695, %v5765_v45  ;;  %v4328_v23 = vmul.f32 -1.442695, %v5783_v15 }
 0x98b   :  { %6030 = vpow2.f32 %v4326_v56 }
 0x98c   :  { %6032 = vpow2.f32 %v4327_v63 }
 0x98d   :  { %6034 = vpow2.f32 %v4328_v23 }
 0x98e   :  { %6036 = vtanh.f32 %v5782_v29 }
 0x995   :  { %v6031_v46 = vpop.eup %6030 }
 0x996   :  { %v6033_v47 = vpop.eup %6032  ;;  %v2098_v5 = vadd.f32 1.0, %v6031_v46 }
 0x997   :  { %v2104_v6 = vadd.f32 1.0, %v6033_v47  ;;  %v6035_v42 = vpop.eup %6034 }
 0x998   :  { %6038 = vrcp.f32 %v2098_v5  ;;  %v6037_v16 = vpop.eup %6036  ;;  %v2111_v27 = vadd.f32 1.0, %v6035_v42 }
 0x999   :  { %6040 = vrcp.f32 %v2104_v6 }
 0x99a   :  { %6042 = vrcp.f32 %v2111_v27 }
 0x9a2   :  { %v6039_v43 = vpop.eup %6038 }
 0x9a3   :  { %v6041_v28 = vpop.eup %6040  ;;  %v2115_v11 = vmul.f32 %v6039_v43, %v6037_v16 }
 0x9a4   :  { %v2114_v20 = vmul.f32 %v6041_v28, %v6933_v25  ;;  %v6043_v10 = vpop.eup %6042  ;;  %v4329_v25 = vld [vmem:[%s7520_s3 + $0x4] sm:$0xf] }
 0x9a5   :  { %v7120_v2 = vrot.slane %v4329_v25, %v238_v37  ;;  %v7124_v9 = vrot.slane %v4329_v25, %v242_v41  ;;  %v7130_v46 = vrot.slane %v4329_v25, %v250_v3  ;;  %v7135_v41 = vrot.slane %v4329_v25, %v246_v62 }
 0x9a6   :  { %v2116_v12 = vadd.f32 %v2115_v11, %v2114_v20 }
 0x9a8   :  { %6044 = vtanh.f32 %v2116_v12 }
 0x9b2   :  { %v6045_v49 = vpop.eup %6044 }
 0x9b3   :  { %v2118_v59 = vmul.f32 %v6045_v49, %v6043_v10 }
 0x9b5   :  { %2396 = vmatmul.mubr.f32.gmra.mrb[34].mxu0 %v2118_v59  ;;  %2515 = vmatmul.mubr.f32.gmra.mrb[36].mxu1 %v2118_v59 }
 0x9b6   :  { %2625 = vmatprep.mubr.f32.mxu0 %v6316_v0  ;;  %2696 = vmatprep.mubr.f32.mxu1 %v6316_v0 }
 0x9b9   :  { %2626 = vmatmul.mubr.f32.vlgmr.msra.gmra.mrb[18].mxu0 %v6316_v0  ;;  %2697 = vmatmul.mubr.f32.vlgmr.msra.gmra.mrb[20].mxu1 %v6316_v0 }
 0x9ba   :  { %5213 = vmatpush1.bf16.msra.mxu0 %v6976_v26  ;;  %5245 = vmatpush1.bf16.msra.mxu1 %v6981_v18 }
 0x9bb   :  { %5215 = vmatprep.subr.bf16.mxu0 %v6985_v40  ;;  %5247 = vmatprep.subr.bf16.mxu1 %v6990_v50 }
 0x9bc   :  { %2800 = vmatprep.mubr.f32.mxu0 %v6316_v0  ;;  %2871 = vmatprep.mubr.f32.mxu1 %v6316_v0 }
 0x9be   :  { %5217 = vmatpush1.bf16.msra.mxu0 %v6988_v54  ;;  %5249 = vmatpush1.bf16.msra.mxu1 %v6993_v31 }
 0x9bf   :  { %5219 = vmatprep.subr.bf16.mxu0 %v6997_v55  ;;  %5251 = vmatprep.subr.bf16.mxu1 %v7002_v8 }
 0x9c2   :  { %5221 = vmatpush1.bf16.msra.mxu0 %v7000_v7  ;;  %5253 = vmatpush1.bf16.msra.mxu1 %v7005_v22 }
 0x9c3   :  { %5223 = vmatprep.subr.bf16.mxu0 %v7010_v39  ;;  %5255 = vmatprep.subr.bf16.mxu1 %v7014_v60 }
 0x9c6   :  { %5225 = vmatpush1.bf16.msra.mxu0 %v7012_v53  ;;  %5257 = vmatpush1.bf16.msra.mxu1 %v7017_v13 }
 0x9c7   :  { %5227 = vmatprep.subr.bf16.mxu0 %v7021_v34  ;;  %5259 = vmatprep.subr.bf16.mxu1 %v7026_v21 }
 0x9ca   :  { %5229 = vmatpush1.bf16.msra.mxu0 %v7023_v57  ;;  %5261 = vmatpush1.bf16.msra.mxu1 %v7029_v30 }
 0x9cb   :  { %5231 = vmatprep.subr.bf16.mxu0 %v7031_v33  ;;  %5263 = vmatprep.subr.bf16.mxu1 %v7037_v44 }
 0x9ce   :  { %5233 = vmatpush1.bf16.msra.mxu0 %v7035_v32  ;;  %5265 = vmatpush1.bf16.msra.mxu1 %v7041_v1 }
 0x9cf   :  { %5235 = vmatprep.subr.bf16.mxu0 %v7043_v14  ;;  %5267 = vmatprep.subr.bf16.mxu1 %v7046_v38 }
 0x9d2   :  { %5237 = vmatpush1.bf16.msra.mxu0 %v7049_v52  ;;  %5269 = vmatpush1.bf16.msra.mxu1 %v7053_v61 }
 0x9d3   :  { %5239 = vmatprep.subr.bf16.mxu0 %v7058_v24  ;;  %5271 = vmatprep.subr.bf16.mxu1 %v7060_v19 }
 0x9d6   :  { %5241 = vmatpush1.bf16.msra.mxu0 %v7062_v4  ;;  %5273 = vmatpush1.bf16.msra.mxu1 %v7065_v17 }
 0x9d7   :  { %5275 = vmatprep.subr.bf16.mxu0 %v6974_v51  ;;  %5307 = vmatprep.subr.bf16.mxu1 %v6978_v35 }
 0xa8c   :  { %v2627_v58 = vpop.f32.mrb[18].mxu0  ;;  %v2698_v48 = vpop.f32.mrb[20].mxu1 }
 0xa8d   :  { %v5784_v45 = vadd.f32 %v2627_v58, %v7120_v2  ;;  %v2629_v56 = vpop.f32.mrb[19].mxu0  ;;  %v2700_v63 = vpop.f32.mrb[21].mxu1  ;;  %v5802_v5 = vadd.f32 %v2698_v48, %v7135_v41 }
 0xa8e   :  { %v5785_v15 = vadd.f32 %v2629_v56, %v7124_v9  ;;  %v5803_v37 = vadd.f32 %v2700_v63, %v7130_v46 }
 0xa8f   :  { %v4330_v23 = vmul.f32 -1.442695, %v5784_v45 }
 0xa90   :  { %v4331_v29 = vmul.f32 -1.442695, %v5785_v15  ;;  %v4332_v47 = vmul.f32 -1.442695, %v5803_v37 }
 0xa91   :  { %6046 = vpow2.f32 %v4330_v23 }
 0xa92   :  { %6048 = vpow2.f32 %v4331_v29 }
 0xa93   :  { %6050 = vpow2.f32 %v4332_v47 }
 0xa94   :  { %6052 = vtanh.f32 %v5802_v5 }
 0xa9b   :  { %v6047_v6 = vpop.eup %6046 }
 0xa9c   :  { %v6049_v42 = vpop.eup %6048  ;;  %v2710_v16 = vadd.f32 1.0, %v6047_v6 }
 0xa9d   :  { %v2716_v43 = vadd.f32 1.0, %v6049_v42  ;;  %v6051_v3 = vpop.eup %6050 }
 0xa9e   :  { %6054 = vrcp.f32 %v2710_v16  ;;  %v6053_v28 = vpop.eup %6052  ;;  %v2723_v12 = vadd.f32 1.0, %v6051_v3 }
 0xa9f   :  { %6056 = vrcp.f32 %v2716_v43 }
 0xaa0   :  { %6058 = vrcp.f32 %v2723_v12 }
 0xaa8   :  { %v6055_v11 = vpop.eup %6054 }
 0xaa9   :  { %v6057_v27 = vpop.eup %6056  ;;  %v2727_v20 = vmul.f32 %v6055_v11, %v6053_v28 }
 0xaaa   :  { %v2726_v36 = vmul.f32 0.0, %v6057_v27  ;;  %v6059_v10 = vpop.eup %6058 }
 0xaac   :  { %v7138_v62 = vadd.f32 %v2727_v20, %v2726_v36 }
 0xaae   :  { %6060 = vtanh.f32 %v7138_v62 }
 0xab8   :  { %v6061_v49 = vpop.eup %6060 }
 0xab9   :  { %v7141_v59 = vmul.f32 %v6061_v49, %v6059_v10 }
 0xabb   :  { %2801 = vmatmul.mubr.f32.vlgmr.msra.gmra.mrb[20].mxu0 %v7141_v59  ;;  %2872 = vmatmul.mubr.f32.vlgmr.msra.gmra.mrb[22].mxu1 %v7141_v59 }
 0xabc   :  { %5277 = vmatpush1.bf16.msra.mxu0 %v6976_v26  ;;  %5309 = vmatpush1.bf16.msra.mxu1 %v6981_v18 }
 0xabd   :  { %5279 = vmatprep.subr.bf16.mxu0 %v6985_v40  ;;  %5311 = vmatprep.subr.bf16.mxu1 %v6990_v50 }
 0xabe   :  { %2975 = vmatprep.mubr.f32.mxu0 %v6316_v0  ;;  %3046 = vmatprep.mubr.f32.mxu1 %v6316_v0 }
 0xac0   :  { %5281 = vmatpush1.bf16.msra.mxu0 %v6988_v54  ;;  %5313 = vmatpush1.bf16.msra.mxu1 %v6993_v31 }
 0xac1   :  { %5283 = vmatprep.subr.bf16.mxu0 %v6997_v55  ;;  %5315 = vmatprep.subr.bf16.mxu1 %v7002_v8 }
 0xac4   :  { %5285 = vmatpush1.bf16.msra.mxu0 %v7000_v7  ;;  %5317 = vmatpush1.bf16.msra.mxu1 %v7005_v22 }
 0xac5   :  { %5287 = vmatprep.subr.bf16.mxu0 %v7010_v39  ;;  %5319 = vmatprep.subr.bf16.mxu1 %v7014_v60 }
 0xac8   :  { %5289 = vmatpush1.bf16.msra.mxu0 %v7012_v53  ;;  %5321 = vmatpush1.bf16.msra.mxu1 %v7017_v13 }
 0xac9   :  { %5291 = vmatprep.subr.bf16.mxu0 %v7021_v34  ;;  %5323 = vmatprep.subr.bf16.mxu1 %v7026_v21 }
 0xacc   :  { %5293 = vmatpush1.bf16.msra.mxu0 %v7023_v57  ;;  %5325 = vmatpush1.bf16.msra.mxu1 %v7029_v30 }
 0xacd   :  { %5295 = vmatprep.subr.bf16.mxu0 %v7031_v33  ;;  %5327 = vmatprep.subr.bf16.mxu1 %v7037_v44 }
 0xad0   :  { %5297 = vmatpush1.bf16.msra.mxu0 %v7035_v32  ;;  %5329 = vmatpush1.bf16.msra.mxu1 %v7041_v1 }
 0xad1   :  { %5299 = vmatprep.subr.bf16.mxu0 %v7043_v14  ;;  %5331 = vmatprep.subr.bf16.mxu1 %v7046_v38 }
 0xad4   :  { %5301 = vmatpush1.bf16.msra.mxu0 %v7049_v52  ;;  %5333 = vmatpush1.bf16.msra.mxu1 %v7053_v61 }
 0xad5   :  { %5303 = vmatprep.subr.bf16.mxu0 %v7058_v24  ;;  %5335 = vmatprep.subr.bf16.mxu1 %v7060_v19 }
 0xad8   :  { %5305 = vmatpush1.bf16.msra.mxu0 %v7062_v4  ;;  %5337 = vmatpush1.bf16.msra.mxu1 %v7065_v17 }
 0xad9   :  { %5339 = vmatprep.subr.bf16.mxu0 %v6974_v51  ;;  %5371 = vmatprep.subr.bf16.mxu1 %v6978_v35 }
 0xb8e   :  { %v2802_v25 = vpop.f32.mrb[20].mxu0  ;;  %v2873_v58 = vpop.f32.mrb[22].mxu1 }
 0xb8f   :  { %v5786_v48 = vadd.f32 %v2802_v25, %v7120_v2  ;;  %v2804_v45 = vpop.f32.mrb[21].mxu0  ;;  %v2875_v56 = vpop.f32.mrb[23].mxu1  ;;  %v5804_v47 = vadd.f32 %v2873_v58, %v7135_v41 }
 0xb90   :  { %v5787_v63 = vadd.f32 %v2804_v45, %v7124_v9  ;;  %v5805_v29 = vadd.f32 %v2875_v56, %v7130_v46 }
 0xb91   :  { %v4333_v15 = vmul.f32 -1.442695, %v5786_v48 }
 0xb92   :  { %v4334_v23 = vmul.f32 -1.442695, %v5787_v63  ;;  %v4335_v37 = vmul.f32 -1.442695, %v5805_v29 }
 0xb93   :  { %6062 = vpow2.f32 %v4333_v15 }
 0xb94   :  { %6064 = vpow2.f32 %v4334_v23 }
 0xb95   :  { %6066 = vpow2.f32 %v4335_v37 }
 0xb96   :  { %6068 = vtanh.f32 %v5804_v47 }
 0xb9d   :  { %v6063_v5 = vpop.eup %6062 }
 0xb9e   :  { %v6065_v6 = vpop.eup %6064  ;;  %v2885_v42 = vadd.f32 1.0, %v6063_v5 }
 0xb9f   :  { %v2891_v16 = vadd.f32 1.0, %v6065_v6  ;;  %v6067_v43 = vpop.eup %6066 }
 0xba0   :  { %6070 = vrcp.f32 %v2885_v42  ;;  %v6069_v3 = vpop.eup %6068  ;;  %v2898_v20 = vadd.f32 1.0, %v6067_v43 }
 0xba1   :  { %6072 = vrcp.f32 %v2891_v16 }
 0xba2   :  { %6074 = vrcp.f32 %v2898_v20 }
 0xbaa   :  { %v6071_v28 = vpop.eup %6070 }
 0xbab   :  { %v6073_v11 = vpop.eup %6072  ;;  %v2902_v27 = vmul.f32 %v6071_v28, %v6069_v3 }
 0xbac   :  { %v2901_v12 = vmul.f32 %v6073_v11, %v7138_v62  ;;  %v6075_v10 = vpop.eup %6074 }
 0xbae   :  { %v7184_v36 = vadd.f32 %v2902_v27, %v2901_v12 }
 0xbb0   :  { %6076 = vtanh.f32 %v7184_v36 }
 0xbba   :  { %v6077_v49 = vpop.eup %6076 }
 0xbbb   :  { %v7187_v25 = vmul.f32 %v6077_v49, %v6075_v10 }
 0xbbd   :  { %2976 = vmatmul.mubr.f32.vlgmr.msra.gmra.mrb[22].mxu0 %v7187_v25  ;;  %3047 = vmatmul.mubr.f32.vlgmr.msra.gmra.mrb[24].mxu1 %v7187_v25 }
 0xbbe   :  { %5341 = vmatpush1.bf16.msra.mxu0 %v6976_v26  ;;  %5373 = vmatpush1.bf16.msra.mxu1 %v6981_v18 }
 0xbbf   :  { %5343 = vmatprep.subr.bf16.mxu0 %v6985_v40  ;;  %5375 = vmatprep.subr.bf16.mxu1 %v6990_v50 }
 0xbc0   :  { %3150 = vmatprep.mubr.f32.mxu0 %v6316_v0  ;;  %3221 = vmatprep.mubr.f32.mxu1 %v6316_v0 }
 0xbc2   :  { %5345 = vmatpush1.bf16.msra.mxu0 %v6988_v54  ;;  %5377 = vmatpush1.bf16.msra.mxu1 %v6993_v31 }
 0xbc3   :  { %5347 = vmatprep.subr.bf16.mxu0 %v6997_v55  ;;  %5379 = vmatprep.subr.bf16.mxu1 %v7002_v8 }
 0xbc6   :  { %5349 = vmatpush1.bf16.msra.mxu0 %v7000_v7  ;;  %5381 = vmatpush1.bf16.msra.mxu1 %v7005_v22 }
 0xbc7   :  { %5351 = vmatprep.subr.bf16.mxu0 %v7010_v39  ;;  %5383 = vmatprep.subr.bf16.mxu1 %v7014_v60 }
 0xbca   :  { %5353 = vmatpush1.bf16.msra.mxu0 %v7012_v53  ;;  %5385 = vmatpush1.bf16.msra.mxu1 %v7017_v13 }
 0xbcb   :  { %5355 = vmatprep.subr.bf16.mxu0 %v7021_v34  ;;  %5387 = vmatprep.subr.bf16.mxu1 %v7026_v21 }
 0xbce   :  { %5357 = vmatpush1.bf16.msra.mxu0 %v7023_v57  ;;  %5389 = vmatpush1.bf16.msra.mxu1 %v7029_v30 }
 0xbcf   :  { %5359 = vmatprep.subr.bf16.mxu0 %v7031_v33  ;;  %5391 = vmatprep.subr.bf16.mxu1 %v7037_v44 }
 0xbd2   :  { %5361 = vmatpush1.bf16.msra.mxu0 %v7035_v32  ;;  %5393 = vmatpush1.bf16.msra.mxu1 %v7041_v1 }
 0xbd3   :  { %5363 = vmatprep.subr.bf16.mxu0 %v7043_v14  ;;  %5395 = vmatprep.subr.bf16.mxu1 %v7046_v38 }
 0xbd6   :  { %5365 = vmatpush1.bf16.msra.mxu0 %v7049_v52  ;;  %5397 = vmatpush1.bf16.msra.mxu1 %v7053_v61 }
 0xbd7   :  { %5367 = vmatprep.subr.bf16.mxu0 %v7058_v24  ;;  %5399 = vmatprep.subr.bf16.mxu1 %v7060_v19 }
 0xbda   :  { %5369 = vmatpush1.bf16.msra.mxu0 %v7062_v4  ;;  %5401 = vmatpush1.bf16.msra.mxu1 %v7065_v17 }
 0xbdb   :  { %5403 = vmatprep.subr.bf16.mxu0 %v6974_v51  ;;  %5435 = vmatprep.subr.bf16.mxu1 %v6978_v35 }
 0xc90   :  { %v2977_v62 = vpop.f32.mrb[22].mxu0  ;;  %v3048_v58 = vpop.f32.mrb[24].mxu1 }
 0xc91   :  { %v5788_v48 = vadd.f32 %v2977_v62, %v7120_v2  ;;  %v2979_v45 = vpop.f32.mrb[23].mxu0  ;;  %v3050_v56 = vpop.f32.mrb[25].mxu1  ;;  %v5806_v47 = vadd.f32 %v3048_v58, %v7135_v41 }
 0xc92   :  { %v5789_v63 = vadd.f32 %v2979_v45, %v7124_v9  ;;  %v5807_v29 = vadd.f32 %v3050_v56, %v7130_v46 }
 0xc93   :  { %v4336_v15 = vmul.f32 -1.442695, %v5788_v48 }
 0xc94   :  { %v4337_v23 = vmul.f32 -1.442695, %v5789_v63  ;;  %v4338_v37 = vmul.f32 -1.442695, %v5807_v29 }
 0xc95   :  { %6078 = vpow2.f32 %v4336_v15 }
 0xc96   :  { %6080 = vpow2.f32 %v4337_v23 }
 0xc97   :  { %6082 = vpow2.f32 %v4338_v37 }
 0xc98   :  { %6084 = vtanh.f32 %v5806_v47 }
 0xc9f   :  { %v6079_v5 = vpop.eup %6078 }
 0xca0   :  { %v6081_v6 = vpop.eup %6080  ;;  %v3060_v42 = vadd.f32 1.0, %v6079_v5 }
 0xca1   :  { %v3066_v16 = vadd.f32 1.0, %v6081_v6  ;;  %v6083_v43 = vpop.eup %6082 }
 0xca2   :  { %6086 = vrcp.f32 %v3060_v42  ;;  %v6085_v3 = vpop.eup %6084  ;;  %v3073_v20 = vadd.f32 1.0, %v6083_v43 }
 0xca3   :  { %6088 = vrcp.f32 %v3066_v16 }
 0xca4   :  { %6090 = vrcp.f32 %v3073_v20 }
 0xcac   :  { %v6087_v28 = vpop.eup %6086 }
 0xcad   :  { %v6089_v11 = vpop.eup %6088  ;;  %v3077_v27 = vmul.f32 %v6087_v28, %v6085_v3 }
 0xcae   :  { %v3076_v12 = vmul.f32 %v6089_v11, %v7184_v36  ;;  %v6091_v49 = vpop.eup %6090 }
 0xcb0   :  { %v7230_v10 = vadd.f32 %v3077_v27, %v3076_v12 }
 0xcb2   :  { %6092 = vtanh.f32 %v7230_v10 }
 0xcbc   :  { %v6093_v62 = vpop.eup %6092 }
 0xcbd   :  { %v7233_v58 = vmul.f32 %v6093_v62, %v6091_v49 }
 0xcbf   :  { %3151 = vmatmul.mubr.f32.vlgmr.msra.gmra.mrb[24].mxu0 %v7233_v58  ;;  %3222 = vmatmul.mubr.f32.vlgmr.msra.gmra.mrb[26].mxu1 %v7233_v58 }
 0xcc0   :  { %5405 = vmatpush1.bf16.msra.mxu0 %v6976_v26  ;;  %5437 = vmatpush1.bf16.msra.mxu1 %v6981_v18 }
 0xcc1   :  { %5407 = vmatprep.subr.bf16.mxu0 %v6985_v40  ;;  %5439 = vmatprep.subr.bf16.mxu1 %v6990_v50 }
 0xcc2   :  { %3325 = vmatprep.mubr.f32.mxu0 %v6316_v0  ;;  %3396 = vmatprep.mubr.f32.mxu1 %v6316_v0 }
 0xcc4   :  { %5409 = vmatpush1.bf16.msra.mxu0 %v6988_v54  ;;  %5441 = vmatpush1.bf16.msra.mxu1 %v6993_v31 }
 0xcc5   :  { %5411 = vmatprep.subr.bf16.mxu0 %v6997_v55  ;;  %5443 = vmatprep.subr.bf16.mxu1 %v7002_v8 }
 0xcc8   :  { %5413 = vmatpush1.bf16.msra.mxu0 %v7000_v7  ;;  %5445 = vmatpush1.bf16.msra.mxu1 %v7005_v22 }
 0xcc9   :  { %5415 = vmatprep.subr.bf16.mxu0 %v7010_v39  ;;  %5447 = vmatprep.subr.bf16.mxu1 %v7014_v60 }
 0xccc   :  { %5417 = vmatpush1.bf16.msra.mxu0 %v7012_v53  ;;  %5449 = vmatpush1.bf16.msra.mxu1 %v7017_v13 }
 0xccd   :  { %5419 = vmatprep.subr.bf16.mxu0 %v7021_v34  ;;  %5451 = vmatprep.subr.bf16.mxu1 %v7026_v21 }
 0xcd0   :  { %5421 = vmatpush1.bf16.msra.mxu0 %v7023_v57  ;;  %5453 = vmatpush1.bf16.msra.mxu1 %v7029_v30 }
 0xcd1   :  { %5423 = vmatprep.subr.bf16.mxu0 %v7031_v33  ;;  %5455 = vmatprep.subr.bf16.mxu1 %v7037_v44 }
 0xcd4   :  { %5425 = vmatpush1.bf16.msra.mxu0 %v7035_v32  ;;  %5457 = vmatpush1.bf16.msra.mxu1 %v7041_v1 }
 0xcd5   :  { %5427 = vmatprep.subr.bf16.mxu0 %v7043_v14  ;;  %5459 = vmatprep.subr.bf16.mxu1 %v7046_v38 }
 0xcd8   :  { %5429 = vmatpush1.bf16.msra.mxu0 %v7049_v52  ;;  %5461 = vmatpush1.bf16.msra.mxu1 %v7053_v61 }
 0xcd9   :  { %5431 = vmatprep.subr.bf16.mxu0 %v7058_v24  ;;  %5463 = vmatprep.subr.bf16.mxu1 %v7060_v19 }
 0xcdc   :  { %5433 = vmatpush1.bf16.msra.mxu0 %v7062_v4  ;;  %5465 = vmatpush1.bf16.msra.mxu1 %v7065_v17 }
 0xcdd   :  { %5467 = vmatprep.subr.bf16.mxu0 %v6974_v51  ;;  %5499 = vmatprep.subr.bf16.mxu1 %v6978_v35 }
 0xd92   :  { %v3152_v36 = vpop.f32.mrb[24].mxu0  ;;  %v3223_v48 = vpop.f32.mrb[26].mxu1 }
 0xd93   :  { %v5790_v45 = vadd.f32 %v3152_v36, %v7120_v2  ;;  %v3154_v56 = vpop.f32.mrb[25].mxu0  ;;  %v3225_v63 = vpop.f32.mrb[27].mxu1  ;;  %v5808_v5 = vadd.f32 %v3223_v48, %v7135_v41 }
 0xd94   :  { %v5791_v15 = vadd.f32 %v3154_v56, %v7124_v9  ;;  %v5809_v37 = vadd.f32 %v3225_v63, %v7130_v46 }
 0xd95   :  { %v4339_v23 = vmul.f32 -1.442695, %v5790_v45 }
 0xd96   :  { %v4340_v29 = vmul.f32 -1.442695, %v5791_v15  ;;  %v4341_v47 = vmul.f32 -1.442695, %v5809_v37 }
 0xd97   :  { %6094 = vpow2.f32 %v4339_v23 }
 0xd98   :  { %6096 = vpow2.f32 %v4340_v29 }
 0xd99   :  { %6098 = vpow2.f32 %v4341_v47 }
 0xd9a   :  { %6100 = vtanh.f32 %v5808_v5 }
 0xda1   :  { %v6095_v6 = vpop.eup %6094 }
 0xda2   :  { %v6097_v42 = vpop.eup %6096  ;;  %v3235_v16 = vadd.f32 1.0, %v6095_v6 }
 0xda3   :  { %v3241_v43 = vadd.f32 1.0, %v6097_v42  ;;  %v6099_v3 = vpop.eup %6098 }
 0xda4   :  { %6102 = vrcp.f32 %v3235_v16  ;;  %v6101_v28 = vpop.eup %6100  ;;  %v3248_v12 = vadd.f32 1.0, %v6099_v3 }
 0xda5   :  { %6104 = vrcp.f32 %v3241_v43 }
 0xda6   :  { %6106 = vrcp.f32 %v3248_v12 }
 0xdae   :  { %v6103_v11 = vpop.eup %6102 }
 0xdaf   :  { %v6105_v27 = vpop.eup %6104  ;;  %v3252_v20 = vmul.f32 %v6103_v11, %v6101_v28 }
 0xdb0   :  { %v3251_v49 = vmul.f32 %v6105_v27, %v7230_v10  ;;  %v6107_v36 = vpop.eup %6106 }
 0xdb2   :  { %v7276_v62 = vadd.f32 %v3252_v20, %v3251_v49 }
 0xdb4   :  { %6108 = vtanh.f32 %v7276_v62 }
 0xdbe   :  { %v6109_v48 = vpop.eup %6108 }
 0xdbf   :  { %v7279_v45 = vmul.f32 %v6109_v48, %v6107_v36 }
 0xdc1   :  { %3326 = vmatmul.mubr.f32.vlgmr.msra.gmra.mrb[26].mxu0 %v7279_v45  ;;  %3397 = vmatmul.mubr.f32.vlgmr.msra.gmra.mrb[28].mxu1 %v7279_v45 }
 0xdc2   :  { %5469 = vmatpush1.bf16.msra.mxu0 %v6976_v26  ;;  %5501 = vmatpush1.bf16.msra.mxu1 %v6981_v18 }
 0xdc3   :  { %5471 = vmatprep.subr.bf16.mxu0 %v6985_v40  ;;  %5503 = vmatprep.subr.bf16.mxu1 %v6990_v50 }
 0xdc4   :  { %3500 = vmatprep.mubr.f32.mxu0 %v6316_v0  ;;  %3571 = vmatprep.mubr.f32.mxu1 %v6316_v0 }
 0xdc6   :  { %5473 = vmatpush1.bf16.msra.mxu0 %v6988_v54  ;;  %5505 = vmatpush1.bf16.msra.mxu1 %v6993_v31 }
 0xdc7   :  { %5475 = vmatprep.subr.bf16.mxu0 %v6997_v55  ;;  %5507 = vmatprep.subr.bf16.mxu1 %v7002_v8 }
 0xdca   :  { %5477 = vmatpush1.bf16.msra.mxu0 %v7000_v7  ;;  %5509 = vmatpush1.bf16.msra.mxu1 %v7005_v22 }
 0xdcb   :  { %5479 = vmatprep.subr.bf16.mxu0 %v7010_v39  ;;  %5511 = vmatprep.subr.bf16.mxu1 %v7014_v60 }
 0xdce   :  { %5481 = vmatpush1.bf16.msra.mxu0 %v7012_v53  ;;  %5513 = vmatpush1.bf16.msra.mxu1 %v7017_v13 }
 0xdcf   :  { %5483 = vmatprep.subr.bf16.mxu0 %v7021_v34  ;;  %5515 = vmatprep.subr.bf16.mxu1 %v7026_v21 }
 0xdd2   :  { %5485 = vmatpush1.bf16.msra.mxu0 %v7023_v57  ;;  %5517 = vmatpush1.bf16.msra.mxu1 %v7029_v30 }
 0xdd3   :  { %5487 = vmatprep.subr.bf16.mxu0 %v7031_v33  ;;  %5519 = vmatprep.subr.bf16.mxu1 %v7037_v44 }
 0xdd6   :  { %5489 = vmatpush1.bf16.msra.mxu0 %v7035_v32  ;;  %5521 = vmatpush1.bf16.msra.mxu1 %v7041_v1 }
 0xdd7   :  { %5491 = vmatprep.subr.bf16.mxu0 %v7043_v14  ;;  %5523 = vmatprep.subr.bf16.mxu1 %v7046_v38 }
 0xdda   :  { %5493 = vmatpush1.bf16.msra.mxu0 %v7049_v52  ;;  %5525 = vmatpush1.bf16.msra.mxu1 %v7053_v61 }
 0xddb   :  { %5495 = vmatprep.subr.bf16.mxu0 %v7058_v24  ;;  %5527 = vmatprep.subr.bf16.mxu1 %v7060_v19 }
 0xdde   :  { %5497 = vmatpush1.bf16.msra.mxu0 %v7062_v4  ;;  %5529 = vmatpush1.bf16.msra.mxu1 %v7065_v17 }
 0xddf   :  { %5531 = vmatprep.subr.bf16.mxu0 %v6974_v51  ;;  %5563 = vmatprep.subr.bf16.mxu1 %v6978_v35 }
 0xe94   :  { %v3327_v10 = vpop.f32.mrb[26].mxu0  ;;  %v3398_v56 = vpop.f32.mrb[28].mxu1 }
 0xe95   :  { %v5792_v63 = vadd.f32 %v3327_v10, %v7120_v2  ;;  %v3329_v15 = vpop.f32.mrb[27].mxu0  ;;  %v3400_v23 = vpop.f32.mrb[29].mxu1  ;;  %v5810_v42 = vadd.f32 %v3398_v56, %v7135_v41 }
 0xe96   :  { %v5793_v29 = vadd.f32 %v3329_v15, %v7124_v9  ;;  %v5811_v5 = vadd.f32 %v3400_v23, %v7130_v46 }
 0xe97   :  { %v4342_v37 = vmul.f32 -1.442695, %v5792_v63 }
 0xe98   :  { %v4343_v47 = vmul.f32 -1.442695, %v5793_v29  ;;  %v4344_v6 = vmul.f32 -1.442695, %v5811_v5 }
 0xe99   :  { %6110 = vpow2.f32 %v4342_v37 }
 0xe9a   :  { %6112 = vpow2.f32 %v4343_v47 }
 0xe9b   :  { %6114 = vpow2.f32 %v4344_v6 }
 0xe9c   :  { %6116 = vtanh.f32 %v5810_v42 }
 0xea3   :  { %v6111_v16 = vpop.eup %6110 }
 0xea4   :  { %v6113_v43 = vpop.eup %6112  ;;  %v3410_v3 = vadd.f32 1.0, %v6111_v16 }
 0xea5   :  { %v3416_v28 = vadd.f32 1.0, %v6113_v43  ;;  %v6115_v11 = vpop.eup %6114 }
 0xea6   :  { %6118 = vrcp.f32 %v3410_v3  ;;  %v6117_v27 = vpop.eup %6116  ;;  %v3423_v36 = vadd.f32 1.0, %v6115_v11 }
 0xea7   :  { %6120 = vrcp.f32 %v3416_v28 }
 0xea8   :  { %6122 = vrcp.f32 %v3423_v36 }
 0xeb0   :  { %v6119_v20 = vpop.eup %6118 }
 0xeb1   :  { %v6121_v12 = vpop.eup %6120  ;;  %v3427_v49 = vmul.f32 %v6119_v20, %v6117_v27 }
 0xeb2   :  { %v3426_v48 = vmul.f32 %v6121_v12, %v7276_v62  ;;  %v6123_v56 = vpop.eup %6122 }
 0xeb4   :  { %v7322_v10 = vadd.f32 %v3427_v49, %v3426_v48 }
 0xeb6   :  { %6124 = vtanh.f32 %v7322_v10 }
 0xec0   :  { %v6125_v63 = vpop.eup %6124 }
 0xec1   :  { %v7325_v15 = vmul.f32 %v6125_v63, %v6123_v56 }
 0xec3   :  { %3501 = vmatmul.mubr.f32.vlgmr.msra.gmra.mrb[28].mxu0 %v7325_v15  ;;  %3572 = vmatmul.mubr.f32.vlgmr.msra.gmra.mrb[30].mxu1 %v7325_v15 }
 0xec4   :  { %5533 = vmatpush1.bf16.msra.mxu0 %v6976_v26  ;;  %5565 = vmatpush1.bf16.msra.mxu1 %v6981_v18 }
 0xec5   :  { %5535 = vmatprep.subr.bf16.mxu0 %v6985_v40  ;;  %5567 = vmatprep.subr.bf16.mxu1 %v6990_v50 }
 0xec6   :  { %3675 = vmatprep.mubr.f32.mxu0 %v6316_v0  ;;  %3746 = vmatprep.mubr.f32.mxu1 %v6316_v0 }
 0xec8   :  { %5537 = vmatpush1.bf16.msra.mxu0 %v6988_v54  ;;  %5569 = vmatpush1.bf16.msra.mxu1 %v6993_v31 }
 0xec9   :  { %5539 = vmatprep.subr.bf16.mxu0 %v6997_v55  ;;  %5571 = vmatprep.subr.bf16.mxu1 %v7002_v8 }
 0xecc   :  { %5541 = vmatpush1.bf16.msra.mxu0 %v7000_v7  ;;  %5573 = vmatpush1.bf16.msra.mxu1 %v7005_v22 }
 0xecd   :  { %5543 = vmatprep.subr.bf16.mxu0 %v7010_v39  ;;  %5575 = vmatprep.subr.bf16.mxu1 %v7014_v60 }
 0xed0   :  { %5545 = vmatpush1.bf16.msra.mxu0 %v7012_v53  ;;  %5577 = vmatpush1.bf16.msra.mxu1 %v7017_v13 }
 0xed1   :  { %5547 = vmatprep.subr.bf16.mxu0 %v7021_v34  ;;  %5579 = vmatprep.subr.bf16.mxu1 %v7026_v21 }
 0xed4   :  { %5549 = vmatpush1.bf16.msra.mxu0 %v7023_v57  ;;  %5581 = vmatpush1.bf16.msra.mxu1 %v7029_v30 }
 0xed5   :  { %5551 = vmatprep.subr.bf16.mxu0 %v7031_v33  ;;  %5583 = vmatprep.subr.bf16.mxu1 %v7037_v44 }
 0xed8   :  { %5553 = vmatpush1.bf16.msra.mxu0 %v7035_v32  ;;  %5585 = vmatpush1.bf16.msra.mxu1 %v7041_v1 }
 0xed9   :  { %5555 = vmatprep.subr.bf16.mxu0 %v7043_v14  ;;  %5587 = vmatprep.subr.bf16.mxu1 %v7046_v38 }
 0xedc   :  { %5557 = vmatpush1.bf16.msra.mxu0 %v7049_v52  ;;  %5589 = vmatpush1.bf16.msra.mxu1 %v7053_v61 }
 0xedd   :  { %5559 = vmatprep.subr.bf16.mxu0 %v7058_v24  ;;  %5591 = vmatprep.subr.bf16.mxu1 %v7060_v19 }
 0xee0   :  { %5561 = vmatpush1.bf16.msra.mxu0 %v7062_v4  ;;  %5593 = vmatpush1.bf16.msra.mxu1 %v7065_v17 }
 0xee1   :  { %5595 = vmatprep.subr.bf16.mxu0 %v6974_v51  ;;  %5627 = vmatprep.subr.bf16.mxu1 %v6978_v35 }
 0xf96   :  { %v3502_v62 = vpop.f32.mrb[28].mxu0  ;;  %v3573_v23 = vpop.f32.mrb[30].mxu1 }
 0xf97   :  { %v5794_v29 = vadd.f32 %v3502_v62, %v7120_v2  ;;  %v3504_v37 = vpop.f32.mrb[29].mxu0  ;;  %v3575_v47 = vpop.f32.mrb[31].mxu1  ;;  %v5812_v3 = vadd.f32 %v3573_v23, %v7135_v41 }
 0xf98   :  { %v5795_v5 = vadd.f32 %v3504_v37, %v7124_v9  ;;  %v5813_v16 = vadd.f32 %v3575_v47, %v7130_v46 }
 0xf99   :  { %v4345_v6 = vmul.f32 -1.442695, %v5794_v29 }
 0xf9a   :  { %v4346_v42 = vmul.f32 -1.442695, %v5795_v5  ;;  %v4347_v43 = vmul.f32 -1.442695, %v5813_v16 }
 0xf9b   :  { %6126 = vpow2.f32 %v4345_v6 }
 0xf9c   :  { %6128 = vpow2.f32 %v4346_v42 }
 0xf9d   :  { %6130 = vpow2.f32 %v4347_v43 }
 0xf9e   :  { %6132 = vtanh.f32 %v5812_v3 }
 0xfa5   :  { %v6127_v28 = vpop.eup %6126 }
 0xfa6   :  { %v6129_v11 = vpop.eup %6128  ;;  %v3585_v27 = vadd.f32 1.0, %v6127_v28 }
 0xfa7   :  { %v3591_v20 = vadd.f32 1.0, %v6129_v11  ;;  %v6131_v12 = vpop.eup %6130 }
 0xfa8   :  { %6134 = vrcp.f32 %v3585_v27  ;;  %v6133_v49 = vpop.eup %6132  ;;  %v3598_v63 = vadd.f32 1.0, %v6131_v12 }
 0xfa9   :  { %6136 = vrcp.f32 %v3591_v20 }
 0xfaa   :  { %6138 = vrcp.f32 %v3598_v63 }
 0xfb2   :  { %v6135_v36 = vpop.eup %6134 }
 0xfb3   :  { %v6137_v48 = vpop.eup %6136  ;;  %v3602_v56 = vmul.f32 %v6135_v36, %v6133_v49 }
 0xfb4   :  { %v3601_v62 = vmul.f32 %v6137_v48, %v7322_v10  ;;  %v6139_v23 = vpop.eup %6138 }
 0xfb6   :  { %v7368_v29 = vadd.f32 %v3602_v56, %v3601_v62 }
 0xfb8   :  { %6140 = vtanh.f32 %v7368_v29 }
 0xfc2   :  { %v6141_v37 = vpop.eup %6140 }
 0xfc3   :  { %v7371_v47 = vmul.f32 %v6141_v37, %v6139_v23 }
 0xfc5   :  { %3676 = vmatmul.mubr.f32.vlgmr.msra.gmra.mrb[30].mxu0 %v7371_v47  ;;  %3747 = vmatmul.mubr.f32.vlgmr.msra.gmra.mrb[32].mxu1 %v7371_v47 }
 0xfc6   :  { %5597 = vmatpush1.bf16.msra.mxu0 %v6976_v26  ;;  %5629 = vmatpush1.bf16.msra.mxu1 %v6981_v18 }
 0xfc7   :  { %5599 = vmatprep.subr.bf16.mxu0 %v6985_v40  ;;  %5631 = vmatprep.subr.bf16.mxu1 %v6990_v50 }
 0xfc8   :  { %3850 = vmatprep.mubr.f32.mxu0 %v6316_v0  ;;  %3921 = vmatprep.mubr.f32.mxu1 %v6316_v0 }
 0xfca   :  { %5601 = vmatpush1.bf16.msra.mxu0 %v6988_v54  ;;  %5633 = vmatpush1.bf16.msra.mxu1 %v6993_v31 }
 0xfcb   :  { %5603 = vmatprep.subr.bf16.mxu0 %v6997_v55  ;;  %5635 = vmatprep.subr.bf16.mxu1 %v7002_v8 }
 0xfce   :  { %5605 = vmatpush1.bf16.msra.mxu0 %v7000_v7  ;;  %5637 = vmatpush1.bf16.msra.mxu1 %v7005_v22 }
 0xfcf   :  { %5607 = vmatprep.subr.bf16.mxu0 %v7010_v39  ;;  %5639 = vmatprep.subr.bf16.mxu1 %v7014_v60 }
 0xfd2   :  { %5609 = vmatpush1.bf16.msra.mxu0 %v7012_v53  ;;  %5641 = vmatpush1.bf16.msra.mxu1 %v7017_v13 }
 0xfd3   :  { %5611 = vmatprep.subr.bf16.mxu0 %v7021_v34  ;;  %5643 = vmatprep.subr.bf16.mxu1 %v7026_v21 }
 0xfd6   :  { %5613 = vmatpush1.bf16.msra.mxu0 %v7023_v57  ;;  %5645 = vmatpush1.bf16.msra.mxu1 %v7029_v30 }
 0xfd7   :  { %5615 = vmatprep.subr.bf16.mxu0 %v7031_v33  ;;  %5647 = vmatprep.subr.bf16.mxu1 %v7037_v44 }
 0xfda   :  { %5617 = vmatpush1.bf16.msra.mxu0 %v7035_v32  ;;  %5649 = vmatpush1.bf16.msra.mxu1 %v7041_v1 }
 0xfdb   :  { %5619 = vmatprep.subr.bf16.mxu0 %v7043_v14  ;;  %5651 = vmatprep.subr.bf16.mxu1 %v7046_v38 }
 0xfde   :  { %5621 = vmatpush1.bf16.msra.mxu0 %v7049_v52  ;;  %5653 = vmatpush1.bf16.msra.mxu1 %v7053_v61 }
 0xfdf   :  { %5623 = vmatprep.subr.bf16.mxu0 %v7058_v24  ;;  %5655 = vmatprep.subr.bf16.mxu1 %v7060_v19 }
 0xfe2   :  { %5625 = vmatpush1.bf16.msra.mxu0 %v7062_v4  ;;  %5657 = vmatpush1.bf16.msra.mxu1 %v7065_v17 }
 0xfe3   :  { %5659 = vmatprep.subr.bf16.mxu0 %v6974_v51  ;;  %5691 = vmatprep.subr.bf16.mxu1 %v6978_v35 }
0x1098   :  { %v3677_v10 = vpop.f32.mrb[30].mxu0  ;;  %v3748_v5 = vpop.f32.mrb[32].mxu1 }
0x1099   :  { %v5796_v6 = vadd.f32 %v3677_v10, %v7120_v2  ;;  %v3679_v42 = vpop.f32.mrb[31].mxu0  ;;  %v3750_v16 = vpop.f32.mrb[33].mxu1  ;;  %v5814_v20 = vadd.f32 %v3748_v5, %v7135_v41 }
0x109a   :  { %v5797_v43 = vadd.f32 %v3679_v42, %v7124_v9  ;;  %v5815_v11 = vadd.f32 %v3750_v16, %v7130_v46  ;;  %v4144_v16 = vld [vmem:[#allocation10 + $0x18] sm:$0xff] }
0x109b   :  { %v4348_v3 = vmul.f32 -1.442695, %v5796_v6 }
0x109c   :  { %v4349_v28 = vmul.f32 -1.442695, %v5797_v43  ;;  %v4350_v27 = vmul.f32 -1.442695, %v5815_v11 }
0x109d   :  { %6142 = vpow2.f32 %v4348_v3  ;;  %v4145_v3 = vld [vmem:[#allocation10 + $0x20] sm:$0xff] }
0x109e   :  { %6144 = vpow2.f32 %v4349_v28  ;;  %v4146_v28 = vld [vmem:[#allocation10 + $0x28] sm:$0xff] }
0x109f   :  { %6146 = vpow2.f32 %v4350_v27  ;;  %v5729_v11 = vpack.c.bf16 %v4146_v28, %v4145_v3  ;;  %v4147_v27 = vld [vmem:[#allocation10 + $0x30] sm:$0xff] }
0x10a0   :  { %6148 = vtanh.f32 %v5814_v20  ;;  %v4148_v20 = vld [vmem:[#allocation10 + $0x38] sm:$0xff] }
0x10a7   :  { %v6143_v51 = vpop.eup %6142 }
0x10a8   :  { %v6145_v12 = vpop.eup %6144  ;;  %v3760_v35 = vadd.f32 1.0, %v6143_v51  ;;  %v5732_v51 = vpack.c.bf16 %v4148_v20, %v4147_v27 }
0x10a9   :  { %v3766_v49 = vadd.f32 1.0, %v6145_v12  ;;  %v6147_v36 = vpop.eup %6146  ;;  %v4149_v12 = vld [vmem:[#allocation10 + $0x40] sm:$0xff] }
0x10aa   :  { %6150 = vrcp.f32 %v3760_v35  ;;  %v6149_v48 = vpop.eup %6148  ;;  %v3773_v23 = vadd.f32 1.0, %v6147_v36  ;;  %v4150_v35 = vld [vmem:[#allocation10 + $0x48] sm:$0xff]  ;;  %v4151_v36 = vld [vmem:[#allocation10 + $0x50] sm:$0xff] }
0x10ab   :  { %6152 = vrcp.f32 %v3766_v49  ;;  %v5735_v49 = vpack.c.bf16 %v4150_v35, %v4149_v12 }
0x10ac   :  { %6154 = vrcp.f32 %v3773_v23 }
0x10b4   :  { %v6151_v56 = vpop.eup %6150 }
0x10b5   :  { %v6153_v63 = vpop.eup %6152  ;;  %v3777_v62 = vmul.f32 %v6151_v56, %v6149_v48  ;;  %v4152_v48 = vld [vmem:[#allocation10 + $0x58] sm:$0xff] }
0x10b6   :  { %v3776_v37 = vmul.f32 %v6153_v63, %v7368_v29  ;;  %v6155_v5 = vpop.eup %6154  ;;  %v4143_v29 = vld [vmem:[#allocation10 + $0x10] sm:$0xff]  ;;  %v5738_v56 = vpack.c.bf16 %v4152_v48, %v4151_v36  ;;  %v4153_v63 = vld [vmem:[#allocation10 + $0x60] sm:$0xff] }
0x10b7   :  { %v5726_v43 = vpack.c.bf16 %v4144_v16, %v4143_v29 }
0x10b8   :  { %v7414_v10 = vadd.f32 %v3777_v62, %v3776_v37  ;;  %v4154_v62 = vld [vmem:[#allocation10 + $0x68] sm:$0xff]  ;;  %v4155_v37 = vld [vmem:[#allocation10 + $0x70] sm:$0xff] }
0x10b9   :  { %v5741_v23 = vpack.c.bf16 %v4154_v62, %v4153_v63 }
0x10ba   :  { %6156 = vtanh.f32 %v7414_v10 }
0x10c4   :  { %v6157_v6 = vpop.eup %6156 }
0x10c5   :  { %v7417_v42 = vmul.f32 %v6157_v6, %v6155_v5 }
0x10c7   :  { %3851 = vmatmul.mubr.f32.vlgmr.msra.gmra.mrb[32].mxu0 %v7417_v42  ;;  %3922 = vmatmul.mubr.f32.vlgmr.msra.gmra.mrb[34].mxu1 %v7417_v42 }
0x10c8   :  { %5661 = vmatpush1.bf16.msra.mxu0 %v6976_v26  ;;  %5693 = vmatpush1.bf16.msra.mxu1 %v6981_v18  ;;  %v6317_v26 = vmov 0.0|0.0  }
0x10c9   :  { %5663 = vmatprep.subr.bf16.mxu0 %v6985_v40  ;;  %5695 = vmatprep.subr.bf16.mxu1 %v6990_v50 }
0x10ca   :  { %4025 = vmatprep.mubr.f32.mxu0 %v6316_v0  ;;  %4096 = vmatprep.mubr.f32.mxu1 %v6316_v0 }
0x10cc   :  { %5665 = vmatpush1.bf16.msra.mxu0 %v6988_v54  ;;  %5697 = vmatpush1.bf16.msra.mxu1 %v6993_v31 }
0x10cd   :  { %5667 = vmatprep.subr.bf16.mxu0 %v6997_v55  ;;  %5699 = vmatprep.subr.bf16.mxu1 %v7002_v8 }
0x10d0   :  { %5669 = vmatpush1.bf16.msra.mxu0 %v7000_v7  ;;  %5701 = vmatpush1.bf16.msra.mxu1 %v7005_v22 }
0x10d1   :  { %5671 = vmatprep.subr.bf16.mxu0 %v7010_v39  ;;  %5703 = vmatprep.subr.bf16.mxu1 %v7014_v60 }
0x10d4   :  { %5673 = vmatpush1.bf16.msra.mxu0 %v7012_v53  ;;  %5705 = vmatpush1.bf16.msra.mxu1 %v7017_v13 }
0x10d5   :  { %5675 = vmatprep.subr.bf16.mxu0 %v7021_v34  ;;  %5707 = vmatprep.subr.bf16.mxu1 %v7026_v21 }
0x10d8   :  { %5677 = vmatpush1.bf16.msra.mxu0 %v7023_v57  ;;  %5709 = vmatpush1.bf16.msra.mxu1 %v7029_v30 }
0x10d9   :  { %5679 = vmatprep.subr.bf16.mxu0 %v7031_v33  ;;  %5711 = vmatprep.subr.bf16.mxu1 %v7037_v44 }
0x10dc   :  { %5681 = vmatpush1.bf16.msra.mxu0 %v7035_v32  ;;  %5713 = vmatpush1.bf16.msra.mxu1 %v7041_v1 }
0x10dd   :  { %5683 = vmatprep.subr.bf16.mxu0 %v7043_v14  ;;  %5715 = vmatprep.subr.bf16.mxu1 %v7046_v38 }
0x10e0   :  { %5685 = vmatpush1.bf16.msra.mxu0 %v7049_v52  ;;  %5717 = vmatpush1.bf16.msra.mxu1 %v7053_v61  ;;  %v4141_v52 = vld [vmem:[#allocation10] sm:$0xff]  ;;  %v4142_v61 = vld [vmem:[#allocation10 + $0x8] sm:$0xff] }
0x10e1   :  { %5687 = vmatprep.subr.bf16.mxu0 %v7058_v24  ;;  %5719 = vmatprep.subr.bf16.mxu1 %v7060_v19 }
0x10e4   :  { %5689 = vmatpush1.bf16.msra.mxu0 %v7062_v4  ;;  %5721 = vmatpush1.bf16.msra.mxu1 %v7065_v17  ;;  %v5723_v4 = vpack.c.bf16 %v4142_v61, %v4141_v52 }
0x10e5   :  { %5722 = vmatprep.subr.bf16.mxu0 %v6317_v26 }
0x119a   :  { %v3852_v18 = vpop.f32.mrb[32].mxu0  ;;  %v3923_v40 = vpop.f32.mrb[34].mxu1 }
0x119b   :  { %v5798_v54 = vadd.f32 %v3852_v18, %v7120_v2  ;;  %v3854_v50 = vpop.f32.mrb[33].mxu0  ;;  %v3925_v31 = vpop.f32.mrb[35].mxu1  ;;  %v5816_v53 = vadd.f32 %v3923_v40, %v7135_v41 }
0x119c   :  { %v5799_v55 = vadd.f32 %v3854_v50, %v7124_v9  ;;  %v5817_v22 = vadd.f32 %v3925_v31, %v7130_v46 }
0x119d   :  { %v4351_v7 = vmul.f32 -1.442695, %v5798_v54 }
0x119e   :  { %v4352_v8 = vmul.f32 -1.442695, %v5799_v55  ;;  %v4353_v39 = vmul.f32 -1.442695, %v5817_v22 }
0x119f   :  { %6158 = vpow2.f32 %v4351_v7 }
0x11a0   :  { %6160 = vpow2.f32 %v4352_v8 }
0x11a1   :  { %6162 = vpow2.f32 %v4353_v39 }
0x11a2   :  { %6164 = vtanh.f32 %v5816_v53 }
0x11a9   :  { %v6159_v60 = vpop.eup %6158 }
0x11aa   :  { %v6161_v13 = vpop.eup %6160  ;;  %v3935_v34 = vadd.f32 1.0, %v6159_v60 }
0x11ab   :  { %v3941_v57 = vadd.f32 1.0, %v6161_v13  ;;  %v6163_v21 = vpop.eup %6162 }
0x11ac   :  { %6166 = vrcp.f32 %v3935_v34  ;;  %v6165_v30 = vpop.eup %6164  ;;  %v3948_v1 = vadd.f32 1.0, %v6163_v21 }
0x11ad   :  { %6168 = vrcp.f32 %v3941_v57 }
0x11ae   :  { %6170 = vrcp.f32 %v3948_v1 }
0x11b6   :  { %v6167_v33 = vpop.eup %6166 }
0x11b7   :  { %v6169_v32 = vpop.eup %6168  ;;  %v3952_v44 = vmul.f32 %v6167_v33, %v6165_v30 }
0x11b8   :  { %v3951_v14 = vmul.f32 %v6169_v32, %v7414_v10  ;;  %v6171_v24 = vpop.eup %6170  ;;  %v4156_v10 = vld [vmem:[#allocation10 + $0x78] sm:$0xff] }
0x11b9   :  { %v5744_v5 = vpack.c.bf16 %v4156_v10, %v4155_v37 }
0x11ba   :  { %v7459_v38 = vadd.f32 %v3952_v44, %v3951_v14 }
0x11bc   :  { %6172 = vtanh.f32 %v7459_v38 }
0x11c6   :  { %v6173_v19 = vpop.eup %6172 }
0x11c7   :  { %v3955_v17 = vmul.f32 %v6173_v19, %v6171_v24 }
0x11c9   :  { %4026 = vmatmul.mubr.f32.vlgmr.msra.gmra.mrb[34].mxu0 %v3955_v17  ;;  %4097 = vmatmul.mubr.f32.vlgmr.msra.gmra.mrb[36].mxu1 %v3955_v17 }
0x11ca   :  { %5724 = vmatpush3.bf16.msra.mxu0 %v5723_v4  ;;  %4415 = vmatprep.mubr.msk.f32.mxu0 %vm6318_vm0, %v6316_v0 }
0x11cb   :  { %5725 = vmatprep.subr.bf16.mxu0 %v6317_v26 }
0x11ce   :  { %5727 = vmatpush3.bf16.msra.mxu0 %v5726_v43 }
0x11cf   :  { %5728 = vmatprep.subr.bf16.mxu0 %v6317_v26 }
0x11d2   :  { %5730 = vmatpush3.bf16.msra.mxu0 %v5729_v11 }
0x11d3   :  { %5731 = vmatprep.subr.bf16.mxu0 %v6317_v26 }
0x11d6   :  { %5733 = vmatpush3.bf16.msra.mxu0 %v5732_v51 }
0x11d7   :  { %5734 = vmatprep.subr.bf16.mxu0 %v6317_v26 }
0x11da   :  { %5736 = vmatpush3.bf16.msra.mxu0 %v5735_v49 }
0x11db   :  { %5737 = vmatprep.subr.bf16.mxu0 %v6317_v26 }
0x11de   :  { %5739 = vmatpush3.bf16.msra.mxu0 %v5738_v56 }
0x11df   :  { %5740 = vmatprep.subr.bf16.mxu0 %v6317_v26 }
0x11e2   :  { %5742 = vmatpush3.bf16.msra.mxu0 %v5741_v23 }
0x11e3   :  { %5743 = vmatprep.subr.bf16.mxu0 %v6317_v26 }
0x11e6   :  { %5745 = vmatpush3.bf16.msra.mxu0 %v5744_v5 }
0x11e9   :  { %4416 = vmatmul.mubr.f32.vlgmr.msra.gmra.mrb[36].mxu0 %v7141_v59 }
0x11ea   :  { %4418 = vmatprep.mubr.msk.f32.mxu0 %vm6318_vm0, %v6316_v0 }
0x11ed   :  { %4419 = vmatmul.mubr.f32.gmra.mrb[38].mxu0 %v7187_v25 }
0x11ee   :  { %4421 = vmatprep.mubr.msk.f32.mxu0 %vm6318_vm0, %v6316_v0 }
0x11f1   :  { %4422 = vmatmul.mubr.f32.gmra.mrb[40].mxu0 %v7233_v58 }
0x11f2   :  { %4424 = vmatprep.mubr.msk.f32.mxu0 %vm6318_vm0, %v6316_v0 }
0x11f5   :  { %4425 = vmatmul.mubr.f32.gmra.mrb[42].mxu0 %v7279_v45 }
0x11f6   :  { %4427 = vmatprep.mubr.msk.f32.mxu0 %vm6318_vm0, %v6316_v0 }
0x11f9   :  { %4428 = vmatmul.mubr.f32.gmra.mrb[44].mxu0 %v7325_v15 }
0x11fa   :  { %4430 = vmatprep.mubr.msk.f32.mxu0 %vm6318_vm0, %v6316_v0 }
0x11fd   :  { %4431 = vmatmul.mubr.f32.gmra.mrb[46].mxu0 %v7371_v47 }
0x11fe   :  { %4433 = vmatprep.mubr.msk.f32.mxu0 %vm6318_vm0, %v6316_v0 }
0x1201   :  { %4434 = vmatmul.mubr.f32.gmra.mrb[48].mxu0 %v7417_v42 }
0x1202   :  { %4436 = vmatprep.mubr.msk.f32.mxu0 %vm6318_vm0, %v6316_v0 }
0x1205   :  { %4437 = vmatmul.mubr.f32.gmra.mrb[50].mxu0 %v3955_v17 }
0x1206   :  { %4439 = vmatprep.mubr.msk.f32.mxu0 %vm6318_vm0, %v6316_v0 }
0x129c   :  { %v4027_v59 = vpop.f32.mrb[34].mxu0  ;;  %v4098_v25 = vpop.f32.mrb[36].mxu1 }
0x129d   :  { %v5800_v58 = vadd.f32 %v4027_v59, %v7120_v2  ;;  %v4029_v45 = vpop.f32.mrb[35].mxu0  ;;  %v4100_v15 = vpop.f32.mrb[37].mxu1  ;;  %v5818_v40 = vadd.f32 %v4098_v25, %v7135_v41 }
0x129e   :  { %v5801_v47 = vadd.f32 %v4029_v45, %v7124_v9  ;;  %v5819_v42 = vadd.f32 %v4100_v15, %v7130_v46  ;;  %v4357_v46 = vld [vmem:[%s7522_s5] ss:$0 sm:$0xff]  ;;  %s6319_s5 = smov [#allocation12]  }
0x129f   :  { %v4354_v6 = vmul.f32 -1.442695, %v5800_v58  ;;  %s4288_s27 = sshll.u32 %s6319_s5, 4  ;;  %s4289_s27 = int_to_ptr.vmem [resolvable:$true] %s4288_s27 }
0x12a0   :  { %v4355_v26 = vmul.f32 -1.442695, %v5801_v47  ;;  %v4356_v18 = vmul.f32 -1.442695, %v5819_v42  ;;  %s6278_s28 = scalar_lea.vmem %s4289_s27, 1152  ;;  %p6283_p5 = scmp.lt.s32.totalorder %s4289_s27, %s4289_s27 }
0x12a1   :  { %6174 = vpow2.f32 %v4354_v6  ;;  %p6279_p4 = scmp.ne.s32.totalorder %s4289_s27, %s6278_s28  ;;  %p6284_p6 = scmp.lt.s32.totalorder %s6278_s28, %s6278_s28 }
0x12a2   :  { %6176 = vpow2.f32 %v4355_v26 }
0x12a3   :  { %6178 = vpow2.f32 %v4356_v18  ;;  %p6285_p7 = por %p6284_p6, %p6283_p5 }
0x12a4   :  { %6180 = vtanh.f32 %v5818_v40 }
0x12a5   :  { %p6286_p8 = pnand %p6285_p7, %p6279_p4 }
0x12ab   :  { %v6175_v54 = vpop.eup %6174 }
0x12ac   :  { %v6177_v50 = vpop.eup %6176  ;;  %v4110_v0 = vadd.f32 1.0, %v6175_v54 }
0x12ad   :  { %v4116_v31 = vadd.f32 1.0, %v6177_v50  ;;  %v6179_v2 = vpop.eup %6178 }
0x12ae   :  { %6182 = vrcp.f32 %v4110_v0  ;;  %v6181_v55 = vpop.eup %6180  ;;  %v4123_v22 = vadd.f32 1.0, %v6179_v2 }
0x12af   :  { %6184 = vrcp.f32 %v4116_v31 }
0x12b0   :  { %6186 = vrcp.f32 %v4123_v22 }
0x12b8   :  { %v6183_v9 = vpop.eup %6182 }
0x12b9   :  { %v6185_v7 = vpop.eup %6184  ;;  %v4127_v8 = vmul.f32 %v6183_v9, %v6181_v55 }
0x12ba   :  { %v4126_v39 = vmul.f32 %v6185_v7, %v7459_v38  ;;  %v6187_v44 = vpop.eup %6186 }
0x12bc   :  { %v4230_v41 = vpop.f32.mrb[36].mxu0  ;;  %v4128_v53 = vadd.f32 %v4127_v8, %v4126_v39 }
0x12bd   :  { %v4231_v60 = vadd.f32 %v4357_v46, %v4230_v41  ;;  %v4417_v13 = vpop.f32.mrb[37].mxu0 }
0x12be   :  { %6188 = vtanh.f32 %v4128_v53 }
0x12bf   :  { %4274 = vst [vmem:[#allocation12] sm:$0xff] %v4231_v60 }
0x12c0   :  { %v4235_v34 = vpop.f32.mrb[38].mxu0 }
0x12c1   :  { %v4236_v57 = vadd.f32 %v4357_v46, %v4235_v34  ;;  %v4420_v21 = vpop.f32.mrb[39].mxu0 }
0x12c3   :  { %4275 = vst [vmem:[#allocation12 + $0x8] sm:$0xff] %v4236_v57 }
0x12c4   :  { %v4240_v30 = vpop.f32.mrb[40].mxu0 }
0x12c5   :  { %v4241_v33 = vadd.f32 %v4357_v46, %v4240_v30  ;;  %v4423_v32 = vpop.f32.mrb[41].mxu0 }
0x12c7   :  { %4276 = vst [vmem:[#allocation12 + $0x10] sm:$0xff] %v4241_v33 }
0x12c8   :  { %v6189_v1 = vpop.eup %6188  ;;  %v4245_v14 = vpop.f32.mrb[42].mxu0 }
0x12c9   :  { %v4246_v38 = vadd.f32 %v4357_v46, %v4245_v14  ;;  %v4426_v52 = vpop.f32.mrb[43].mxu0  ;;  %v4130_v61 = vmul.f32 %v6189_v1, %v6187_v44 }
0x12cb   :  { %4277 = vst [vmem:[#allocation12 + $0x18] sm:$0xff] %v4246_v38  ;;  %4440 = vmatmul.mubr.f32.gmra.mrb[52].mxu0 %v4130_v61 }
0x12cc   :  { %v4250_v24 = vpop.f32.mrb[44].mxu0 }
0x12cd   :  { %v4251_v19 = vadd.f32 %v4357_v46, %v4250_v24  ;;  %v4429_v4 = vpop.f32.mrb[45].mxu0 }
0x12cf   :  { %4278 = vst [vmem:[#allocation12 + $0x20] sm:$0xff] %v4251_v19 }
0x12d0   :  { %v4255_v17 = vpop.f32.mrb[46].mxu0 }
0x12d1   :  { %v4256_v29 = vadd.f32 %v4357_v46, %v4255_v17  ;;  %v4432_v16 = vpop.f32.mrb[47].mxu0 }
0x12d3   :  { %4279 = vst [vmem:[#allocation12 + $0x28] sm:$0xff] %v4256_v29 }
0x12d4   :  { %v4260_v43 = vpop.f32.mrb[48].mxu0 }
0x12d5   :  { %v4261_v3 = vadd.f32 %v4357_v46, %v4260_v43  ;;  %v4435_v28 = vpop.f32.mrb[49].mxu0 }
0x12d7   :  { %4280 = vst [vmem:[#allocation12 + $0x30] sm:$0xff] %v4261_v3 }
0x12d8   :  { %v4265_v11 = vpop.f32.mrb[50].mxu0 }
0x12d9   :  { %v4266_v27 = vadd.f32 %v4357_v46, %v4265_v11  ;;  %v4438_v20 = vpop.f32.mrb[51].mxu0 }
0x12db   :  { %4281 = vst [vmem:[#allocation12 + $0x38] sm:$0xff] %v4266_v27 }
0x139e   :  { %v4270_v51 = vpop.f32.mrb[52].mxu0 }
0x139f   :  { %v4271_v12 = vadd.f32 %v4357_v46, %v4270_v51  ;;  %v4441_v35 = vpop.f32.mrb[53].mxu0 }
0x13a1   :  { %4282 = vst [vmem:[#allocation12 + $0x40] sm:$0xff] %v4271_v12 }
0x13a2   :  { %6289 = shalt.err (!%p6286_p8)
}
0x13a3   :  { %s6290_s9 = scalar_lea.hbm %s7523_s6, 1152 }
0x13a4   :  { %p6291_p9 = scmp.ne.s32.totalorder %s7523_s6, %s6290_s9  ;;  %p6294_p10 = scmp.lt.u32.totalorder %s6290_s9, %s7523_s6 }
0x13a6   :  { %p6296_p11 = pnand %p6294_p10, %p6291_p9 }
0x13a8   :  { %6299 = shalt.err (!%p6296_p11)
}
0x13a9   :  { %4294 = dma.vmem_to_hbm [thread:$0]  %s4289_s27, 1152, %s7523_s6, [#allocation6], %s6312_s1, %s6312_s1, %s6313_s21  }
0x13aa   :  { %6306 = dma.done.wait [#allocation6], 1152  }
0x13ab   :  { %6307 = vsyncadd [#allocation6], 4294966144 }
0x13ac   :  { %4298 = vsyncpa [#allocation5], 1 }
0x13ad   :  { %4299 = vsyncpa [#allocation8], 1 }
0x13ae   :  { %4300 = vsyncpa [#allocation11], 1 }
0x13af   :  { %4301 = vsyncpa [#allocation6], 1 }

</bundles_post_ra>
